<compile_context>
chip_gen: v5e
topology: v5e:2x2
jax: 0.10.0
libtpu: 0.0.40
codegen_flags: <defaults>
</compile_context>

<pallas_src>
import math
import jax
import jax.numpy as jnp
from jax.experimental import pallas as pl
from jax.experimental.pallas import tpu as pltpu

N_HEAD = 4
EPS = 1e-5                     # torch.nn.LayerNorm default
MASK_VALUE = -1e30             # finite "neg-inf"


def _layernorm(x, w, b):
    mu = jnp.mean(x, axis=-1, keepdims=True)
    xc = x - mu
    var = jnp.mean(xc * xc, axis=-1, keepdims=True)
    inv = jax.lax.rsqrt(var + EPS)
    return xc * inv * w + b


def _gelu_tanh(x):
    # matches torch nn.GELU(approximate='tanh')
    c = math.sqrt(2.0 / math.pi)
    return 0.5 * x * (1.0 + jnp.tanh(c * (x + 0.044715 * x * x * x)))


def block_kernel(x_ref, wqkv_ref, wproj_ref, wfc_ref, wp2_ref, vec_ref, o_ref):
    NB, T, C = x_ref.shape
    hd = C // N_HEAD
    R = NB * T
    scale = 1.0 / math.sqrt(hd)
    bf16 = jnp.bfloat16
    f32 = jnp.float32

    # ---- packed per-layer vectors (layout defined in pack_vectors) ----
    ln1w = vec_ref[0:1, 0 * C:1 * C]
    ln1b = vec_ref[0:1, 1 * C:2 * C]
    ln2w = vec_ref[0:1, 2 * C:3 * C]
    ln2b = vec_ref[0:1, 3 * C:4 * C]
    bq = vec_ref[1:2, 0 * C:1 * C]
    bk = vec_ref[1:2, 1 * C:2 * C]
    bv = vec_ref[1:2, 2 * C:3 * C]
    bproj = vec_ref[1:2, 3 * C:4 * C]
    bfc = vec_ref[2:3, :]                     # (1, 4C)
    bp2 = vec_ref[3:4, 0:C]

    # flatten batch*tokens -> (R, C): raises matmul M (fills MXU rows)
    x = x_ref[...].reshape(R, C)              # f32

    # additive causal mask, built once and broadcast once (hoisted out of head loop)
    row = jax.lax.broadcasted_iota(jnp.int32, (T, T), 0)
    col = jax.lax.broadcasted_iota(jnp.int32, (T, T), 1)
    mask_bias = jnp.where(col <= row, 0.0, MASK_VALUE).astype(f32)
    mask_bias = jnp.broadcast_to(mask_bias, (NB, T, T))

    # ---------------- attention branch ----------------
    h1 = _layernorm(x, ln1w, ln1b).astype(bf16)
    # q/k/v from static weight-Ref column slices (free slicing); 1/sqrt(hd)
    # folded into q once.
    q = (jnp.dot(h1, wqkv_ref[:, 0 * C:1 * C], preferred_element_type=f32) + bq) * scale
    k = jnp.dot(h1, wqkv_ref[:, 1 * C:2 * C], preferred_element_type=f32) + bk
    v = jnp.dot(h1, wqkv_ref[:, 2 * C:3 * C], preferred_element_type=f32) + bv
    q3 = q.astype(bf16).reshape(NB, T, C)
    k3 = k.astype(bf16).reshape(NB, T, C)
    v3 = v.astype(bf16).reshape(NB, T, C)

    heads = []
    for h in range(N_HEAD):                   # static, tiny head count
        sl = slice(h * hd, (h + 1) * hd)
        # batched over NB (leading batch dim), contracting the head dim ->
        # no explicit transpose
        s = jnp.einsum('btd,bsd->bts', q3[:, :, sl], k3[:, :, sl],
                       preferred_element_type=f32)          # (NB, T, T)
        s = s + mask_bias
        s = s - jnp.max(s, axis=-1, keepdims=True)
        p = jnp.exp(s)
        p = p * pl.reciprocal(jnp.sum(p, axis=-1, keepdims=True), approx=True)
        heads.append(jnp.einsum('bqk,bkd->bqd', p.astype(bf16), v3[:, :, sl],
                                preferred_element_type=f32))  # (NB, T, hd)

    # single (R,C)@(C,C) output projection on concatenated heads
    y = jnp.concatenate(heads, axis=-1).reshape(R, C)
    y = jnp.dot(y.astype(bf16), wproj_ref[...], preferred_element_type=f32) + bproj
    x1 = x + y

    # ---------------- MLP branch ----------------
    # (4C = 128 here; chunk the hidden dim only when it grows large)
    h2 = _layernorm(x1, ln2w, ln2b).astype(bf16)
    f = jnp.dot(h2, wfc_ref[...], preferred_element_type=f32) + bfc
    f = _gelu_tanh(f).astype(bf16)
    m = jnp.dot(f, wp2_ref[...], preferred_element_type=f32) + bp2

    o_ref[...] = (x1 + m).reshape(NB, T, C).astype(o_ref.dtype)


def pack_vectors(p, C):
    """Pack the 8 small per-layer vectors into one (8, 4C) f32 array."""
    vec = jnp.zeros((8, 4 * C), jnp.float32)
    vec = vec.at[0, 0 * C:1 * C].set(p['ln1w'].astype(jnp.float32))
    vec = vec.at[0, 1 * C:2 * C].set(p['ln1b'].astype(jnp.float32))
    vec = vec.at[0, 2 * C:3 * C].set(p['ln2w'].astype(jnp.float32))
    vec = vec.at[0, 3 * C:4 * C].set(p['ln2b'].astype(jnp.float32))
    vec = vec.at[1, 0:3 * C].set(p['bqkv'].astype(jnp.float32))
    vec = vec.at[1, 3 * C:4 * C].set(p['bproj'].astype(jnp.float32))
    vec = vec.at[2, :].set(p['bfc'].astype(jnp.float32))
    vec = vec.at[3, 0:C].set(p['bp2'].astype(jnp.float32))
    return vec


def gpt_block(x, params):
    Bsz, T, C = x.shape
    assert C % N_HEAD == 0
    # Keep >=2 "parallel" grid steps so v7x's two TensorCores both get work;
    # on v5e/v6e the extra step costs ~0.35 us.
    n_steps = 2 if (Bsz % 2 == 0 and Bsz >= 2) else 1
    NB = Bsz // n_steps

    wqkv, wproj = params['wqkv'], params['wproj']
    wfc, wp2 = params['wfc'], params['wp2']
    vecs = pack_vectors(params, C)

    in_specs = [
        pl.BlockSpec((NB, T, C), lambda b: (b, 0, 0)),
        pl.BlockSpec(wqkv.shape, lambda b: (0, 0)),
        pl.BlockSpec(wproj.shape, lambda b: (0, 0)),
        pl.BlockSpec(wfc.shape, lambda b: (0, 0)),
        pl.BlockSpec(wp2.shape, lambda b: (0, 0)),
        pl.BlockSpec(vecs.shape, lambda b: (0, 0)),
    ]

    # VMEM budget: double-buffered weights/vectors + in/out blocks + headroom
    # for kernel temporaries. No artificial 32 MiB floor (total need ~few
    # hundred KB); stays tiny even on v7x's 64 MiB VMEM.
    weight_bytes = sum(int(a.size) * a.dtype.itemsize
                       for a in (wqkv, wproj, wfc, wp2, vecs))
    block_bytes = NB * T * C * 4
    vmem_limit = int(2 * weight_bytes + 4 * block_bytes + (2 << 20))

    return pl.pallas_call(
        block_kernel,
        out_shape=jax.ShapeDtypeStruct((Bsz, T, C), x.dtype),
        grid=(n_steps,),
        in_specs=in_specs,
        out_specs=pl.BlockSpec((NB, T, C), lambda b: (b, 0, 0)),
        compiler_params=pltpu.CompilerParams(
            dimension_semantics=("parallel",),
            vmem_limit_bytes=vmem_limit),
    )(x, wqkv, wproj, wfc, wp2, vecs)


def init_params(key, n_embd):
    ks = jax.random.split(key, 12)
    std = 0.02
    f32, bf16 = jnp.float32, jnp.bfloat16
    return {
        # LayerNorm params / biases stay f32 (added post-accumulation).
        'ln1w': 1.0 + 0.1 * jax.random.normal(ks[4], (n_embd,), f32),
        'ln1b': 0.1 * jax.random.normal(ks[5], (n_embd,), f32),
        'ln2w': 1.0 + 0.1 * jax.random.normal(ks[6], (n_embd,), f32),
        'ln2b': 0.1 * jax.random.normal(ks[7], (n_embd,), f32),
        # Matmul weights stored bf16 (MXU-native, half the VMEM/DMA traffic).
        'wqkv': (std * jax.random.normal(ks[0], (n_embd, 3 * n_embd), f32)).astype(bf16),
        'bqkv': std * jax.random.normal(ks[8], (3 * n_embd,), f32),
        'wproj': (std * jax.random.normal(ks[1], (n_embd, n_embd), f32)).astype(bf16),
        'bproj': std * jax.random.normal(ks[9], (n_embd,), f32),
        'wfc': (std * jax.random.normal(ks[2], (n_embd, 4 * n_embd), f32)).astype(bf16),
        'bfc': std * jax.random.normal(ks[10], (4 * n_embd,), f32),
        'wp2': (std * jax.random.normal(ks[3], (4 * n_embd, n_embd), f32)).astype(bf16),
        'bp2': std * jax.random.normal(ks[11], (n_embd,), f32),
    }


def reference_block(x, p):
    """Pure-JAX f32 reference mirroring the PyTorch forward."""
    Bsz, T, C = x.shape
    hd = C // N_HEAD
    f32 = jnp.float32

    def ln(z, w, b):
        mu = z.mean(-1, keepdims=True)
        var = ((z - mu) ** 2).mean(-1, keepdims=True)
        return (z - mu) / jnp.sqrt(var + EPS) * w + b

    wqkv = p['wqkv'].astype(f32)
    wproj = p['wproj'].astype(f32)
    wfc = p['wfc'].astype(f32)
    wp2 = p['wp2'].astype(f32)

    h1 = ln(x, p['ln1w'], p['ln1b'])
    qkv = h1 @ wqkv + p['bqkv']
    q, k, v = jnp.split(qkv, 3, axis=-1)
    q = q.reshape(Bsz, T, N_HEAD, hd).transpose(0, 2, 1, 3)
    k = k.reshape(Bsz, T, N_HEAD, hd).transpose(0, 2, 1, 3)
    v = v.reshape(Bsz, T, N_HEAD, hd).transpose(0, 2, 1, 3)
    attn = jnp.einsum('bhtd,bhsd->bhts', q, k) / math.sqrt(hd)
    mask = jnp.tril(jnp.ones((T, T), bool))
    attn = jnp.where(mask, attn, -jnp.inf)
    attn = jax.nn.softmax(attn, axis=-1)
    y = jnp.einsum('bhts,bhsd->bhtd', attn, v)
    y = y.transpose(0, 2, 1, 3).reshape(Bsz, T, C)
    y = y @ wproj + p['bproj']
    x1 = x + y

    h2 = ln(x1, p['ln2w'], p['ln2b'])
    f = h2 @ wfc + p['bfc']
    f = 0.5 * f * (1.0 + jnp.tanh(math.sqrt(2.0 / math.pi) * (f + 0.044715 * f ** 3)))
    m = f @ wp2 + p['bp2']
    return x1 + m


if __name__ == "__main__":
    Bsz, T, n_embd = 4, 32, 32   # matches module: B=4, T=32; n_head=4 -> head_dim=8
    key = jax.random.PRNGKey(0)
    kx, kp = jax.random.split(key)
    x = jax.random.normal(kx, (Bsz, T, n_embd), jnp.float32)
    params = init_params(kp, n_embd)

    out = gpt_block(x, params)
    out = jax.block_until_ready(out)

    ref = reference_block(x, params)
    assert out.shape == (Bsz, T, n_embd)
    # bf16 MXU operands + approx softmax reciprocal vs pure-f32 reference.
    assert jnp.allclose(out, ref, atol=2e-2, rtol=2e-2), (
        "mismatch vs reference: max abs diff = %e" % float(jnp.max(jnp.abs(out - ref))))

    print("KERNEL_OK")
</pallas_src>

<mosaic_0001>
module attributes {stable_mosaic.version = 11 : i64} {
  func.func @block_kernel(%arg0: i32, %arg1: memref<2x32x32xf32, #tpu.memory_space<vmem>>, %arg2: memref<32x96xbf16, #tpu.memory_space<vmem>>, %arg3: memref<32x32xbf16, #tpu.memory_space<vmem>>, %arg4: memref<32x128xbf16, #tpu.memory_space<vmem>>, %arg5: memref<128x32xbf16, #tpu.memory_space<vmem>>, %arg6: memref<8x128xf32, #tpu.memory_space<vmem>>, %arg7: memref<2x32x32xf32, #tpu.memory_space<vmem>>) attributes {dimension_semantics = [#tpu.dimension_semantics<parallel>], iteration_bounds = array<i64: 2>, scalar_prefetch = 0 : i64, scratch_operands = 0 : i64, tpu.core_type = #tpu.core_type<tc>, window_params = [{transform_indices = @transform_0, window_bounds = array<i64: 2, 32, 32>}, {pipeline_mode = #tpu.pipeline_mode<synchronous>, transform_indices = @transform_1, window_bounds = array<i64: 32, 96>}, {pipeline_mode = #tpu.pipeline_mode<synchronous>, transform_indices = @transform_2, window_bounds = array<i64: 32, 32>}, {pipeline_mode = #tpu.pipeline_mode<synchronous>, transform_indices = @transform_3, window_bounds = array<i64: 32, 128>}, {pipeline_mode = #tpu.pipeline_mode<synchronous>, transform_indices = @transform_4, window_bounds = array<i64: 128, 32>}, {pipeline_mode = #tpu.pipeline_mode<synchronous>, transform_indices = @transform_5, window_bounds = array<i64: 8, 128>}, {transform_indices = @transform_6, window_bounds = array<i64: 2, 32, 32>}]} {
    %c0 = arith.constant 0 : index
    %c0_0 = arith.constant 0 : index
    %0 = vector.load %arg6[%c0, %c0_0] : memref<8x128xf32, #tpu.memory_space<vmem>>, vector<1x32xf32>
    %c0_1 = arith.constant 0 : index
    %c32 = arith.constant 32 : index
    %1 = vector.load %arg6[%c0_1, %c32] : memref<8x128xf32, #tpu.memory_space<vmem>>, vector<1x32xf32>
    %c0_2 = arith.constant 0 : index
    %c64 = arith.constant 64 : index
    %2 = vector.load %arg6[%c0_2, %c64] : memref<8x128xf32, #tpu.memory_space<vmem>>, vector<1x32xf32>
    %c0_3 = arith.constant 0 : index
    %c96 = arith.constant 96 : index
    %3 = vector.load %arg6[%c0_3, %c96] : memref<8x128xf32, #tpu.memory_space<vmem>>, vector<1x32xf32>
    %c1 = arith.constant 1 : index
    %c0_4 = arith.constant 0 : index
    %4 = vector.load %arg6[%c1, %c0_4] : memref<8x128xf32, #tpu.memory_space<vmem>>, vector<1x32xf32>
    %c1_5 = arith.constant 1 : index
    %c32_6 = arith.constant 32 : index
    %5 = vector.load %arg6[%c1_5, %c32_6] : memref<8x128xf32, #tpu.memory_space<vmem>>, vector<1x32xf32>
    %c1_7 = arith.constant 1 : index
    %c64_8 = arith.constant 64 : index
    %6 = vector.load %arg6[%c1_7, %c64_8] : memref<8x128xf32, #tpu.memory_space<vmem>>, vector<1x32xf32>
    %c1_9 = arith.constant 1 : index
    %c96_10 = arith.constant 96 : index
    %7 = vector.load %arg6[%c1_9, %c96_10] : memref<8x128xf32, #tpu.memory_space<vmem>>, vector<1x32xf32>
    %c2 = arith.constant 2 : index
    %c0_11 = arith.constant 0 : index
    %8 = vector.load %arg6[%c2, %c0_11] : memref<8x128xf32, #tpu.memory_space<vmem>>, vector<1x128xf32>
    %c3 = arith.constant 3 : index
    %c0_12 = arith.constant 0 : index
    %9 = vector.load %arg6[%c3, %c0_12] : memref<8x128xf32, #tpu.memory_space<vmem>>, vector<1x32xf32>
    %c0_13 = arith.constant 0 : index
    %c0_14 = arith.constant 0 : index
    %c0_15 = arith.constant 0 : index
    %10 = vector.load %arg1[%c0_13, %c0_14, %c0_15] : memref<2x32x32xf32, #tpu.memory_space<vmem>>, vector<2x32x32xf32>
    %11 = vector.shape_cast %10 : vector<2x32x32xf32> to vector<64x32xf32>
    %12 = tpu.iota {dimensions = array<i32: 0>} : vector<32x32xi32>
    %13 = tpu.iota {dimensions = array<i32: 1>} : vector<32x32xi32>
    %14 = arith.cmpi sle, %13, %12 : vector<32x32xi32>
    %cst = arith.constant 0.000000e+00 : f32
    %cst_16 = arith.constant -1.000000e+30 : f32
    %15 = vector.broadcast %cst : f32 to vector<32x32xf32>
    %16 = vector.broadcast %cst_16 : f32 to vector<32x32xf32>
    %17 = arith.select %14, %15, %16 : vector<32x32xi1>, vector<32x32xf32>
    %18 = vector.shape_cast %17 : vector<32x32xf32> to vector<1x32x32xf32>
    %19 = vector.broadcast %18 : vector<1x32x32xf32> to vector<2x32x32xf32>
    %cst_17 = arith.constant dense<0.000000e+00> : vector<64xf32>
    %20 = vector.multi_reduction <add>, %11, %cst_17 [1] : vector<64x32xf32> to vector<64xf32>
    %21 = vector.shape_cast %20 : vector<64xf32> to vector<64x1xf32>
    %cst_18 = arith.constant 3.200000e+01 : f32
    %22 = vector.broadcast %cst_18 : f32 to vector<64x1xf32>
    %23 = arith.divf %21, %22 : vector<64x1xf32>
    %24 = vector.broadcast %23 : vector<64x1xf32> to vector<64x32xf32>
    %25 = arith.subf %11, %24 : vector<64x32xf32>
    %26 = arith.mulf %25, %25 : vector<64x32xf32>
    %cst_19 = arith.constant dense<0.000000e+00> : vector<64xf32>
    %27 = vector.multi_reduction <add>, %26, %cst_19 [1] : vector<64x32xf32> to vector<64xf32>
    %28 = vector.shape_cast %27 : vector<64xf32> to vector<64x1xf32>
    %cst_20 = arith.constant 3.200000e+01 : f32
    %29 = vector.broadcast %cst_20 : f32 to vector<64x1xf32>
    %30 = arith.divf %28, %29 : vector<64x1xf32>
    %cst_21 = arith.constant 9.99999974E-6 : f32
    %31 = vector.broadcast %cst_21 : f32 to vector<64x1xf32>
    %32 = arith.addf %30, %31 : vector<64x1xf32>
    %33 = math.rsqrt %32 : vector<64x1xf32>
    %34 = vector.broadcast %33 : vector<64x1xf32> to vector<64x32xf32>
    %35 = arith.mulf %25, %34 : vector<64x32xf32>
    %36 = vector.broadcast %0 : vector<1x32xf32> to vector<64x32xf32>
    %37 = arith.mulf %35, %36 : vector<64x32xf32>
    %38 = vector.broadcast %1 : vector<1x32xf32> to vector<64x32xf32>
    %39 = arith.addf %37, %38 : vector<64x32xf32>
    %40 = arith.truncf %39 : vector<64x32xf32> to vector<64x32xbf16>
    %c0_22 = arith.constant 0 : index
    %c0_23 = arith.constant 0 : index
    %41 = vector.load %arg2[%c0_22, %c0_23] : memref<32x96xbf16, #tpu.memory_space<vmem>>, vector<32x32xbf16>
    %cst_24 = arith.constant dense<0.000000e+00> : vector<64x32xf32>
    %42 = tpu.matmul %40, %41, %cst_24 {dimension_numbers = #tpu.dot_dimension_numbers<[1], [0], [0], [1], [0, 0, 1, 1], [], []>} : vector<64x32xbf16>, vector<32x32xbf16>, vector<64x32xf32> -> vector<64x32xf32>
    %43 = vector.broadcast %4 : vector<1x32xf32> to vector<64x32xf32>
    %44 = arith.addf %42, %43 : vector<64x32xf32>
    %cst_25 = arith.constant 0.353553385 : f32
    %45 = vector.broadcast %cst_25 : f32 to vector<64x32xf32>
    %46 = arith.mulf %44, %45 : vector<64x32xf32>
    %c0_26 = arith.constant 0 : index
    %c32_27 = arith.constant 32 : index
    %47 = vector.load %arg2[%c0_26, %c32_27] : memref<32x96xbf16, #tpu.memory_space<vmem>>, vector<32x32xbf16>
    %cst_28 = arith.constant dense<0.000000e+00> : vector<64x32xf32>
    %48 = tpu.matmul %40, %47, %cst_28 {dimension_numbers = #tpu.dot_dimension_numbers<[1], [0], [0], [1], [0, 0, 1, 1], [], []>} : vector<64x32xbf16>, vector<32x32xbf16>, vector<64x32xf32> -> vector<64x32xf32>
    %49 = vector.broadcast %5 : vector<1x32xf32> to vector<64x32xf32>
    %50 = arith.addf %48, %49 : vector<64x32xf32>
    %c0_29 = arith.constant 0 : index
    %c64_30 = arith.constant 64 : index
    %51 = vector.load %arg2[%c0_29, %c64_30] : memref<32x96xbf16, #tpu.memory_space<vmem>>, vector<32x32xbf16>
    %cst_31 = arith.constant dense<0.000000e+00> : vector<64x32xf32>
    %52 = tpu.matmul %40, %51, %cst_31 {dimension_numbers = #tpu.dot_dimension_numbers<[1], [0], [0], [1], [0, 0, 1, 1], [], []>} : vector<64x32xbf16>, vector<32x32xbf16>, vector<64x32xf32> -> vector<64x32xf32>
    %53 = vector.broadcast %6 : vector<1x32xf32> to vector<64x32xf32>
    %54 = arith.addf %52, %53 : vector<64x32xf32>
    %55 = arith.truncf %46 : vector<64x32xf32> to vector<64x32xbf16>
    %56 = vector.shape_cast %55 : vector<64x32xbf16> to vector<2x32x32xbf16>
    %57 = arith.truncf %50 : vector<64x32xf32> to vector<64x32xbf16>
    %58 = vector.shape_cast %57 : vector<64x32xbf16> to vector<2x32x32xbf16>
    %59 = arith.truncf %54 : vector<64x32xf32> to vector<64x32xbf16>
    %60 = vector.shape_cast %59 : vector<64x32xbf16> to vector<2x32x32xbf16>
    %61 = vector.extract_strided_slice %56 {offsets = [0, 0, 0], sizes = [2, 32, 8], strides = [1, 1, 1]} : vector<2x32x32xbf16> to vector<2x32x8xbf16>
    %62 = vector.extract_strided_slice %58 {offsets = [0, 0, 0], sizes = [2, 32, 8], strides = [1, 1, 1]} : vector<2x32x32xbf16> to vector<2x32x8xbf16>
    "tpu.trace_start"() <{level = 10 : i32, message = "btd,bsd->bts"}> : () -> ()
    %cst_32 = arith.constant dense<0.000000e+00> : vector<2x32x32xf32>
    %63 = tpu.matmul %61, %62, %cst_32 {dimension_numbers = #tpu.dot_dimension_numbers<[2], [2], [1], [1], [0, 0, 0, 1, 1, 1], [0], [0]>} : vector<2x32x8xbf16>, vector<2x32x8xbf16>, vector<2x32x32xf32> -> vector<2x32x32xf32>
    "tpu.trace_stop"() : () -> ()
    %64 = arith.addf %63, %19 : vector<2x32x32xf32>
    %cst_33 = arith.constant dense<0xFF800000> : vector<2x32xf32>
    %65 = vector.multi_reduction <maximumf>, %64, %cst_33 [2] : vector<2x32x32xf32> to vector<2x32xf32>
    %66 = vector.shape_cast %65 : vector<2x32xf32> to vector<2x32x1xf32>
    %67 = vector.broadcast %66 : vector<2x32x1xf32> to vector<2x32x32xf32>
    %68 = arith.subf %64, %67 : vector<2x32x32xf32>
    %69 = math.exp %68 : vector<2x32x32xf32>
    %cst_34 = arith.constant dense<0.000000e+00> : vector<2x32xf32>
    %70 = vector.multi_reduction <add>, %69, %cst_34 [2] : vector<2x32x32xf32> to vector<2x32xf32>
    %71 = vector.shape_cast %70 : vector<2x32xf32> to vector<2x32x1xf32>
    %72 = tpu.reciprocal %71 {approx = true} : vector<2x32x1xf32> -> vector<2x32x1xf32>
    %73 = vector.broadcast %72 : vector<2x32x1xf32> to vector<2x32x32xf32>
    %74 = arith.mulf %69, %73 : vector<2x32x32xf32>
    %75 = arith.truncf %74 : vector<2x32x32xf32> to vector<2x32x32xbf16>
    %76 = vector.extract_strided_slice %60 {offsets = [0, 0, 0], sizes = [2, 32, 8], strides = [1, 1, 1]} : vector<2x32x32xbf16> to vector<2x32x8xbf16>
    "tpu.trace_start"() <{level = 10 : i32, message = "bqk,bkd->bqd"}> : () -> ()
    %cst_35 = arith.constant dense<0.000000e+00> : vector<2x32x8xf32>
    %77 = tpu.matmul %75, %76, %cst_35 {dimension_numbers = #tpu.dot_dimension_numbers<[2], [1], [1], [2], [0, 0, 0, 1, 1, 2], [0], [0]>} : vector<2x32x32xbf16>, vector<2x32x8xbf16>, vector<2x32x8xf32> -> vector<2x32x8xf32>
    "tpu.trace_stop"() : () -> ()
    %78 = vector.extract_strided_slice %56 {offsets = [0, 0, 8], sizes = [2, 32, 8], strides = [1, 1, 1]} : vector<2x32x32xbf16> to vector<2x32x8xbf16>
    %79 = vector.extract_strided_slice %58 {offsets = [0, 0, 8], sizes = [2, 32, 8], strides = [1, 1, 1]} : vector<2x32x32xbf16> to vector<2x32x8xbf16>
    "tpu.trace_start"() <{level = 10 : i32, message = "btd,bsd->bts"}> : () -> ()
    %cst_36 = arith.constant dense<0.000000e+00> : vector<2x32x32xf32>
    %80 = tpu.matmul %78, %79, %cst_36 {dimension_numbers = #tpu.dot_dimension_numbers<[2], [2], [1], [1], [0, 0, 0, 1, 1, 1], [0], [0]>} : vector<2x32x8xbf16>, vector<2x32x8xbf16>, vector<2x32x32xf32> -> vector<2x32x32xf32>
    "tpu.trace_stop"() : () -> ()
    %81 = arith.addf %80, %19 : vector<2x32x32xf32>
    %cst_37 = arith.constant dense<0xFF800000> : vector<2x32xf32>
    %82 = vector.multi_reduction <maximumf>, %81, %cst_37 [2] : vector<2x32x32xf32> to vector<2x32xf32>
    %83 = vector.shape_cast %82 : vector<2x32xf32> to vector<2x32x1xf32>
    %84 = vector.broadcast %83 : vector<2x32x1xf32> to vector<2x32x32xf32>
    %85 = arith.subf %81, %84 : vector<2x32x32xf32>
    %86 = math.exp %85 : vector<2x32x32xf32>
    %cst_38 = arith.constant dense<0.000000e+00> : vector<2x32xf32>
    %87 = vector.multi_reduction <add>, %86, %cst_38 [2] : vector<2x32x32xf32> to vector<2x32xf32>
    %88 = vector.shape_cast %87 : vector<2x32xf32> to vector<2x32x1xf32>
    %89 = tpu.reciprocal %88 {approx = true} : vector<2x32x1xf32> -> vector<2x32x1xf32>
    %90 = vector.broadcast %89 : vector<2x32x1xf32> to vector<2x32x32xf32>
    %91 = arith.mulf %86, %90 : vector<2x32x32xf32>
    %92 = arith.truncf %91 : vector<2x32x32xf32> to vector<2x32x32xbf16>
    %93 = vector.extract_strided_slice %60 {offsets = [0, 0, 8], sizes = [2, 32, 8], strides = [1, 1, 1]} : vector<2x32x32xbf16> to vector<2x32x8xbf16>
    "tpu.trace_start"() <{level = 10 : i32, message = "bqk,bkd->bqd"}> : () -> ()
    %cst_39 = arith.constant dense<0.000000e+00> : vector<2x32x8xf32>
    %94 = tpu.matmul %92, %93, %cst_39 {dimension_numbers = #tpu.dot_dimension_numbers<[2], [1], [1], [2], [0, 0, 0, 1, 1, 2], [0], [0]>} : vector<2x32x32xbf16>, vector<2x32x8xbf16>, vector<2x32x8xf32> -> vector<2x32x8xf32>
    "tpu.trace_stop"() : () -> ()
    %95 = vector.extract_strided_slice %56 {offsets = [0, 0, 16], sizes = [2, 32, 8], strides = [1, 1, 1]} : vector<2x32x32xbf16> to vector<2x32x8xbf16>
    %96 = vector.extract_strided_slice %58 {offsets = [0, 0, 16], sizes = [2, 32, 8], strides = [1, 1, 1]} : vector<2x32x32xbf16> to vector<2x32x8xbf16>
    "tpu.trace_start"() <{level = 10 : i32, message = "btd,bsd->bts"}> : () -> ()
    %cst_40 = arith.constant dense<0.000000e+00> : vector<2x32x32xf32>
    %97 = tpu.matmul %95, %96, %cst_40 {dimension_numbers = #tpu.dot_dimension_numbers<[2], [2], [1], [1], [0, 0, 0, 1, 1, 1], [0], [0]>} : vector<2x32x8xbf16>, vector<2x32x8xbf16>, vector<2x32x32xf32> -> vector<2x32x32xf32>
    "tpu.trace_stop"() : () -> ()
    %98 = arith.addf %97, %19 : vector<2x32x32xf32>
    %cst_41 = arith.constant dense<0xFF800000> : vector<2x32xf32>
    %99 = vector.multi_reduction <maximumf>, %98, %cst_41 [2] : vector<2x32x32xf32> to vector<2x32xf32>
    %100 = vector.shape_cast %99 : vector<2x32xf32> to vector<2x32x1xf32>
    %101 = vector.broadcast %100 : vector<2x32x1xf32> to vector<2x32x32xf32>
    %102 = arith.subf %98, %101 : vector<2x32x32xf32>
    %103 = math.exp %102 : vector<2x32x32xf32>
    %cst_42 = arith.constant dense<0.000000e+00> : vector<2x32xf32>
    %104 = vector.multi_reduction <add>, %103, %cst_42 [2] : vector<2x32x32xf32> to vector<2x32xf32>
    %105 = vector.shape_cast %104 : vector<2x32xf32> to vector<2x32x1xf32>
    %106 = tpu.reciprocal %105 {approx = true} : vector<2x32x1xf32> -> vector<2x32x1xf32>
    %107 = vector.broadcast %106 : vector<2x32x1xf32> to vector<2x32x32xf32>
    %108 = arith.mulf %103, %107 : vector<2x32x32xf32>
    %109 = arith.truncf %108 : vector<2x32x32xf32> to vector<2x32x32xbf16>
    %110 = vector.extract_strided_slice %60 {offsets = [0, 0, 16], sizes = [2, 32, 8], strides = [1, 1, 1]} : vector<2x32x32xbf16> to vector<2x32x8xbf16>
    "tpu.trace_start"() <{level = 10 : i32, message = "bqk,bkd->bqd"}> : () -> ()
    %cst_43 = arith.constant dense<0.000000e+00> : vector<2x32x8xf32>
    %111 = tpu.matmul %109, %110, %cst_43 {dimension_numbers = #tpu.dot_dimension_numbers<[2], [1], [1], [2], [0, 0, 0, 1, 1, 2], [0], [0]>} : vector<2x32x32xbf16>, vector<2x32x8xbf16>, vector<2x32x8xf32> -> vector<2x32x8xf32>
    "tpu.trace_stop"() : () -> ()
    %112 = vector.extract_strided_slice %56 {offsets = [0, 0, 24], sizes = [2, 32, 8], strides = [1, 1, 1]} : vector<2x32x32xbf16> to vector<2x32x8xbf16>
    %113 = vector.extract_strided_slice %58 {offsets = [0, 0, 24], sizes = [2, 32, 8], strides = [1, 1, 1]} : vector<2x32x32xbf16> to vector<2x32x8xbf16>
    "tpu.trace_start"() <{level = 10 : i32, message = "btd,bsd->bts"}> : () -> ()
    %cst_44 = arith.constant dense<0.000000e+00> : vector<2x32x32xf32>
    %114 = tpu.matmul %112, %113, %cst_44 {dimension_numbers = #tpu.dot_dimension_numbers<[2], [2], [1], [1], [0, 0, 0, 1, 1, 1], [0], [0]>} : vector<2x32x8xbf16>, vector<2x32x8xbf16>, vector<2x32x32xf32> -> vector<2x32x32xf32>
    "tpu.trace_stop"() : () -> ()
    %115 = arith.addf %114, %19 : vector<2x32x32xf32>
    %cst_45 = arith.constant dense<0xFF800000> : vector<2x32xf32>
    %116 = vector.multi_reduction <maximumf>, %115, %cst_45 [2] : vector<2x32x32xf32> to vector<2x32xf32>
    %117 = vector.shape_cast %116 : vector<2x32xf32> to vector<2x32x1xf32>
    %118 = vector.broadcast %117 : vector<2x32x1xf32> to vector<2x32x32xf32>
    %119 = arith.subf %115, %118 : vector<2x32x32xf32>
    %120 = math.exp %119 : vector<2x32x32xf32>
    %cst_46 = arith.constant dense<0.000000e+00> : vector<2x32xf32>
    %121 = vector.multi_reduction <add>, %120, %cst_46 [2] : vector<2x32x32xf32> to vector<2x32xf32>
    %122 = vector.shape_cast %121 : vector<2x32xf32> to vector<2x32x1xf32>
    %123 = tpu.reciprocal %122 {approx = true} : vector<2x32x1xf32> -> vector<2x32x1xf32>
    %124 = vector.broadcast %123 : vector<2x32x1xf32> to vector<2x32x32xf32>
    %125 = arith.mulf %120, %124 : vector<2x32x32xf32>
    %126 = arith.truncf %125 : vector<2x32x32xf32> to vector<2x32x32xbf16>
    %127 = vector.extract_strided_slice %60 {offsets = [0, 0, 24], sizes = [2, 32, 8], strides = [1, 1, 1]} : vector<2x32x32xbf16> to vector<2x32x8xbf16>
    "tpu.trace_start"() <{level = 10 : i32, message = "bqk,bkd->bqd"}> : () -> ()
    %cst_47 = arith.constant dense<0.000000e+00> : vector<2x32x8xf32>
    %128 = tpu.matmul %126, %127, %cst_47 {dimension_numbers = #tpu.dot_dimension_numbers<[2], [1], [1], [2], [0, 0, 0, 1, 1, 2], [0], [0]>} : vector<2x32x32xbf16>, vector<2x32x8xbf16>, vector<2x32x8xf32> -> vector<2x32x8xf32>
    "tpu.trace_stop"() : () -> ()
    %129 = tpu.concatenate %77, %94, %111, %128 in 2 : vector<2x32x8xf32>, vector<2x32x8xf32>, vector<2x32x8xf32>, vector<2x32x8xf32> -> vector<2x32x32xf32>
    %130 = vector.shape_cast %129 : vector<2x32x32xf32> to vector<64x32xf32>
    %131 = arith.truncf %130 : vector<64x32xf32> to vector<64x32xbf16>
    %c0_48 = arith.constant 0 : index
    %c0_49 = arith.constant 0 : index
    %132 = vector.load %arg3[%c0_48, %c0_49] : memref<32x32xbf16, #tpu.memory_space<vmem>>, vector<32x32xbf16>
    %cst_50 = arith.constant dense<0.000000e+00> : vector<64x32xf32>
    %133 = tpu.matmul %131, %132, %cst_50 {dimension_numbers = #tpu.dot_dimension_numbers<[1], [0], [0], [1], [0, 0, 1, 1], [], []>} : vector<64x32xbf16>, vector<32x32xbf16>, vector<64x32xf32> -> vector<64x32xf32>
    %134 = vector.broadcast %7 : vector<1x32xf32> to vector<64x32xf32>
    %135 = arith.addf %133, %134 : vector<64x32xf32>
    %136 = arith.addf %11, %135 : vector<64x32xf32>
    %cst_51 = arith.constant dense<0.000000e+00> : vector<64xf32>
    %137 = vector.multi_reduction <add>, %136, %cst_51 [1] : vector<64x32xf32> to vector<64xf32>
    %138 = vector.shape_cast %137 : vector<64xf32> to vector<64x1xf32>
    %cst_52 = arith.constant 3.200000e+01 : f32
    %139 = vector.broadcast %cst_52 : f32 to vector<64x1xf32>
    %140 = arith.divf %138, %139 : vector<64x1xf32>
    %141 = vector.broadcast %140 : vector<64x1xf32> to vector<64x32xf32>
    %142 = arith.subf %136, %141 : vector<64x32xf32>
    %143 = arith.mulf %142, %142 : vector<64x32xf32>
    %cst_53 = arith.constant dense<0.000000e+00> : vector<64xf32>
    %144 = vector.multi_reduction <add>, %143, %cst_53 [1] : vector<64x32xf32> to vector<64xf32>
    %145 = vector.shape_cast %144 : vector<64xf32> to vector<64x1xf32>
    %cst_54 = arith.constant 3.200000e+01 : f32
    %146 = vector.broadcast %cst_54 : f32 to vector<64x1xf32>
    %147 = arith.divf %145, %146 : vector<64x1xf32>
    %cst_55 = arith.constant 9.99999974E-6 : f32
    %148 = vector.broadcast %cst_55 : f32 to vector<64x1xf32>
    %149 = arith.addf %147, %148 : vector<64x1xf32>
    %150 = math.rsqrt %149 : vector<64x1xf32>
    %151 = vector.broadcast %150 : vector<64x1xf32> to vector<64x32xf32>
    %152 = arith.mulf %142, %151 : vector<64x32xf32>
    %153 = vector.broadcast %2 : vector<1x32xf32> to vector<64x32xf32>
    %154 = arith.mulf %152, %153 : vector<64x32xf32>
    %155 = vector.broadcast %3 : vector<1x32xf32> to vector<64x32xf32>
    %156 = arith.addf %154, %155 : vector<64x32xf32>
    %157 = arith.truncf %156 : vector<64x32xf32> to vector<64x32xbf16>
    %c0_56 = arith.constant 0 : index
    %c0_57 = arith.constant 0 : index
    %158 = vector.load %arg4[%c0_56, %c0_57] : memref<32x128xbf16, #tpu.memory_space<vmem>>, vector<32x128xbf16>
    %cst_58 = arith.constant dense<0.000000e+00> : vector<64x128xf32>
    %159 = tpu.matmul %157, %158, %cst_58 {dimension_numbers = #tpu.dot_dimension_numbers<[1], [0], [0], [1], [0, 0, 1, 1], [], []>} : vector<64x32xbf16>, vector<32x128xbf16>, vector<64x128xf32> -> vector<64x128xf32>
    %160 = vector.broadcast %8 : vector<1x128xf32> to vector<64x128xf32>
    %161 = arith.addf %159, %160 : vector<64x128xf32>
    %cst_59 = arith.constant 5.000000e-01 : f32
    %162 = vector.broadcast %cst_59 : f32 to vector<64x128xf32>
    %163 = arith.mulf %162, %161 : vector<64x128xf32>
    %cst_60 = arith.constant 4.471500e-02 : f32
    %164 = vector.broadcast %cst_60 : f32 to vector<64x128xf32>
    %165 = arith.mulf %164, %161 : vector<64x128xf32>
    %166 = arith.mulf %165, %161 : vector<64x128xf32>
    %167 = arith.mulf %166, %161 : vector<64x128xf32>
    %168 = arith.addf %161, %167 : vector<64x128xf32>
    %cst_61 = arith.constant 0.797884583 : f32
    %169 = vector.broadcast %cst_61 : f32 to vector<64x128xf32>
    %170 = arith.mulf %169, %168 : vector<64x128xf32>
    %171 = math.tanh %170 : vector<64x128xf32>
    %cst_62 = arith.constant 1.000000e+00 : f32
    %172 = vector.broadcast %cst_62 : f32 to vector<64x128xf32>
    %173 = arith.addf %172, %171 : vector<64x128xf32>
    %174 = arith.mulf %163, %173 : vector<64x128xf32>
    %175 = arith.truncf %174 : vector<64x128xf32> to vector<64x128xbf16>
    %c0_63 = arith.constant 0 : index
    %c0_64 = arith.constant 0 : index
    %176 = vector.load %arg5[%c0_63, %c0_64] : memref<128x32xbf16, #tpu.memory_space<vmem>>, vector<128x32xbf16>
    %cst_65 = arith.constant dense<0.000000e+00> : vector<64x32xf32>
    %177 = tpu.matmul %175, %176, %cst_65 {dimension_numbers = #tpu.dot_dimension_numbers<[1], [0], [0], [1], [0, 0, 1, 1], [], []>} : vector<64x128xbf16>, vector<128x32xbf16>, vector<64x32xf32> -> vector<64x32xf32>
    %178 = vector.broadcast %9 : vector<1x32xf32> to vector<64x32xf32>
    %179 = arith.addf %177, %178 : vector<64x32xf32>
    %180 = arith.addf %136, %179 : vector<64x32xf32>
    %181 = vector.shape_cast %180 : vector<64x32xf32> to vector<2x32x32xf32>
    %c0_66 = arith.constant 0 : index
    %c0_67 = arith.constant 0 : index
    %c0_68 = arith.constant 0 : index
    %182 = vector.load %arg7[%c0_66, %c0_67, %c0_68] : memref<2x32x32xf32, #tpu.memory_space<vmem>>, vector<2x32x32xf32>
    tpu.vector_store %arg7[%c0_66, %c0_67, %c0_68], %181 {strides = array<i32>} : memref<2x32x32xf32, #tpu.memory_space<vmem>>, vector<2x32x32xf32>,
    return
  }
  func.func @transform_0(%arg0: i32) -> (i32, i32, i32) {
    %c0_i32 = arith.constant 0 : i32
    %c0_i32_0 = arith.constant 0 : i32
    %c0_i32_1 = arith.constant 0 : i32
    return %arg0, %c0_i32, %c0_i32_0 : i32, i32, i32
  }
  func.func @transform_1(%arg0: i32) -> (i32, i32) {
    %c0_i32 = arith.constant 0 : i32
    %c0_i32_0 = arith.constant 0 : i32
    %c0_i32_1 = arith.constant 0 : i32
    return %c0_i32, %c0_i32_0 : i32, i32
  }
  func.func @transform_2(%arg0: i32) -> (i32, i32) {
    %c0_i32 = arith.constant 0 : i32
    %c0_i32_0 = arith.constant 0 : i32
    %c0_i32_1 = arith.constant 0 : i32
    return %c0_i32, %c0_i32_0 : i32, i32
  }
  func.func @transform_3(%arg0: i32) -> (i32, i32) {
    %c0_i32 = arith.constant 0 : i32
    %c0_i32_0 = arith.constant 0 : i32
    %c0_i32_1 = arith.constant 0 : i32
    return %c0_i32, %c0_i32_0 : i32, i32
  }
  func.func @transform_4(%arg0: i32) -> (i32, i32) {
    %c0_i32 = arith.constant 0 : i32
    %c0_i32_0 = arith.constant 0 : i32
    %c0_i32_1 = arith.constant 0 : i32
    return %c0_i32, %c0_i32_0 : i32, i32
  }
  func.func @transform_5(%arg0: i32) -> (i32, i32) {
    %c0_i32 = arith.constant 0 : i32
    %c0_i32_0 = arith.constant 0 : i32
    %c0_i32_1 = arith.constant 0 : i32
    return %c0_i32, %c0_i32_0 : i32, i32
  }
  func.func @transform_6(%arg0: i32) -> (i32, i32, i32) {
    %c0_i32 = arith.constant 0 : i32
    %c0_i32_0 = arith.constant 0 : i32
    %c0_i32_1 = arith.constant 0 : i32
    return %arg0, %c0_i32, %c0_i32_0 : i32, i32, i32
  }
}

</mosaic_0001>

<bundles_post_ra>
// kernel: tpu_custom_call.1
= control target key start
LH: loop header
LB: loop body
LE: loop exit
PB: predicated region body
PF: predicated region fallthrough
CT: control target
= control target key end

     0   :  { %11 = vsyncpa [#allocation3], 0  ;;  %s4196_s0 = inlined_call_operand.hbm [shape: f32[4,32,32], index: 0, kind: input, shape index: {}]   ;;  %s4197_s1 = inlined_call_operand.vmem [shape: bf16[32,96], index: 1, kind: input, shape index: {}]   ;;  %s4198_s2 = inlined_call_operand.vmem [shape: bf16[32,32], index: 2, kind: input, shape index: {}]   ;;  %s4199_s3 = inlined_call_operand.vmem [shape: bf16[32,128], index: 3, kind: input, shape index: {}]   ;;  %s4200_s4 = inlined_call_operand.vmem [shape: bf16[128,32], index: 4, kind: input, shape index: {}]   ;;  %s4201_s5 = inlined_call_operand.vmem [shape: f32[8,128], index: 5, kind: input, shape index: {}]   ;;  %s4202_s6 = inlined_call_operand.hbm [shape: f32[4,32,32], index: 6, kind: output, shape index: {}]  }
   0x1   :  { %13 = vsyncpa [#allocation3 + $0x1], 0 }
   0x2   :  { %14 = vsyncpa [#allocation4], 0 }
   0x3   :  { %16 = vsyncpa [#allocation4 + $0x1], 0  ;;  %s3071_s21 = smov 0   ;;  %s3073_s22 = smov 0  }
   0x4   :  { %s3075_s23 = smov 0   ;;  %s3077_s24 = smov 0  }
   0x5 LB: > { %s3092_s25 = sadd.s32 4294967295, %s3020_s24   ;;  %s2470_s26 = sadd.s32 4294967294, %s3020_s24   ;;  %s3020_s24 = sphi %s3077_s24, %s4212_s24   ;;  %s3016_s23 = sphi %s3075_s23, %s4211_s23   ;;  %s3012_s22 = sphi %s3073_s22, %s4210_s22   ;;  %s3008_s21 = sphi %s3071_s21, %s4209_s21  }
   0x6   : > { %s3096_s27 = sadd.s32 1, %s3020_s24   ;;  %s29_s28 = sadd.s32 1, %s3016_s23 }
   0x7   : > { %s26_s29 = ssub.s32 %s3020_s24, %s3096_s27  ;;  %p36_p0 = scmp.ne.s32.totalorder %s3016_s23, %s3012_s22 }
   0x8   : > { %p27_p1 = scmp.eq.s32.totalorder %s26_s29, 0  ;;  %p37_p2 = scmp.eq.s32.totalorder %s3020_s24, 0 }
   0x9   : > { %p42_p3 = scmp.ne.s32.totalorder %s3012_s22, %s3008_s21  ;;  %p43_p4 = scmp.eq.s32.totalorder %s3092_s25, 0 }
   0xa   : > { %s3108_s30 = scalar_select %p27_p1, %s3016_s23, %s29_s28  }
   0xb   : > { %p3110_p5 = por %p37_p2, %p36_p0  ;;  %p3114_p6 = por %p43_p4, %p42_p3 }
   0xc   : > { %p171_p7 = scmp.eq.s32.totalorder %s3092_s25, 1  ;;  %p177_p8 = scmp.eq.s32.totalorder %s2470_s26, 1 }
   0xd   : > { %p2624_p10 = scmp.lt.s32.totalorder %s3020_s24, 2  ;;  %s212_s11 = sand.u32 1, %s3016_s23  }
   0xe   : > { %p3121_p11 = por %p171_p7, %p36_p0  ;;  %p3125_p12 = por %p177_p8, %p42_p3 }
   0xf   : > { %s2595_s12 = sshll.u32 %s3020_s24, 6  ;;  %s2473_s13 = sshll.u32 %s212_s11, 6 }
  0x10   : > { %s222_s16 = scalar_lea.hbm %s4196_s0, %s2595_s12  ;;  %s216_s18 = scalar_lea.vmem [#allocation2], %s2473_s13 }
  0x11   : > { %s223_s17 = sshll.u32 %s222_s16, 4  ;;  %s225_s19 = sshll.u32 %s216_s18, 4  ;;  %s224_s17 = int_to_ptr.hbm [resolvable:$true] %s223_s17  ;;  %s226_s19 = int_to_ptr.vmem [resolvable:$true] %s225_s19 }
  0x12   : > { %p3136_p13 = pnand %p2624_p10, %p3110_p5  ;;  %p2477_p0 = scmp.ge.s32.totalorder %s3020_s24, 1 }
  0x13   : > { %p233_p1 = scmp.lt.s32.totalorder %s3020_s24, 3  ;;  %s213_s26 = scalar_lea.sflag [#allocation3], %s212_s11 }
  0x14   : > { %s2924_s28 = sshra.s32 %s224_s17, 4  ;;  %p2928_p3 = pneg %p3136_p13  ;;  %s2925_s28 = int_to_ptr.hbm [resolvable:$true] %s2924_s28 }
  0x15   : > { %s2926_s29 = scalar_lea.hbm %s2925_s28, 64  ;;  %s2931_s7 = scalar_lea.hbm %s4196_s0, 128 }
  0x16   : > { %p2927_p2 = scmp.ne.s32.totalorder %s2925_s28, %s2926_s29  ;;  %p2932_p5 = scmp.lt.s32.totalorder %s2925_s28, %s4196_s0 }
  0x17   : > { %p2933_p8 = scmp.lt.s32.totalorder %s2931_s7, %s2926_s29 }
  0x18   : > { %p2929_p4 = pnand %p2928_p3, %p2927_p2 }
  0x19   : > { %p2934_p10 = por %p2933_p8, %p2932_p5 }
  0x1a   : > { %p2930_p7 = pneg %p2929_p4 }
  0x1c   : > { %p2935_p9 = pnand %p2934_p10, %p2930_p7 }
  0x1e   : > { %2938 = shalt.err (!%p2935_p9)
}
  0x1f   : > { %s3022_s11 = smov 128   ;;  %s3023_s16 = smov 8  }
  0x20   : > { %2619 = dma.hbm_to_vmem [thread:$0]  (!%p3136_p13), %s224_s17, 1024, %s226_s19, %s213_s26, %s3022_s11, %s3022_s11, %s3023_s16  }
  0x21   : > { %p234_p2 = pnand %p2477_p0, %p233_p1 }
  0x22   : > { %s3157_s18 = sand.u32 (!%p234_p2), 1, %s3012_s22  }
  0x23   : > { %237 = sbr.rel (%p234_p2) target bundleno = 2283 (0x8eb), region = 44  ;;  %s2478_s28 = sshll.u32 (!%p234_p2), %s3157_s18, 6 }
  0x24   : > { %s240_s29 = scalar_lea.sflag (!%p234_p2), [#allocation3], %s3157_s18  ;;  %s3163_s12 = scalar_lea.vmem (!%p234_p2), [#allocation2], %s2478_s28 }
  0x28   : > { %2999 = dma.done.wait (%p3114_p6), %s240_s29, 1024  }
  0x29   : > { %3001 = vsyncadd (%p3114_p6), %s240_s29, 4294966272  ;;  %vm303_vm0 = vcmask 261120   ;;  %v282_v0 = vld [vmem:[%s3163_s12 + $0x10] sm:$0xff]  ;;  %v280_v1 = vld [vmem:[%s3163_s12] sm:$0xff]  ;;  %v3024_v16 = vmov 32.0   ;;  %s3025_s26 = smov 96  }
  0x2a   : > { %v310_v2 = vsel %vm303_vm0, %v282_v0, 0.0  ;;  %v304_v3 = vsel %vm303_vm0, %v280_v1, 0.0  ;;  %v3174_v4 = vld [vmem:[%s3163_s12 + $0x20] sm:$0xff]  ;;  %v283_v6 = vld [vmem:[%s3163_s12 + $0x18] sm:$0xff]  ;;  %v281_v7 = vld [vmem:[%s3163_s12 + $0x8] sm:$0xff]  ;;  %2736 = vrcp.f32 %v3024_v16  ;;  %s3026_s14 = smov 64  }
  0x2b   : > { %311 = vadd.xlane.f32.xlu1 %v310_v2  ;;  %305 = vadd.xlane.f32.xlu0 %v304_v3  ;;  %v316_v5 = vsel %vm303_vm0, %v3174_v4, 0.0  ;;  %v3181_v8 = vld [vmem:[%s3163_s12 + $0x28] sm:$0xff]  ;;  %v313_v9 = vsel %vm303_vm0, %v283_v6, 0.0  ;;  %v307_v10 = vsel %vm303_vm0, %v281_v7, 0.0  ;;  %v287_v12 = vld [vmem:[%s3163_s12 + $0x38] sm:$0xff]  ;;  %v3189_v13 = vld [vmem:[%s3163_s12 + $0x30] sm:$0xff] }
  0x2c   : > { %317 = vadd.xlane.f32.xlu2 %v316_v5  ;;  %v319_v11 = vsel %vm303_vm0, %v3181_v8, 0.0  ;;  %v325_v14 = vsel %vm303_vm0, %v287_v12, 0.0  ;;  %v322_v15 = vsel %vm303_vm0, %v3189_v13, 0.0  ;;  %v2597_v21 = vld [vmem:[%s4197_s1 + $0x8] sm:$0xff]  ;;  %v2596_v23 = vld [vmem:[%s4197_s1] sm:$0xff]  ;;  %s3027_s16 = smov 120  }
  0x2d   : > { %547 = vmatpush.bf16.msra.mxu0 %v2597_v21  ;;  %v3231_v45 = vld [vmem:[%s4201_s5] ss:$0 sm:$0xff]  ;;  %s3028_s29 = smov 112   ;;  %s3029_s8 = smov 104  }
  0x2e   : > { %s3031_s17 = smov 8   ;;  %s3032_s19 = smov 16  }
  0x2f   : > { %s3033_s20 = smov 24  }
  0x30   : > { %v2737_v17 = vpop.eup %2736 }
  0x31   : > { %v329_v18 = vmul.f32 32.0, %v2737_v17  ;;  %vm333_vm1 = vweird.f32 %v2737_v17  ;;  %548 = vmatpush.bf16.msra.mxu0 %v2596_v23 }
  0x33   : > { %314 = vadd.xlane.f32.xlu1 %v313_v9  ;;  %308 = vadd.xlane.f32.xlu0 %v307_v10  ;;  %v330_v19 = vsub.f32 1.0, %v329_v18 }
  0x34   : > { %320 = vadd.xlane.f32.xlu2 %v319_v11 }
  0x35   : > { %v331_v20 = vmul.f32 %v2737_v17, %v330_v19 }
  0x37   : > { %v332_v22 = vadd.f32 %v2737_v17, %v331_v20 }
  0x39   : > { %v3200_v24 = vsel %vm333_vm1, %v2737_v17, %v332_v22 }
  0x3b   : > { %326 = vadd.xlane.f32.xlu0 %v325_v14 }
  0x3c   : > { %323 = vadd.xlane.f32.xlu2 %v322_v15 }
  0x9e   : > { %v312_v25 = vpop.xlane.xlu1 %311  ;;  %v306_v26 = vpop.xlane.xlu0 %305 }
  0x9f   : > { %v335_v27 = vmul.f32 %v3200_v24, %v306_v26  ;;  %v337_v35 = vmul.f32 %v3200_v24, %v312_v25  ;;  %v318_v46 = vpop.xlane.xlu2 %317 }
  0xa0   : > { %v339_v47 = vmul.f32 %v3200_v24, %v318_v46 }
  0xa1   : > { %v3203_v28 = vsub.f32 %v280_v1, %v335_v27  ;;  %v3219_v40 = vsub.f32 %v282_v0, %v337_v35 }
  0xa2   : > { %v3237_v48 = vsub.f32 %v3174_v4, %v339_v47 }
  0xa3   : > { %v351_v29 = vmul.f32 %v3203_v28, %v3203_v28  ;;  %v353_v43 = vmul.f32 %v3219_v40, %v3219_v40 }
  0xa4   : > { %v355_v50 = vmul.f32 %v3237_v48, %v3237_v48 }
  0xa5   : > { %v359_v30 = vsel %vm303_vm0, %v351_v29, 0.0  ;;  %v365_v44 = vsel %vm303_vm0, %v353_v43, 0.0 }
  0xa6   : > { %v315_v31 = vpop.xlane.xlu1 %314  ;;  %360 = vadd.xlane.f32.xlu0 %v359_v30  ;;  %v309_v32 = vpop.xlane.xlu0 %308  ;;  %v371_v54 = vsel %vm303_vm0, %v355_v50, 0.0 }
  0xa7   : > { %v338_v33 = vmul.f32 %v3200_v24, %v315_v31  ;;  %v336_v34 = vmul.f32 %v3200_v24, %v309_v32  ;;  %v321_v52 = vpop.xlane.xlu2 %320 }
  0xa8   : > { %v340_v53 = vmul.f32 %v3200_v24, %v321_v52 }
  0xa9   : > { %v3211_v36 = vsub.f32 %v283_v6, %v338_v33  ;;  %v3213_v37 = vsub.f32 %v281_v7, %v336_v34 }
  0xaa   : > { %v3247_v56 = vsub.f32 %v3181_v8, %v340_v53 }
  0xab   : > { %v354_v38 = vmul.f32 %v3211_v36, %v3211_v36  ;;  %v352_v39 = vmul.f32 %v3213_v37, %v3213_v37 }
  0xac   : > { %v356_v59 = vmul.f32 %v3247_v56, %v3247_v56 }
  0xad   : > { %v368_v41 = vsel %vm303_vm0, %v354_v38, 0.0  ;;  %v362_v42 = vsel %vm303_vm0, %v352_v39, 0.0 }
  0xae   : > { %369 = vadd.xlane.f32.xlu2 %v368_v41  ;;  %363 = vadd.xlane.f32.xlu1 %v362_v42  ;;  %v327_v49 = vpop.xlane.xlu0 %326  ;;  %v374_v62 = vsel %vm303_vm0, %v356_v59, 0.0 }
  0xaf   : > { %v342_v51 = vmul.f32 %v3200_v24, %v327_v49  ;;  %v324_v58 = vpop.xlane.xlu2 %323 }
  0xb0   : > { %v341_v61 = vmul.f32 %v3200_v24, %v324_v58 }
  0xb1   : > { %v3244_v55 = vsub.f32 %v287_v12, %v342_v51  ;;  %v3270_v12 = vld [vmem:[%s4201_s5 + $0x1] ss:$0 sm:$0xff] }
  0xb2   : > { %v3257_v63 = vsub.f32 %v3189_v13, %v341_v61 }
  0xb3   : > { %v358_v57 = vmul.f32 %v3244_v55, %v3244_v55 }
  0xb4   : > { %v357_v0 = vmul.f32 %v3257_v63, %v3257_v63 }
  0xb5   : > { %v380_v60 = vsel %vm303_vm0, %v358_v57, 0.0 }
  0xb6   : > { %366 = vadd.xlane.f32.xlu1 %v365_v44  ;;  %v377_v1 = vsel %vm303_vm0, %v357_v0, 0.0 }
  0xba   : > { %580 = vrot.lane.b32.xlu0 %v2597_v21, %s3025_s26 }
  0xc6   : > { %578 = vrot.lane.b32.xlu2 %v2596_v23, %s3025_s26 }
  0xcf   : > { %497 = vrot.lane.b32.xlu1 %v3231_v45, %s3025_s26 }
  0xe4   : > { %372 = vadd.xlane.f32.xlu0 %v371_v54 }
  0xec   : > { %381 = vadd.xlane.f32.xlu0 %v380_v60 }
  0xef   : > { %375 = vadd.xlane.f32.xlu2 %v374_v62 }
  0xf9   : > { %378 = vadd.xlane.f32.xlu1 %v377_v1 }
 0x100   : > { %585 = vrot.lane.b32.xlu0 %v3270_v12, %s3025_s26 }
 0x107   : > { %619 = vrot.lane.b32.xlu2 %v2597_v21, %s3026_s14 }
 0x112   : > { %617 = vrot.lane.b32.xlu1 %v2596_v23, %s3026_s14 }
 0x119   : > { %v361_v2 = vpop.xlane.xlu0 %360 }
 0x11a   : > { %v383_v3 = vmul.f32 %v361_v2, %v3200_v24 }
 0x11c   : > { %v391_v4 = vadd.f32 1e-05, %v383_v3 }
 0x11e   : > { %2738 = vrsqrt.f32 %v391_v4  ;;  %vm405_vm4 = vweird.f32 %v391_v4 }
 0x121   : > { %v370_v5 = vpop.xlane.xlu2 %369  ;;  %v364_v6 = vpop.xlane.xlu1 %363 }
 0x122   : > { %v384_v7 = vmul.f32 %v364_v6, %v3200_v24  ;;  %v386_v9 = vmul.f32 %v370_v5, %v3200_v24 }
 0x124   : > { %v2739_v8 = vpop.eup %2738  ;;  %v392_v10 = vadd.f32 1e-05, %v384_v7  ;;  %v394_v13 = vadd.f32 1e-05, %v386_v9 }
 0x125   : > { %v400_v11 = vmul.f32 %v2739_v8, %v391_v4  ;;  %vm406_vm5 = vweird.f32 %v2739_v8 }
 0x126   : > { %2740 = vrsqrt.f32 %v392_v10  ;;  %vm415_vm2 = vweird.f32 %v392_v10  ;;  %vm407_vm7 = vmor %vm405_vm4, %vm406_vm5  ;;  %vm435_vm12 = vweird.f32 %v394_v13 }
 0x127   : > { %v401_v14 = vmul.f32 %v2739_v8, %v400_v11  ;;  %2742 = vrsqrt.f32 %v394_v13 }
 0x129   : > { %v367_v15 = vpop.xlane.xlu1 %366  ;;  %v402_v20 = vmul.f32 0.5, %v401_v14  ;;  %v579_v23 = vpop.permute.xlu2 %578 }
 0x12a   : > { %v385_v16 = vmul.f32 %v367_v15, %v3200_v24 }
 0x12b   : > { %v403_v25 = vsub.f32 1.5, %v402_v20 }
 0x12c   : > { %v393_v17 = vadd.f32 1e-05, %v385_v16  ;;  %v581_v18 = vpop.permute.xlu0 %580  ;;  %v2741_v19 = vpop.eup %2740 }
 0x12d   : > { %594 = vmatpush.bf16.msra.mxu1 %v581_v18  ;;  %v410_v21 = vmul.f32 %v2741_v19, %v392_v10  ;;  %v2743_v26 = vpop.eup %2742  ;;  %vm416_vm3 = vweird.f32 %v2741_v19  ;;  %v404_v31 = vmul.f32 %v2739_v8, %v403_v25 }
 0x12e   : > { %2744 = vrsqrt.f32 %v393_v17  ;;  %v430_v32 = vmul.f32 %v2743_v26, %v394_v13  ;;  %vm417_vm6 = vmor %vm415_vm2, %vm416_vm3  ;;  %vm425_vm9 = vweird.f32 %v393_v17  ;;  %vm436_vm11 = vweird.f32 %v2743_v26 }
 0x12f   : > { %v411_v22 = vmul.f32 %v2741_v19, %v410_v21  ;;  %v408_v38 = vsel %vm407_vm7, %v2739_v8, %v404_v31  ;;  %vm437_vm13 = vmor %vm435_vm12, %vm436_vm11  ;;  %vm699_vm11 = vcmask 64512  }
 0x130   : > { %v431_v39 = vmul.f32 %v2743_v26, %v430_v32  ;;  %v479_v44 = vmul.f32 %v408_v38, %v3203_v28 }
 0x131   : > { %595 = vmatpush.bf16.msra.mxu1 %v579_v23  ;;  %v412_v27 = vmul.f32 0.5, %v411_v22 }
 0x132   : > { %v432_v46 = vmul.f32 0.5, %v431_v39  ;;  %v488_v49 = vmul.f32 %v3231_v45, %v479_v44 }
 0x133   : > { %v413_v30 = vsub.f32 1.5, %v412_v27 }
 0x134   : > { %v2745_v29 = vpop.eup %2744  ;;  %v433_v51 = vsub.f32 1.5, %v432_v46 }
 0x135   : > { %v420_v33 = vmul.f32 %v2745_v29, %v393_v17  ;;  %v414_v34 = vmul.f32 %v2741_v19, %v413_v30  ;;  %vm426_vm8 = vweird.f32 %v2745_v29 }
 0x136   : > { %vm427_vm10 = vmor %vm425_vm9, %vm426_vm8  ;;  %v434_v28 = vmul.f32 %v2743_v26, %v433_v51 }
 0x137   : > { %v421_v35 = vmul.f32 %v2745_v29, %v420_v33  ;;  %v418_v41 = vsel %vm417_vm6, %v2741_v19, %v414_v34 }
 0x138   : > { %v480_v43 = vmul.f32 %v418_v41, %v3213_v37  ;;  %v438_v60 = vsel %vm437_vm13, %v2743_v26, %v434_v28 }
 0x139   : > { %v422_v42 = vmul.f32 0.5, %v421_v35  ;;  %v482_v61 = vmul.f32 %v438_v60, %v3211_v36 }
 0x13a   : > { %v489_v50 = vmul.f32 %v3231_v45, %v480_v43 }
 0x13b   : > { %v423_v47 = vsub.f32 1.5, %v422_v42  ;;  %v491_v0 = vmul.f32 %v3231_v45, %v482_v61 }
 0x13d   : > { %v424_v52 = vmul.f32 %v2745_v29, %v423_v47 }
 0x13f   : > { %v428_v58 = vsel %vm427_vm10, %v2745_v29, %v424_v52 }
 0x140   : > { %v481_v59 = vmul.f32 %v428_v58, %v3219_v40 }
 0x141   : > { %v3279_v53 = vpop.permute.xlu1 %497 }
 0x142   : > { %v500_v54 = vadd.f32 %v3279_v53, %v488_v49  ;;  %v501_v57 = vadd.f32 %v3279_v53, %v489_v50  ;;  %v490_v62 = vmul.f32 %v3231_v45, %v481_v59  ;;  %v503_v2 = vadd.f32 %v3279_v53, %v491_v0 }
 0x144   : > { %v3283_v37 = vpack.c.bf16 %v501_v57, %v500_v54  ;;  %v502_v1 = vadd.f32 %v3279_v53, %v490_v62 }
 0x146   : > { %2488 = vmatmul.msk.bf16.vlgmr.msra.gmra.mxu0 %vm303_vm0, %v3283_v37  ;;  %2492 = vmatmul.msk.bf16.vlgmr.msra.gmra.mxu1 %vm303_vm0, %v3283_v37  ;;  %v3295_v3 = vpack.c.bf16 %v503_v2, %v502_v1 }
 0x156   : > { %2489 = vmatmul.msk.bf16.gmra.mxu0 %vm303_vm0, %v3295_v3  ;;  %2493 = vmatmul.msk.bf16.gmra.mxu1 %vm303_vm0, %v3295_v3 }
 0x157   : > { %v373_v40 = vpop.xlane.xlu0 %372 }
 0x158   : > { %v387_v4 = vmul.f32 %v373_v40, %v3200_v24 }
 0x15a   : > { %v395_v36 = vadd.f32 1e-05, %v387_v4 }
 0x15c   : > { %2746 = vrsqrt.f32 %v395_v36  ;;  %vm445_vm15 = vweird.f32 %v395_v36 }
 0x15f   : > { %v382_v5 = vpop.xlane.xlu0 %381 }
 0x160   : > { %v390_v6 = vmul.f32 %v382_v5, %v3200_v24 }
 0x162   : > { %v2747_v7 = vpop.eup %2746  ;;  %v398_v8 = vadd.f32 1e-05, %v390_v6  ;;  %v376_v9 = vpop.xlane.xlu2 %375 }
 0x163   : > { %v440_v10 = vmul.f32 %v2747_v7, %v395_v36  ;;  %v388_v11 = vmul.f32 %v376_v9, %v3200_v24  ;;  %vm446_vm14 = vweird.f32 %v2747_v7 }
 0x164   : > { %2748 = vrsqrt.f32 %v398_v8  ;;  %vm447_vm1 = vmor %vm445_vm15, %vm446_vm14  ;;  %vm475_vm5 = vweird.f32 %v398_v8 }
 0x165   : > { %v441_v13 = vmul.f32 %v2747_v7, %v440_v10  ;;  %v396_v14 = vadd.f32 1e-05, %v388_v11 }
 0x167   : > { %v442_v15 = vmul.f32 0.5, %v441_v13  ;;  %2750 = vrsqrt.f32 %v396_v14  ;;  %vm455_vm3 = vweird.f32 %v396_v14 }
 0x169   : > { %v443_v16 = vsub.f32 1.5, %v442_v15 }
 0x16a   : > { %v620_v17 = vpop.permute.xlu2 %619  ;;  %v2749_v18 = vpop.eup %2748 }
 0x16b   : > { %632 = vmatpush.bf16.msra.mxu2 %v620_v17  ;;  %v444_v22 = vmul.f32 %v2747_v7, %v443_v16  ;;  %v470_v23 = vmul.f32 %v2749_v18, %v398_v8  ;;  %vm476_vm6 = vweird.f32 %v2749_v18 }
 0x16c   : > { %v379_v19 = vpop.xlane.xlu1 %378  ;;  %vm477_vm9 = vmor %vm475_vm5, %vm476_vm6 }
 0x16d   : > { %v2751_v20 = vpop.eup %2750  ;;  %v389_v21 = vmul.f32 %v379_v19, %v3200_v24  ;;  %v448_v29 = vsel %vm447_vm1, %v2747_v7, %v444_v22  ;;  %v471_v30 = vmul.f32 %v2749_v18, %v470_v23  ;;  %vm1844_vm1 = vcmask 130048  }
 0x16e   : > { %v450_v25 = vmul.f32 %v2751_v20, %v396_v14  ;;  %vm456_vm2 = vweird.f32 %v2751_v20  ;;  %v483_v33 = vmul.f32 %v448_v29, %v3237_v48 }
 0x16f   : > { %v397_v26 = vadd.f32 1e-05, %v389_v21  ;;  %v472_v34 = vmul.f32 0.5, %v471_v30  ;;  %vm457_vm4 = vmor %vm455_vm3, %vm456_vm2  ;;  %vm1853_vm2 = vcmask 195584  }
 0x170   : > { %v451_v27 = vmul.f32 %v2751_v20, %v450_v25  ;;  %v492_v43 = vmul.f32 %v3231_v45, %v483_v33 }
 0x171   : > { %2752 = vrsqrt.f32 %v397_v26  ;;  %v473_v44 = vsub.f32 1.5, %v472_v34  ;;  %vm465_vm7 = vweird.f32 %v397_v26 }
 0x172   : > { %v452_v31 = vmul.f32 0.5, %v451_v27  ;;  %v504_v48 = vadd.f32 %v3279_v53, %v492_v43 }
 0x173   : > { %v474_v51 = vmul.f32 %v2749_v18, %v473_v44 }
 0x174   : > { %v453_v32 = vsub.f32 1.5, %v452_v31 }
 0x175   : > { %v478_v57 = vsel %vm477_vm9, %v2749_v18, %v474_v51 }
 0x176   : > { %v454_v35 = vmul.f32 %v2751_v20, %v453_v32  ;;  %v486_v60 = vmul.f32 %v478_v57, %v3244_v55 }
 0x177   : > { %v2753_v38 = vpop.eup %2752 }
 0x178   : > { %v458_v39 = vsel %vm457_vm4, %v2751_v20, %v454_v35  ;;  %v460_v41 = vmul.f32 %v2753_v38, %v397_v26  ;;  %vm466_vm8 = vweird.f32 %v2753_v38  ;;  %v495_v62 = vmul.f32 %v3231_v45, %v486_v60 }
 0x179   : > { %v484_v42 = vmul.f32 %v458_v39, %v3247_v56  ;;  %vm467_vm10 = vmor %vm465_vm7, %vm466_vm8 }
 0x17a   : > { %v461_v46 = vmul.f32 %v2753_v38, %v460_v41  ;;  %v507_v1 = vadd.f32 %v3279_v53, %v495_v62 }
 0x17b   : > { %v493_v47 = vmul.f32 %v3231_v45, %v484_v42 }
 0x17c   : > { %v462_v49 = vmul.f32 0.5, %v461_v46 }
 0x17d   : > { %v505_v50 = vadd.f32 %v3279_v53, %v493_v47 }
 0x17e   : > { %v463_v52 = vsub.f32 1.5, %v462_v49 }
 0x17f   : > { %v510_v56 = vpack.c.bf16 %v505_v50, %v504_v48 }
 0x180   : > { %v464_v54 = vmul.f32 %v2753_v38, %v463_v52 }
 0x181   : > { %2490 = vmatmul.msk.bf16.gmra.mxu0 %vm303_vm0, %v510_v56  ;;  %2494 = vmatmul.msk.bf16.gmra.mxu1 %vm303_vm0, %v510_v56 }
 0x182   : > { %v468_v28 = vsel %vm467_vm10, %v2753_v38, %v464_v54 }
 0x183   : > { %v485_v58 = vmul.f32 %v468_v28, %v3257_v63 }
 0x184   : > { %v618_v59 = vpop.permute.xlu1 %617 }
 0x185   : > { %633 = vmatpush.bf16.msra.mxu2 %v618_v59  ;;  %v494_v61 = vmul.f32 %v3231_v45, %v485_v58 }
 0x187   : > { %v506_v0 = vadd.f32 %v3279_v53, %v494_v61 }
 0x188   : > { %2496 = vmatmul.msk.bf16.vlgmr.msra.gmra.mxu2 %vm303_vm0, %v3283_v37  ;;  %v3327_v37 = vpop.permute.xlu0 %585 }
 0x189   : > { %v511_v2 = vpack.c.bf16 %v507_v1, %v506_v0 }
 0x191   : > { %2491 = vmatmul.msk.bf16.gmra.mxu0 %vm303_vm0, %v511_v2  ;;  %2495 = vmatmul.msk.bf16.gmra.mxu1 %vm303_vm0, %v511_v2 }
 0x198   : > { %2497 = vmatmul.msk.bf16.gmra.mxu2 %vm303_vm0, %v3295_v3 }
 0x1a8   : > { %2498 = vmatmul.msk.bf16.gmra.mxu2 %vm303_vm0, %v510_v56 }
 0x1b8   : > { %2499 = vmatmul.msk.bf16.gmra.mxu2 %vm303_vm0, %v511_v2 }
 0x1c3   : > { %v550_v55 = vpop.f32.mrf.mxu0  ;;  %v597_v63 = vpop.f32.mrf.mxu1 }
 0x1c4   : > { %v551_v45 = vadd.f32 %v3270_v12, %v550_v55  ;;  %v598_v53 = vadd.f32 %v597_v63, %v3327_v37 }
 0x1c6   : > { %v570_v40 = vmul.f32 0.35355338, %v551_v45  ;;  %v663_v5 = vpack.c.bf16 %v598_v53, %v598_v53 }
 0x1c8   : > { %v655_v7 = vpack.c.bf16 %v570_v40, %v570_v40  ;;  %v693_v10 = vunpack.c.l.b16 %v663_v5 }
 0x1ca   : > { %v683_v14 = vunpack.c.l.b16 %v655_v7 }
 0x1cb   : > { %v552_v4 = vpop.f32.mrf.mxu0  ;;  %v599_v36 = vpop.f32.mrf.mxu1 }
 0x1cc   : > { %v553_v6 = vadd.f32 %v3270_v12, %v552_v4  ;;  %v600_v3 = vadd.f32 %v599_v36, %v3327_v37 }
 0x1ce   : > { %v571_v8 = vmul.f32 0.35355338, %v553_v6  ;;  %v664_v9 = vpack.c.bf16 %v600_v3, %v600_v3 }
 0x1d0   : > { %v656_v11 = vpack.c.bf16 %v571_v8, %v571_v8  ;;  %v694_v13 = vunpack.c.l.b16 %v664_v9 }
 0x1d2   : > { %v684_v15 = vunpack.c.l.b16 %v656_v11  ;;  %v3333_v16 = vpack.c.b16 %v694_v13, %v693_v10 }
 0x1d3   : > { %v555_v17 = vpop.f32.mrf.mxu0  ;;  %v602_v18 = vpop.f32.mrf.mxu1 }
 0x1d4   : > { %v3335_v19 = vpack.c.b16 %v684_v15, %v683_v14  ;;  %976 = vrot.lane.b32.xlu0 %v3333_v16, %s3027_s16  ;;  %v603_v20 = vadd.f32 %v602_v18, %v3327_v37  ;;  %v556_v23 = vadd.f32 %v3270_v12, %v555_v17  ;;  %v707_v44 = vsel %vm699_vm11, %v3333_v16, 0 }
 0x1d6   : > { %972 = vrot.lane.b32.xlu1 %v3335_v19, %s3027_s16  ;;  %v665_v25 = vpack.c.bf16 %v603_v20, %v603_v20  ;;  %v572_v31 = vmul.f32 0.35355338, %v556_v23 }
 0x1d8   : > { %v695_v32 = vunpack.c.l.b16 %v665_v25  ;;  %v657_v38 = vpack.c.bf16 %v572_v31, %v572_v31 }
 0x1da   : > { %v685_v42 = vunpack.c.l.b16 %v657_v38 }
 0x1db   : > { %v557_v21 = vpop.f32.mrf.mxu0  ;;  %v604_v22 = vpop.f32.mrf.mxu1 }
 0x1dc   : > { %v558_v26 = vadd.f32 %v3270_v12, %v557_v21  ;;  %v605_v27 = vadd.f32 %v604_v22, %v3327_v37  ;;  %1232 = vrot.lane.b32.xlu0 %v3333_v16, %s3028_s29 }
 0x1de   : > { %v573_v29 = vmul.f32 0.35355338, %v558_v26  ;;  %v666_v30 = vpack.c.bf16 %v605_v27, %v605_v27 }
 0x1e0   : > { %v696_v33 = vunpack.c.l.b16 %v666_v30  ;;  %v658_v34 = vpack.c.bf16 %v573_v29, %v573_v29 }
 0x1e2   : > { %v698_v35 = vpack.c.b16 %v696_v33, %v695_v32  ;;  %v686_v41 = vunpack.c.l.b16 %v658_v34 }
 0x1e4   : > { %978 = vrot.lane.b32.xlu2 %v698_v35, %s3027_s16  ;;  %1490 = vrot.lane.b32.xlu0 %v698_v35, %s3029_s8  ;;  %v710_v39 = vsel %vm699_vm11, %v698_v35, 0  ;;  %v688_v43 = vpack.c.b16 %v686_v41, %v685_v42 }
 0x1e5   : > { %1234 = vrot.lane.b32.xlu1 %v698_v35, %s3028_s29  ;;  %718 = vmatpush.bf16.xpose.msra.mxu3 %v710_v39 }
 0x1ec   : > { %1486 = vrot.lane.b32.xlu0 %v688_v43, %s3029_s8  ;;  %974 = vrot.lane.b32.xlu2 %v688_v43, %s3027_s16 }
 0x1ed   : > { %719 = vmatpush.bf16.xpose.msra.mxu3 %v707_v44 }
 0x1f4   : > { %2500 = vmatmul.msk.bf16.vlgmr.msra.gmra.mxu3 %vm699_vm11, %v3335_v19 }
 0x1fe   : > { %v560_v46 = vpop.f32.mrf.mxu0  ;;  %v607_v47 = vpop.f32.mrf.mxu1 }
 0x1ff   : > { %v561_v49 = vadd.f32 %v3270_v12, %v560_v46  ;;  %v608_v48 = vadd.f32 %v607_v47, %v3327_v37 }
 0x201   : > { %v574_v50 = vmul.f32 0.35355338, %v561_v49  ;;  %v667_v56 = vpack.c.bf16 %v608_v48, %v608_v48 }
 0x203   : > { %v659_v28 = vpack.c.bf16 %v574_v50, %v574_v50  ;;  %v745_v60 = vunpack.c.l.b16 %v667_v56 }
 0x204   : > { %2501 = vmatmul.msk.bf16.gmra.mxu3 %vm699_vm11, %v688_v43 }
 0x205   : > { %v735_v0 = vunpack.c.l.b16 %v659_v28 }
 0x206   : > { %v562_v51 = vpop.f32.mrf.mxu0  ;;  %v609_v52 = vpop.f32.mrf.mxu1 }
 0x207   : > { %v563_v54 = vadd.f32 %v3270_v12, %v562_v51  ;;  %v610_v57 = vadd.f32 %v609_v52, %v3327_v37 }
 0x209   : > { %v575_v58 = vmul.f32 0.35355338, %v563_v54  ;;  %v668_v59 = vpack.c.bf16 %v610_v57, %v610_v57 }
 0x20b   : > { %v660_v61 = vpack.c.bf16 %v575_v58, %v575_v58  ;;  %v746_v62 = vunpack.c.l.b16 %v668_v59  ;;  %v635_v33 = vpop.f32.mrf.mxu2 }
 0x20d   : > { %v736_v1 = vunpack.c.l.b16 %v660_v61  ;;  %v749_v2 = vpack.c.b16 %v746_v62, %v745_v60 }
 0x20e   : > { %v612_v55 = vpop.f32.mrf.mxu1  ;;  %v565_v45 = vpop.f32.mrf.mxu0 }
 0x20f   : > { %v739_v63 = vpack.c.b16 %v736_v1, %v735_v0  ;;  %1015 = vrot.lane.b32.xlu2 %v749_v2, %s3027_s16  ;;  %v613_v53 = vadd.f32 %v612_v55, %v3327_v37  ;;  %v566_v10 = vadd.f32 %v3270_v12, %v565_v45  ;;  %v758_v17 = vsel %vm699_vm11, %v749_v2, 0 }
 0x211   : > { %1267 = vrot.lane.b32.xlu0 %v739_v63, %s3028_s29  ;;  %1011 = vrot.lane.b32.xlu1 %v739_v63, %s3027_s16  ;;  %v669_v4 = vpack.c.bf16 %v613_v53, %v613_v53  ;;  %v576_v13 = vmul.f32 0.35355338, %v566_v10 }
 0x213   : > { %v747_v3 = vunpack.c.l.b16 %v669_v4  ;;  %v661_v15 = vpack.c.bf16 %v576_v13, %v576_v13  ;;  %v637_v35 = vpop.f32.mrf.mxu2 }
 0x216   : > { %v614_v40 = vpop.f32.mrf.mxu1  ;;  %v567_v6 = vpop.f32.mrf.mxu0 }
 0x217   : > { %v615_v36 = vadd.f32 %v614_v40, %v3327_v37  ;;  %1228 = vrot.lane.b32.xlu2 %v3335_v19, %s3028_s29  ;;  %v568_v8 = vadd.f32 %v3270_v12, %v567_v6 }
 0x219   : > { %v670_v5 = vpack.c.bf16 %v615_v36, %v615_v36  ;;  %1230 = vrot.lane.b32.xlu1 %v688_v43, %s3028_s29  ;;  %v577_v11 = vmul.f32 0.35355338, %v568_v8 }
 0x21b   : > { %v748_v7 = vunpack.c.l.b16 %v670_v5  ;;  %v662_v14 = vpack.c.bf16 %v577_v11, %v577_v11  ;;  %v640_v41 = vpop.f32.mrf.mxu2 }
 0x21d   : > { %v750_v9 = vpack.c.b16 %v748_v7, %v747_v3  ;;  %v738_v18 = vunpack.c.l.b16 %v662_v14 }
 0x21f   : > { %1017 = vrot.lane.b32.xlu0 %v750_v9, %s3027_s16  ;;  %1488 = vrot.lane.b32.xlu2 %v3333_v16, %s3029_s8  ;;  %v761_v37 = vsel %vm699_vm11, %v750_v9, 0  ;;  %v737_v16 = vunpack.c.l.b16 %v661_v15 }
 0x220   : > { %769 = vmatpush.bf16.xpose.msrb.mxu3 %v761_v37 }
 0x221   : > { %1271 = vrot.lane.b32.xlu1 %v749_v2, %s3028_s29  ;;  %v740_v20 = vpack.c.b16 %v738_v18, %v737_v16 }
 0x223   : > { %v642_v46 = vpop.f32.mrf.mxu2 }
 0x227   : > { %1523 = vrot.lane.b32.xlu0 %v739_v63, %s3029_s8  ;;  %1273 = vrot.lane.b32.xlu2 %v750_v9, %s3028_s29 }
 0x228   : > { %770 = vmatpush.bf16.xpose.msrb.mxu3 %v758_v17 }
 0x229   : > { %1484 = vrot.lane.b32.xlu1 %v3335_v19, %s3029_s8 }
 0x22b   : > { %v645_v48 = vpop.f32.mrf.mxu2 }
 0x22f   : > { %1013 = vrot.lane.b32.xlu0 %v740_v20, %s3027_s16  ;;  %1527 = vrot.lane.b32.xlu2 %v749_v2, %s3029_s8 }
 0x230   : > { %2502 = vmatmul.msk.bf16.vlgmr.msrb.gmra.mxu3 %vm699_vm11, %v739_v63 }
 0x231   : > { %1529 = vrot.lane.b32.xlu1 %v750_v9, %s3029_s8 }
 0x233   : > { %v647_v56 = vpop.f32.mrf.mxu2 }
 0x237   : > { %1269 = vrot.lane.b32.xlu2 %v740_v20, %s3028_s29 }
 0x239   : > { %623 = vrot.lane.b32.xlu1 %v3270_v12, %s3026_s14 }
 0x23b   : > { %v650_v59 = vpop.f32.mrf.mxu2 }
 0x23e   : > { %v979_v21 = vpop.permute.xlu2 %978 }
 0x23f   : > { %v990_v22 = vsel %vm699_vm11, %v979_v21, 0 }
 0x240   : > { %2503 = vmatmul.msk.bf16.gmra.mxu3 %vm699_vm11, %v740_v20  ;;  %998 = vmatpush.bf16.xpose.msrb.mxu2 %v990_v22 }
 0x241   : > { %1525 = vrot.lane.b32.xlu1 %v740_v20, %s3029_s8 }
 0x243   : > { %v652_v45 = vpop.f32.mrf.mxu2 }
 0x246   : > { %v977_v19 = vpop.permute.xlu0 %976  ;;  %v975_v12 = vpop.permute.xlu2 %974 }
 0x247   : > { %v987_v23 = vsel %vm699_vm11, %v977_v19, 0 }
 0x248   : > { %999 = vmatpush.bf16.xpose.msrb.mxu2 %v987_v23  ;;  %v973_v25 = vpop.permute.xlu1 %972 }
 0x24e   : > { %v1233_v26 = vpop.permute.xlu0 %1232 }
 0x24f   : > { %2508 = vmatmul.msk.bf16.vlgmr.msrb.gmra.mxu2 %vm699_vm11, %v973_v25  ;;  %v1243_v31 = vsel %vm699_vm11, %v1233_v26, 0 }
 0x256   : > { %v1491_v30 = vpop.permute.xlu0 %1490 }
 0x257   : > { %v1235_v27 = vpop.permute.xlu1 %1234  ;;  %v1502_v32 = vsel %vm699_vm11, %v1491_v30, 0 }
 0x258   : > { %v1246_v29 = vsel %vm699_vm11, %v1235_v27, 0 }
 0x259   : > { %1254 = vmatpush.bf16.xpose.msra.mxu2 %v1246_v29 }
 0x25e   : > { %v1487_v43 = vpop.permute.xlu0 %1486 }
 0x25f   : > { %2509 = vmatmul.msk.bf16.gmra.mxu2 %vm699_vm11, %v975_v12 }
 0x261   : > { %1255 = vmatpush.bf16.xpose.msra.mxu2 %v1243_v31 }
 0x269   : > { %1510 = vmatpush.bf16.xpose.msrb.mxu2 %v1502_v32  ;;  %v1016_v34 = vpop.permute.xlu2 %1015 }
 0x26a   : > { %v1026_v57 = vsel %vm699_vm11, %v1016_v34, 0 }
 0x271   : > { %v1229_v38 = vpop.permute.xlu2 %1228 }
 0x272   : > { %2516 = vmatmul.msk.bf16.vlgmr.msra.gmra.mxu2 %vm699_vm11, %v1229_v38 }
 0x277   : > { %v3412_v2 = vpop.f32.mrf.mxu3 }
 0x279   : > { %v1489_v39 = vpop.permute.xlu2 %1488 }
 0x27a   : > { %v1499_v42 = vsel %vm699_vm11, %v1489_v39, 0 }
 0x27b   : > { %1511 = vmatpush.bf16.xpose.msrb.mxu2 %v1499_v42 }
 0x27f   : > { %v723_v26 = vpop.f32.mrf.mxu3 }
 0x281   : > { %v1274_v54 = vpop.permute.xlu2 %1273 }
 0x282   : > { %v1285_v28 = vsel %vm699_vm11, %v1274_v54, 0 }
 0x283   : > { %v1012_v44 = vpop.permute.xlu1 %1011  ;;  %v3400_v47 = vpop.permute.xlu0 %1267 }
 0x287   : > { %v726_v31 = vpop.f32.mrf.mxu3 }
 0x289   : > { %v1528_v1 = vpop.permute.xlu2 %1527 }
 0x28a   : > { %v1538_v55 = vsel %vm699_vm11, %v1528_v1, 0 }
 0x28b   : > { %v1231_v49 = vpop.permute.xlu1 %1230 }
 0x28c   : > { %2517 = vmatmul.msk.bf16.gmra.mxu2 %vm699_vm11, %v1231_v49 }
 0x28f   : > { %v728_v32 = vpop.f32.mrf.mxu3 }
 0x291   : > { %v1018_v50 = vpop.permute.xlu0 %1017  ;;  %v1270_v34 = vpop.permute.xlu2 %1269 }
 0x292   : > { %v1029_v51 = vsel %vm699_vm11, %v1018_v50, 0 }
 0x293   : > { %v1272_v52 = vpop.permute.xlu1 %1271  ;;  %1037 = vmatpush.bf16.xpose.msra.mxu3 %v1029_v51 }
 0x294   : > { %v1282_v60 = vsel %vm699_vm11, %v1272_v52, 0 }
 0x299   : > { %v3410_v0 = vpop.permute.xlu0 %1523 }
 0x29b   : > { %v1485_v58 = vpop.permute.xlu1 %1484  ;;  %1038 = vmatpush.bf16.xpose.msra.mxu3 %v1026_v57 }
 0x29c   : > { %2524 = vmatmul.msk.bf16.vlgmr.msrb.gmra.mxu2 %vm699_vm11, %v1485_v58 }
 0x2a1   : > { %v1014_v16 = vpop.permute.xlu0 %1013 }
 0x2a2   : > { %2510 = vmatmul.msk.bf16.vlgmr.msra.gmra.mxu3 %vm699_vm11, %v1012_v44  ;;  %v3030_v44 = vmov -1e+30  }
 0x2a3   : > { %1293 = vmatpush.bf16.xpose.msrb.mxu3 %v1285_v28  ;;  %v1530_v61 = vpop.permute.xlu1 %1529 }
 0x2a4   : > { %v1541_v62 = vsel %vm699_vm11, %v1530_v61, 0 }
 0x2ab   : > { %1294 = vmatpush.bf16.xpose.msrb.mxu3 %v1282_v60  ;;  %v624_v63 = vpop.permute.xlu1 %623 }
 0x2ac   : > { %2525 = vmatmul.msk.bf16.gmra.mxu2 %vm699_vm11, %v1487_v43  ;;  %v641_v53 = vadd.f32 %v640_v41, %v624_v63  ;;  %v643_v40 = vadd.f32 %v642_v46, %v624_v63  ;;  %v636_v4 = vadd.f32 %v635_v33, %v624_v63  ;;  %v638_v36 = vadd.f32 %v637_v35, %v624_v63 }
 0x2ad   : > { %v651_v5 = vadd.f32 %v650_v59, %v624_v63  ;;  %v653_v6 = vadd.f32 %v652_v45, %v624_v63  ;;  %v646_v3 = vadd.f32 %v645_v48, %v624_v63  ;;  %v648_v7 = vadd.f32 %v647_v56, %v624_v63 }
 0x2ae   : > { %v673_v8 = vpack.c.bf16 %v641_v53, %v641_v53  ;;  %v674_v9 = vpack.c.bf16 %v643_v40, %v643_v40  ;;  %v671_v10 = vpack.c.bf16 %v636_v4, %v636_v4  ;;  %v672_v37 = vpack.c.bf16 %v638_v36, %v638_v36 }
 0x2af   : > { %v677_v11 = vpack.c.bf16 %v651_v5, %v651_v5  ;;  %v678_v13 = vpack.c.bf16 %v653_v6, %v653_v6  ;;  %v675_v22 = vpack.c.bf16 %v646_v3, %v646_v3  ;;  %v676_v19 = vpack.c.bf16 %v648_v7, %v648_v7 }
 0x2b0   : > { %v894_v14 = vunpack.c.l.b16 %v673_v8  ;;  %v895_v15 = vunpack.c.l.b16 %v674_v9  ;;  %v892_v17 = vunpack.c.l.b16 %v671_v10  ;;  %v893_v18 = vunpack.c.l.b16 %v672_v37 }
 0x2b1   : > { %v941_v23 = vunpack.c.l.b16 %v677_v11  ;;  %v942_v25 = vunpack.c.l.b16 %v678_v13  ;;  %v939_v27 = vunpack.c.l.b16 %v675_v22  ;;  %v940_v29 = vunpack.c.l.b16 %v676_v19 }
 0x2b2   : > { %2511 = vmatmul.msk.bf16.gmra.mxu3 %vm699_vm11, %v1014_v16  ;;  %v3417_v20 = vpack.c.b16 %v895_v15, %v894_v14  ;;  %v3419_v21 = vpack.c.b16 %v893_v18, %v892_v17  ;;  %v288_v33 = vlaneseq }
 0x2b3   : > { %1549 = vmatpush.bf16.xpose.msra.mxu3 %v1541_v62  ;;  %v3428_v12 = vpack.c.b16 %v942_v25, %v941_v23  ;;  %v3432_v30 = vpack.c.b16 %v940_v29, %v939_v27  ;;  %v772_v35 = vpop.f32.mrf.mxu3 }
 0x2b4   : > { %1414 = vrot.lane.b32.xlu0 %v3417_v20, %s3028_s29  ;;  %1158 = vrot.lane.b32.xlu1 %v3417_v20, %s3027_s16  ;;  %v289_v38 = vshrl.u32 %v288_v33, 7  ;;  %v294_v42 = vand.u32 127, %v288_v33 }
 0x2b5   : > { %912 = vmatpush.bf16.msrb.mxu1 %v3417_v20  ;;  %1156 = vrot.lane.b32.xlu2 %v3419_v21, %s3027_s16 }
 0x2b6   : > { %v290_v39 = vadd.s32 8, %v289_v38  ;;  %v291_v41 = vadd.s32 16, %v289_v38  ;;  %vm295_vm14 = vcmp.le.s32.totalorder %v294_v42, %v289_v38  ;;  %v292_v54 = vadd.s32 24, %v289_v38 }
 0x2b7   : > { %v3462_v56 = vsel %vm295_vm14, 0.0, %v3030_v44 }
 0x2b8   : > { %vm296_vm12 = vcmp.le.s32.totalorder %v294_v42, %v290_v39  ;;  %vm297_vm13 = vcmp.le.s32.totalorder %v294_v42, %v291_v41  ;;  %v3466_v57 = vadd.f32 %v3412_v2, %v3462_v56  ;;  %v3472_v58 = vadd.f32 %v772_v35, %v3462_v56 }
 0x2b9   : > { %913 = vmatpush.bf16.msrb.mxu1 %v3419_v21  ;;  %v3446_v46 = vsel %vm296_vm12, 0.0, %v3030_v44  ;;  %vm298_vm15 = vcmp.le.s32.totalorder %v294_v42, %v292_v54 }
 0x2ba   : > { %v3451_v49 = vadd.f32 %v723_v26, %v3446_v46  ;;  %v782_v60 = vsel %vm303_vm0, %v3466_v57, -inf  ;;  %v3478_v62 = vsel %vm298_vm15, 0.0, %v3030_v44 }
 0x2bb   : > { %1550 = vmatpush.bf16.xpose.msra.mxu3 %v1538_v55  ;;  %v774_v43 = vpop.f32.mrf.mxu3  ;;  %v3483_v2 = vadd.f32 %v728_v32, %v3478_v62  ;;  %v1526_v55 = vpop.permute.xlu1 %1525 }
 0x2bc   : > { %1197 = vrot.lane.b32.xlu1 %v3432_v30, %s3027_s16  ;;  %1412 = vrot.lane.b32.xlu0 %v3419_v21, %s3028_s29  ;;  %v785_v52 = vsel %vm303_vm0, %v3451_v49, -inf  ;;  %v3469_v28 = vadd.f32 %v774_v43, %v3446_v46 }
 0x2bd   : > { %959 = vmatpush.bf16.msra.mxu1 %v3428_v12  ;;  %1199 = vrot.lane.b32.xlu2 %v3428_v12, %s3027_s16  ;;  %v791_v45 = vsel %vm303_vm0, %v3483_v2, -inf }
 0x2be   : > { %v797_v61 = vsel %vm303_vm0, %v3469_v28, -inf }
 0x2c1   : > { %960 = vmatpush.bf16.msra.mxu1 %v3432_v30 }
 0x2c2   : > { %2518 = vmatmul.msk.bf16.vlgmr.msrb.gmra.mxu3 %vm699_vm11, %v3400_v47  ;;  %v3448_v47 = vsel %vm297_vm13, 0.0, %v3030_v44 }
 0x2c3   : > { %v3454_v48 = vadd.f32 %v726_v31, %v3448_v47  ;;  %v777_v50 = vpop.f32.mrf.mxu3 }
 0x2c4   : > { %v3494_v4 = vadd.f32 %v777_v50, %v3448_v47 }
 0x2c5   : > { %1455 = vrot.lane.b32.xlu2 %v3428_v12, %s3028_s29  ;;  %v788_v51 = vsel %vm303_vm0, %v3454_v48, -inf }
 0x2c6   : > { %v800_v5 = vsel %vm303_vm0, %v3494_v4, -inf }
 0x2cb   : > { %v779_v1 = vpop.f32.mrf.mxu3 }
 0x2cc   : > { %v3486_v63 = vadd.f32 %v779_v1, %v3478_v62 }
 0x2ce   : > { %v803_v53 = vsel %vm303_vm0, %v3486_v63, -inf }
 0x2d2   : > { %2519 = vmatmul.msk.bf16.gmra.mxu3 %vm699_vm11, %v1270_v34  ;;  %v1001_v59 = vpop.f32.mrf.mxu2 }
 0x2d3   : > { %v3504_v3 = vadd.f32 %v1001_v59, %v3462_v56 }
 0x2d5   : > { %v1050_v7 = vsel %vm303_vm0, %v3504_v3, -inf }
 0x2da   : > { %v1003_v40 = vpop.f32.mrf.mxu2 }
 0x2db   : > { %v3497_v36 = vadd.f32 %v1003_v40, %v3446_v46 }
 0x2dd   : > { %v1053_v6 = vsel %vm303_vm0, %v3497_v36, -inf }
 0x2e2   : > { %2526 = vmatmul.msk.bf16.vlgmr.msra.gmra.mxu3 %vm699_vm11, %v3410_v0  ;;  %v794_v0 = vsel %vm303_vm0, %v3472_v58, -inf  ;;  %v1006_v32 = vpop.f32.mrf.mxu2 }
 0x2e6   : > { %789 = vmax.xlane.f32.xlu1 %v788_v51  ;;  %786 = vmax.xlane.f32.xlu0 %v785_v52 }
 0x2ea   : > { %v1008_v51 = vpop.f32.mrf.mxu2 }
 0x2ee   : > { %783 = vmax.xlane.f32.xlu2 %v782_v60  ;;  %798 = vmax.xlane.f32.xlu1 %v797_v61 }
 0x2ef   : > { %795 = vmax.xlane.f32.xlu0 %v794_v0 }
 0x2f2   : > { %2527 = vmatmul.msk.bf16.gmra.mxu3 %vm699_vm11, %v1526_v55 }
 0x2f6   : > { %792 = vmax.xlane.f32.xlu2 %v791_v45 }
 0x2f7   : > { %804 = vmax.xlane.f32.xlu0 %v803_v53 }
 0x2fe   : > { %801 = vmax.xlane.f32.xlu2 %v800_v5 }
 0x2ff   : > { %1054 = vmax.xlane.f32.xlu0 %v1053_v6  ;;  %v1257_v6 = vpop.f32.mrf.mxu2 }
 0x306   : > { %1051 = vmax.xlane.f32.xlu2 %v1050_v7 }
 0x30f   : > { %v1157_v13 = vpop.permute.xlu2 %1156 }
 0x317   : > { %v3521_v22 = vpop.permute.xlu2 %1199 }
 0x31f   : > { %v3527_v25 = vpop.permute.xlu2 %1455 }
 0x325   : > { %v1040_v8 = vpop.f32.mrf.mxu3 }
 0x326   : > { %v3509_v9 = vadd.f32 %v1040_v8, %v3462_v56  ;;  %v1415_v10 = vpop.permute.xlu0 %1414  ;;  %v1159_v37 = vpop.permute.xlu1 %1158 }
 0x327   : > { %1174 = vmatpush.bf16.msrb.mxu0 %v1159_v37 }
 0x328   : > { %v1062_v11 = vsel %vm303_vm0, %v3509_v9, -inf }
 0x329   : > { %1063 = vmax.xlane.f32.xlu1 %v1062_v11 }
 0x32b   : > { %1175 = vmatpush.bf16.msrb.mxu0 %v1157_v13 }
 0x32d   : > { %v3513_v14 = vpop.f32.mrf.mxu3 }
 0x32e   : > { %v1413_v15 = vpop.permute.xlu0 %1412  ;;  %v3523_v19 = vpop.permute.xlu1 %1197 }
 0x32f   : > { %1430 = vmatpush.bf16.msra.mxu0 %v1415_v10 }
 0x333   : > { %1431 = vmatpush.bf16.msra.mxu0 %v1413_v15 }
 0x335   : > { %v3515_v17 = vpop.f32.mrf.mxu3 }
 0x33d   : > { %v3517_v18 = vpop.f32.mrf.mxu3 }
 0x345   : > { %v3519_v16 = vpop.f32.mrf.mxu3 }
 0x34d   : > { %v3525_v23 = vpop.f32.mrf.mxu3 }
 0x355   : > { %v3530_v33 = vpop.f32.mrf.mxu3 }
 0x359   : > { %v790_v26 = vpop.xlane.xlu1 %789  ;;  %v787_v27 = vpop.xlane.xlu0 %786 }
 0x35a   : > { %v807_v29 = vsub.f32 %v3451_v49, %v787_v27  ;;  %v808_v50 = vsub.f32 %v3454_v48, %v790_v26  ;;  %v3573_v26 = vadd.f32 %v1257_v6, %v3462_v56 }
 0x35c   : > { %v816_v31 = vmul.f32 1.442695, %v807_v29  ;;  %v818_v52 = vmul.f32 1.442695, %v808_v50  ;;  %v1306_v29 = vsel %vm303_vm0, %v3573_v26, -inf }
 0x35d   : > { %v3542_v59 = vpop.f32.mrf.mxu3 }
 0x35e   : > { %2754 = vpow2.f32 %v816_v31 }
 0x361   : > { %v784_v34 = vpop.xlane.xlu2 %783  ;;  %v799_v35 = vpop.xlane.xlu1 %798 }
 0x362   : > { %v806_v38 = vsub.f32 %v3466_v57, %v784_v34  ;;  %v811_v39 = vsub.f32 %v3469_v28, %v799_v35  ;;  %v796_v41 = vpop.xlane.xlu0 %795  ;;  %v3540_v57 = vadd.f32 %v1008_v51, %v3478_v62  ;;  %v3586_v35 = vadd.f32 %v3513_v14, %v3446_v46 }
 0x363   : > { %v810_v7 = vsub.f32 %v3472_v58, %v796_v41 }
 0x364   : > { %v814_v42 = vmul.f32 1.442695, %v806_v38  ;;  %v824_v43 = vmul.f32 1.442695, %v811_v39  ;;  %v3534_v44 = vpop.eup %2754  ;;  %v1059_v53 = vsel %vm303_vm0, %v3540_v57, -inf  ;;  %v1065_v41 = vsel %vm303_vm0, %v3586_v35, -inf }
 0x365   : > { %v833_v49 = vsel %vm303_vm0, %v3534_v44, 0.0  ;;  %v1552_v8 = vpop.f32.mrf.mxu3  ;;  %v822_v13 = vmul.f32 1.442695, %v810_v7  ;;  %v3633_v7 = vadd.f32 %v3519_v16, %v3462_v56 }
 0x366   : > { %2756 = vpow2.f32 %v814_v42  ;;  %834 = vadd.xlane.f32.xlu0 %v833_v49  ;;  %v3576_v58 = vadd.f32 %v1552_v8, %v3462_v56  ;;  %v3604_v49 = vadd.f32 %v3515_v17, %v3448_v47  ;;  %v3637_v8 = vadd.f32 %v3525_v23, %v3446_v46 }
 0x367   : > { %2758 = vpow2.f32 %v824_v43 }
 0x368   : > { %2760 = vpow2.f32 %v818_v52  ;;  %v1574_v31 = vsel %vm303_vm0, %v3576_v58, -inf }
 0x369   : > { %v793_v54 = vpop.xlane.xlu2 %792 }
 0x36a   : > { %v805_v28 = vpop.xlane.xlu0 %804  ;;  %v809_v48 = vsub.f32 %v3483_v2, %v793_v54  ;;  %v3557_v2 = vadd.f32 %v1006_v32, %v3448_v47  ;;  %v1259_v32 = vpop.f32.mrf.mxu2 }
 0x36b   : > { %v813_v60 = vsub.f32 %v3486_v63, %v805_v28  ;;  %v3600_v14 = vadd.f32 %v1259_v32, %v3446_v46  ;;  %v1068_v28 = vsel %vm303_vm0, %v3604_v49, -inf  ;;  %v3655_v32 = vadd.f32 %v3530_v33, %v3448_v47 }
 0x36c   : > { %v3545_v61 = vpop.eup %2756  ;;  %v820_v63 = vmul.f32 1.442695, %v809_v48  ;;  %v1056_v10 = vsel %vm303_vm0, %v3557_v2, -inf  ;;  %v3613_v48 = vadd.f32 %v3517_v18, %v3478_v62  ;;  %v3670_v33 = vadd.f32 %v3542_v59, %v3478_v62 }
 0x36d   : > { %v3548_v0 = vpop.eup %2758  ;;  %v828_v1 = vmul.f32 1.442695, %v813_v60  ;;  %v830_v55 = vsel %vm303_vm0, %v3545_v61, 0.0  ;;  %v1554_v34 = vpop.f32.mrf.mxu3  ;;  %v1309_v54 = vsel %vm303_vm0, %v3600_v14, -inf }
 0x36e   : > { %831 = vadd.xlane.f32.xlu2 %v830_v55  ;;  %v845_v45 = vsel %vm303_vm0, %v3548_v0, 0.0  ;;  %1060 = vmax.xlane.f32.xlu0 %v1059_v53  ;;  %v3559_v40 = vpop.eup %2760  ;;  %v3589_v38 = vadd.f32 %v1554_v34, %v3446_v46 }
 0x36f   : > { %2762 = vpow2.f32 %v828_v1  ;;  %846 = vadd.xlane.f32.xlu1 %v845_v45  ;;  %v836_v37 = vsel %vm303_vm0, %v3559_v40, 0.0 }
 0x370   : > { %2764 = vpow2.f32 %v820_v63  ;;  %v1577_v43 = vsel %vm303_vm0, %v3589_v38, -inf }
 0x371   : > { %2766 = vpow2.f32 %v822_v13  ;;  %v802_v51 = vpop.xlane.xlu2 %801 }
 0x372   : > { %v1262_v50 = vpop.f32.mrf.mxu2  ;;  %v812_v52 = vsub.f32 %v3494_v4, %v802_v51  ;;  %v1071_v4 = vsel %vm303_vm0, %v3613_v48, -inf }
 0x373   : > { %v3616_v17 = vadd.f32 %v1262_v50, %v3448_v47 }
 0x374   : > { %v826_v1 = vmul.f32 1.442695, %v812_v52  ;;  %v1327_v52 = vsel %vm303_vm0, %v3670_v33, -inf }
 0x375   : > { %v3561_v5 = vpop.eup %2762  ;;  %v1312_v55 = vsel %vm303_vm0, %v3616_v17, -inf  ;;  %v1557_v16 = vpop.f32.mrf.mxu3 }
 0x376   : > { %1057 = vmax.xlane.f32.xlu2 %v1056_v10  ;;  %v851_v11 = vsel %vm303_vm0, %v3561_v5, 0.0  ;;  %837 = vadd.xlane.f32.xlu0 %v836_v37  ;;  %v3570_v15 = vpop.eup %2764  ;;  %2768 = vpow2.f32 %v826_v1  ;;  %v1318_v37 = vsel %vm303_vm0, %v3633_v7, -inf  ;;  %v1055_v1 = vpop.xlane.xlu0 %1054 }
 0x377   : > { %852 = vadd.xlane.f32.xlu1 %v851_v11  ;;  %v839_v27 = vsel %vm303_vm0, %v3570_v15, 0.0  ;;  %v3591_v39 = vpop.eup %2766  ;;  %v1321_v11 = vsel %vm303_vm0, %v3637_v8, -inf }
 0x378   : > { %v842_v42 = vsel %vm303_vm0, %v3591_v39, 0.0 }
 0x379   : > { %v1052_v34 = vpop.xlane.xlu2 %1051 }
 0x37a   : > { %v1264_v60 = vpop.f32.mrf.mxu2 }
 0x37b   : > { %v3623_v45 = vadd.f32 %v1264_v60, %v3478_v62 }
 0x37c   : > { %v3625_v53 = vpop.eup %2768 }
 0x37d   : > { %v1315_v63 = vsel %vm303_vm0, %v3623_v45, -inf  ;;  %v848_v6 = vsel %vm303_vm0, %v3625_v53, 0.0 }
 0x37e   : > { %840 = vadd.xlane.f32.xlu2 %v839_v27  ;;  %1307 = vmax.xlane.f32.xlu0 %v1306_v29 }
 0x37f   : > { %1575 = vmax.xlane.f32.xlu1 %v1574_v31 }
 0x382   : > { %v1513_v18 = vpop.f32.mrf.mxu2 }
 0x383   : > { %v3644_v13 = vadd.f32 %v1513_v18, %v3462_v56 }
 0x385   : > { %v1562_v23 = vsel %vm303_vm0, %v3644_v13, -inf }
 0x386   : > { %1066 = vmax.xlane.f32.xlu2 %v1065_v41  ;;  %843 = vadd.xlane.f32.xlu0 %v842_v42  ;;  %v1324_v41 = vsel %vm303_vm0, %v3655_v32, -inf  ;;  %v1559_v42 = vpop.f32.mrf.mxu3 }
 0x387   : > { %1578 = vmax.xlane.f32.xlu1 %v1577_v43  ;;  %v3666_v51 = vadd.f32 %v1559_v42, %v3478_v62 }
 0x38a   : > { %v1515_v10 = vpop.f32.mrf.mxu2 }
 0x38b   : > { %v3647_v27 = vadd.f32 %v1515_v10, %v3446_v46  ;;  %v1074_v46 = vsub.f32 %v3504_v3, %v1052_v34  ;;  %v1583_v3 = vsel %vm303_vm0, %v3666_v51, -inf }
 0x38d   : > { %v1565_v29 = vsel %vm303_vm0, %v3647_v27, -inf  ;;  %v1082_v50 = vmul.f32 1.442695, %v1074_v46 }
 0x38e   : > { %1310 = vmax.xlane.f32.xlu2 %v1309_v54  ;;  %1069 = vmax.xlane.f32.xlu0 %v1068_v28 }
 0x38f   : > { %2770 = vpow2.f32 %v1082_v50 }
 0x392   : > { %v1518_v31 = vpop.f32.mrf.mxu2 }
 0x393   : > { %v3658_v56 = vadd.f32 %v1518_v31, %v3448_v47 }
 0x395   : > { %v1568_v43 = vsel %vm303_vm0, %v3658_v56, -inf  ;;  %v3676_v28 = vpop.eup %2770 }
 0x396   : > { %1072 = vmax.xlane.f32.xlu2 %v1071_v4  ;;  %1313 = vmax.xlane.f32.xlu0 %v1312_v55  ;;  %v1075_v4 = vsub.f32 %v3497_v36, %v1055_v1  ;;  %v1098_v59 = vsel %vm303_vm0, %v3676_v28, 0.0 }
 0x398   : > { %v1084_v18 = vmul.f32 1.442695, %v1075_v4 }
 0x39a   : > { %v1520_v54 = vpop.f32.mrf.mxu2  ;;  %2772 = vpow2.f32 %v1084_v18 }
 0x39b   : > { %v3679_v60 = vadd.f32 %v1520_v54, %v3478_v62 }
 0x39c   : > { %v1064_v54 = vpop.xlane.xlu1 %1063 }
 0x39d   : > { %v1571_v55 = vsel %vm303_vm0, %v3679_v60, -inf }
 0x39e   : > { %1316 = vmax.xlane.f32.xlu2 %v1315_v63  ;;  %849 = vadd.xlane.f32.xlu0 %v848_v6  ;;  %v3687_v63 = vadd.f32 %v1557_v16, %v3448_v47 }
 0x3a0   : > { %v1580_v62 = vsel %vm303_vm0, %v3687_v63, -inf  ;;  %v3691_v6 = vpop.eup %2772 }
 0x3a1   : > { %v1101_v36 = vsel %vm303_vm0, %v3691_v6, 0.0 }
 0x3a6   : > { %1319 = vmax.xlane.f32.xlu2 %v1318_v37  ;;  %1322 = vmax.xlane.f32.xlu0 %v1321_v11 }
 0x3ae   : > { %1563 = vmax.xlane.f32.xlu2 %v1562_v23  ;;  %1566 = vmax.xlane.f32.xlu0 %v1565_v29 }
 0x3b6   : > { %1325 = vmax.xlane.f32.xlu2 %v1324_v41  ;;  %1569 = vmax.xlane.f32.xlu0 %v1568_v43 }
 0x3be   : > { %1584 = vmax.xlane.f32.xlu2 %v1583_v3  ;;  %1328 = vmax.xlane.f32.xlu0 %v1327_v52 }
 0x3c6   : > { %1099 = vadd.xlane.f32.xlu2 %v1098_v59  ;;  %1572 = vmax.xlane.f32.xlu0 %v1571_v55 }
 0x3ce   : > { %1581 = vmax.xlane.f32.xlu0 %v1580_v62 }
 0x3d6   : > { %1102 = vadd.xlane.f32.xlu0 %v1101_v36 }
 0x3d9   : > { %v835_v10 = vpop.xlane.xlu0 %834 }
 0x3da   : > { %2774 = vrcp.f32 %v835_v10 }
 0x3e0   : > { %v2775_v11 = vpop.eup %2774 }
 0x3e1   : > { %v832_v37 = vpop.xlane.xlu2 %831  ;;  %v1061_v23 = vpop.xlane.xlu0 %1060  ;;  %v863_v47 = vmul.f32 %v2775_v11, %v3534_v44 }
 0x3e2   : > { %2776 = vrcp.f32 %v832_v37  ;;  %v1077_v43 = vsub.f32 %v3540_v57, %v1061_v23  ;;  %v847_v10 = vpop.xlane.xlu1 %846 }
 0x3e3   : > { %v871_v29 = vpack.c.bf16 %v863_v47, %v863_v47 }
 0x3e4   : > { %v1088_v4 = vmul.f32 1.442695, %v1077_v43 }
 0x3e5   : > { %v883_v3 = vunpack.c.l.b16 %v871_v29 }
 0x3e8   : > { %v2777_v16 = vpop.eup %2776 }
 0x3e9   : > { %v862_v31 = vmul.f32 %v2777_v16, %v3545_v61  ;;  %v1058_v34 = vpop.xlane.xlu2 %1057  ;;  %v838_v41 = vpop.xlane.xlu0 %837  ;;  %v1078_v61 = vsub.f32 %v3509_v9, %v1064_v54 }
 0x3ea   : > { %v1076_v46 = vsub.f32 %v3557_v2, %v1058_v34  ;;  %2778 = vrcp.f32 %v838_v41 }
 0x3eb   : > { %v870_v42 = vpack.c.bf16 %v862_v31, %v862_v31  ;;  %v1090_v62 = vmul.f32 1.442695, %v1078_v61 }
 0x3ec   : > { %v1086_v50 = vmul.f32 1.442695, %v1076_v46 }
 0x3ed   : > { %v882_v52 = vunpack.c.l.b16 %v870_v42 }
 0x3ee   : > { %2780 = vpow2.f32 %v1086_v50 }
 0x3ef   : > { %v886_v1 = vpack.c.b16 %v883_v3, %v882_v52 }
 0x3f0   : > { %v2779_v59 = vpop.eup %2778 }
 0x3f1   : > { %2504 = vmatmul.msk.bf16.vlgmr.msrb.gmra.mxu1 %vm303_vm0, %v886_v1  ;;  %v841_v44 = vpop.xlane.xlu2 %840  ;;  %v1308_v2 = vpop.xlane.xlu0 %1307  ;;  %v864_v18 = vmul.f32 %v2779_v59, %v3559_v40 }
 0x3f2   : > { %1215 = vmatpush.bf16.msrb.mxu1 %v3521_v22  ;;  %2782 = vrcp.f32 %v841_v44  ;;  %v1330_v40 = vsub.f32 %v3573_v26, %v1308_v2 }
 0x3f3   : > { %2784 = vpow2.f32 %v1088_v4  ;;  %v872_v22 = vpack.c.bf16 %v864_v18, %v864_v18 }
 0x3f4   : > { %v3702_v55 = vpop.eup %2780  ;;  %2786 = vpow2.f32 %v1090_v62  ;;  %v1338_v41 = vmul.f32 1.442695, %v1330_v40 }
 0x3f5   : > { %v1104_v57 = vsel %vm303_vm0, %v3702_v55, 0.0  ;;  %v884_v31 = vunpack.c.l.b16 %v872_v22 }
 0x3f6   : > { %1216 = vmatpush.bf16.msrb.mxu1 %v3523_v19  ;;  %1105 = vadd.xlane.f32.xlu0 %v1104_v57  ;;  %v853_v57 = vpop.xlane.xlu1 %852 }
 0x3f8   : > { %v2783_v36 = vpop.eup %2782 }
 0x3f9   : > { %v1067_v37 = vpop.xlane.xlu2 %1066  ;;  %v865_v9 = vmul.f32 %v2783_v36, %v3570_v15  ;;  %v3709_v11 = vpop.eup %2784 }
 0x3fa   : > { %v1079_v23 = vsub.f32 %v3586_v35, %v1067_v37  ;;  %v844_v47 = vpop.xlane.xlu0 %843  ;;  %v1107_v19 = vsel %vm303_vm0, %v3709_v11, 0.0  ;;  %v3715_v46 = vpop.eup %2786 }
 0x3fb   : > { %2788 = vrcp.f32 %v844_v47  ;;  %v873_v16 = vpack.c.bf16 %v865_v9, %v865_v9  ;;  %v1110_v59 = vsel %vm303_vm0, %v3715_v46, 0.0 }
 0x3fc   : > { %2790 = vrcp.f32 %v847_v10  ;;  %v1092_v29 = vmul.f32 1.442695, %v1079_v23 }
 0x3fd   : > { %v885_v34 = vunpack.c.l.b16 %v873_v16 }
 0x3fe   : > { %2792 = vpow2.f32 %v1092_v29  ;;  %1108 = vadd.xlane.f32.xlu0 %v1107_v19 }
 0x3ff   : > { %v887_v15 = vpack.c.b16 %v885_v34, %v884_v31  ;;  %2794 = vpow2.f32 %v1338_v41 }
 0x401   : > { %v2789_v42 = vpop.eup %2788  ;;  %2505 = vmatmul.msk.bf16.gmra.mxu1 %vm303_vm0, %v887_v15  ;;  %v1311_v35 = vpop.xlane.xlu2 %1310 }
 0x402   : > { %v2791_v43 = vpop.eup %2790  ;;  %v1331_v50 = vsub.f32 %v3600_v14, %v1311_v35  ;;  %v1070_v26 = vpop.xlane.xlu0 %1069  ;;  %v866_v3 = vmul.f32 %v2789_v42, %v3591_v39 }
 0x403   : > { %v1080_v52 = vsub.f32 %v3604_v49, %v1070_v26  ;;  %v867_v4 = vmul.f32 %v2791_v43, %v3548_v0 }
 0x404   : > { %v3721_v54 = vpop.eup %2792  ;;  %v1340_v1 = vmul.f32 1.442695, %v1331_v50  ;;  %v874_v14 = vpack.c.bf16 %v866_v3, %v866_v3 }
 0x405   : > { %v1094_v44 = vmul.f32 1.442695, %v1080_v52  ;;  %v1113_v61 = vsel %vm303_vm0, %v3721_v54, 0.0  ;;  %v875_v39 = vpack.c.bf16 %v867_v4, %v867_v4  ;;  %v3728_v2 = vpop.eup %2794 }
 0x406   : > { %2796 = vpow2.f32 %v1340_v1  ;;  %1111 = vadd.xlane.f32.xlu0 %v1110_v59  ;;  %1114 = vadd.xlane.f32.xlu1 %v1113_v61  ;;  %v929_v62 = vunpack.c.l.b16 %v874_v14  ;;  %v1354_v37 = vsel %vm303_vm0, %v3728_v2, 0.0 }
 0x407   : > { %2798 = vpow2.f32 %v1094_v44  ;;  %v930_v10 = vunpack.c.l.b16 %v875_v39 }
 0x408   : > { %2800 = vrcp.f32 %v853_v57 }
 0x409   : > { %v1073_v49 = vpop.xlane.xlu2 %1072  ;;  %v933_v23 = vpack.c.b16 %v930_v10, %v929_v62 }
 0x40a   : > { %v1314_v18 = vpop.xlane.xlu0 %1313  ;;  %v1081_v39 = vsub.f32 %v3613_v48, %v1073_v49 }
 0x40b   : > { %v1332_v10 = vsub.f32 %v3616_v17, %v1314_v18 }
 0x40c   : > { %v3730_v0 = vpop.eup %2796  ;;  %v1096_v62 = vmul.f32 1.442695, %v1081_v39 }
 0x40d   : > { %v3732_v36 = vpop.eup %2798  ;;  %v1357_v9 = vsel %vm303_vm0, %v3730_v0, 0.0 }
 0x40e   : > { %1355 = vadd.xlane.f32.xlu0 %v1354_v37  ;;  %1358 = vadd.xlane.f32.xlu1 %v1357_v9  ;;  %v1116_v22 = vsel %vm303_vm0, %v3732_v36, 0.0  ;;  %v2801_v29 = vpop.eup %2800 }
 0x40f   : > { %1117 = vadd.xlane.f32.xlu2 %v1116_v22  ;;  %v869_v31 = vmul.f32 %v2801_v29, %v3561_v5  ;;  %v1342_v22 = vmul.f32 1.442695, %v1332_v10 }
 0x411   : > { %2506 = vmatmul.msk.bf16.vlgmr.msra.gmra.mxu1 %vm303_vm0, %v933_v23  ;;  %v1317_v47 = vpop.xlane.xlu2 %1316  ;;  %v877_v35 = vpack.c.bf16 %v869_v31, %v869_v31 }
 0x412   : > { %1471 = vmatpush.bf16.msra.mxu1 %v3527_v25  ;;  %v1333_v16 = vsub.f32 %v3623_v45, %v1317_v47  ;;  %v850_v40 = vpop.xlane.xlu0 %849 }
 0x413   : > { %2802 = vrcp.f32 %v850_v40  ;;  %v932_v52 = vunpack.c.l.b16 %v877_v35 }
 0x414   : > { %v1344_v19 = vmul.f32 1.442695, %v1333_v16 }
 0x416   : > { %2804 = vpow2.f32 %v1344_v19 }
 0x419   : > { %v2803_v34 = vpop.eup %2802  ;;  %v1320_v15 = vpop.xlane.xlu2 %1319 }
 0x41a   : > { %v1323_v41 = vpop.xlane.xlu0 %1322  ;;  %v868_v42 = vmul.f32 %v2803_v34, %v3625_v53  ;;  %v1334_v37 = vsub.f32 %v3633_v7, %v1320_v15  ;;  %v1576_v34 = vpop.xlane.xlu1 %1575 }
 0x41b   : > { %v1335_v43 = vsub.f32 %v3637_v8, %v1323_v41 }
 0x41c   : > { %v3746_v50 = vpop.eup %2804  ;;  %v876_v25 = vpack.c.bf16 %v868_v42, %v868_v42  ;;  %v1346_v23 = vmul.f32 1.442695, %v1334_v37 }
 0x41d   : > { %v1348_v26 = vmul.f32 1.442695, %v1335_v43  ;;  %v1363_v45 = vsel %vm303_vm0, %v3746_v50, 0.0 }
 0x41e   : > { %1364 = vadd.xlane.f32.xlu2 %v1363_v45  ;;  %v931_v3 = vunpack.c.l.b16 %v876_v25 }
 0x41f   : > { %2806 = vpow2.f32 %v1348_v26 }
 0x420   : > { %v934_v5 = vpack.c.b16 %v932_v52, %v931_v3  ;;  %2808 = vpow2.f32 %v1096_v62  ;;  %v1590_v52 = vsub.f32 %v3576_v58, %v1576_v34 }
 0x421   : > { %v1564_v53 = vpop.xlane.xlu2 %1563 }
 0x422   : > { %v1567_v1 = vpop.xlane.xlu0 %1566  ;;  %1453 = vrot.lane.b32.xlu0 %v3432_v30, %s3028_s29  ;;  %2507 = vmatmul.msk.bf16.gmra.mxu1 %vm303_vm0, %v934_v5  ;;  %v1586_v47 = vsub.f32 %v3644_v13, %v1564_v53  ;;  %s3034_s29 = smov 32  }
 0x423   : > { %v1587_v17 = vsub.f32 %v3647_v27, %v1567_v1 }
 0x425   : > { %v3753_v8 = vpop.eup %2806  ;;  %v1596_v40 = vmul.f32 1.442695, %v1587_v17 }
 0x426   : > { %v1369_v4 = vsel %vm303_vm0, %v3753_v8, 0.0  ;;  %v3769_v48 = vpop.eup %2808 }
 0x427   : > { %1670 = vrot.lane.b32.xlu1 %v3417_v20, %s3029_s8  ;;  %1370 = vadd.xlane.f32.xlu2 %v1369_v4  ;;  %v1119_v7 = vsel %vm303_vm0, %v3769_v48, 0.0  ;;  %v1602_v4 = vmul.f32 1.442695, %v1590_v52 }
 0x429   : > { %v1326_v59 = vpop.xlane.xlu2 %1325 }
 0x42a   : > { %v1570_v44 = vpop.xlane.xlu0 %1569  ;;  %v1336_v15 = vsub.f32 %v3655_v32, %v1326_v59 }
 0x42b   : > { %v1588_v26 = vsub.f32 %v3658_v56, %v1570_v44  ;;  %v1579_v56 = vpop.xlane.xlu1 %1578 }
 0x42c   : > { %v1350_v25 = vmul.f32 1.442695, %v1336_v15  ;;  %v1591_v59 = vsub.f32 %v3589_v38, %v1579_v56 }
 0x42d   : > { %v1598_v1 = vmul.f32 1.442695, %v1588_v26 }
 0x431   : > { %v3759_v14 = vpop.xlane.xlu2 %1584 }
 0x432   : > { %v1329_v61 = vpop.xlane.xlu0 %1328 }
 0x433   : > { %v1337_v13 = vsub.f32 %v3670_v33, %v1329_v61 }
 0x435   : > { %v1352_v35 = vmul.f32 1.442695, %v1337_v13 }
 0x439   : > { %v1100_v9 = vpop.xlane.xlu2 %1099 }
 0x43a   : > { %v1573_v57 = vpop.xlane.xlu0 %1572  ;;  %2810 = vrcp.f32 %v1100_v9 }
 0x43b   : > { %2812 = vpow2.f32 %v1342_v22  ;;  %v1589_v53 = vsub.f32 %v3679_v60, %v1573_v57  ;;  %v1604_v57 = vmul.f32 1.442695, %v1591_v59 }
 0x43c   : > { %2814 = vpow2.f32 %v1346_v23 }
 0x43d   : > { %v1600_v61 = vmul.f32 1.442695, %v1589_v53 }
 0x43f   : > { %1668 = vrot.lane.b32.xlu2 %v3419_v21, %s3029_s8  ;;  %v1594_v21 = vmul.f32 1.442695, %v1586_v47 }
 0x440   : > { %v2811_v18 = vpop.eup %2810 }
 0x441   : > { %v3774_v16 = vpop.eup %2812  ;;  %v1130_v29 = vmul.f32 %v2811_v18, %v3676_v28 }
 0x442   : > { %v3766_v20 = vpop.xlane.xlu0 %1581  ;;  %v3778_v19 = vpop.eup %2814  ;;  %v1360_v27 = vsel %vm303_vm0, %v3774_v16, 0.0 }
 0x443   : > { %v1138_v41 = vpack.c.bf16 %v1130_v29, %v1130_v29  ;;  %v1366_v28 = vsel %vm303_vm0, %v3778_v19, 0.0  ;;  %v1592_v38 = vsub.f32 %v3687_v63, %v3766_v20  ;;  %v1593_v63 = vsub.f32 %v3666_v51, %v3759_v14 }
 0x445   : > { %v1150_v45 = vunpack.c.l.b16 %v1138_v41  ;;  %v1606_v17 = vmul.f32 1.442695, %v1592_v38 }
 0x44a   : > { %v1103_v49 = vpop.xlane.xlu0 %1102 }
 0x44b   : > { %2816 = vrcp.f32 %v1103_v49 }
 0x44c   : > { %1120 = vadd.xlane.f32.xlu0 %v1119_v7  ;;  %2818 = vpow2.f32 %v1594_v21 }
 0x44d   : > { %2820 = vpow2.f32 %v1596_v40  ;;  %v1608_v40 = vmul.f32 1.442695, %v1593_v63 }
 0x44e   : > { %2822 = vpow2.f32 %v1352_v35 }
 0x44f   : > { %2824 = vpow2.f32 %v1350_v25 }
 0x450   : > { %2826 = vpow2.f32 %v1598_v1 }
 0x451   : > { %v2817_v31 = vpop.eup %2816  ;;  %1361 = vadd.xlane.f32.xlu1 %v1360_v27  ;;  %2828 = vpow2.f32 %v1602_v4 }
 0x452   : > { %v1131_v42 = vmul.f32 %v2817_v31, %v3691_v6  ;;  %v3786_v33 = vpop.eup %2818  ;;  %2830 = vpow2.f32 %v1600_v61 }
 0x453   : > { %v3790_v32 = vpop.eup %2820  ;;  %v1610_v6 = vsel %vm303_vm0, %v3786_v33, 0.0  ;;  %2832 = vpow2.f32 %v1604_v57 }
 0x454   : > { %v1139_v43 = vpack.c.bf16 %v1131_v42, %v1131_v42  ;;  %1367 = vadd.xlane.f32.xlu0 %v1366_v28  ;;  %v1613_v44 = vsel %vm303_vm0, %v3790_v32, 0.0  ;;  %v3798_v58 = vpop.eup %2822 }
 0x455   : > { %v3801_v39 = vpop.eup %2824  ;;  %v1375_v60 = vsel %vm303_vm0, %v3798_v58, 0.0 }
 0x456   : > { %v1151_v3 = vunpack.c.l.b16 %v1139_v43  ;;  %v1372_v62 = vsel %vm303_vm0, %v3801_v39, 0.0  ;;  %v3807_v10 = vpop.eup %2826 }
 0x457   : > { %v3809_v37 = vpop.eup %2828  ;;  %v1616_v9 = vsel %vm303_vm0, %v3807_v10, 0.0 }
 0x458   : > { %v1154_v5 = vpack.c.b16 %v1151_v3, %v1150_v45  ;;  %v3815_v22 = vpop.eup %2830  ;;  %v1622_v23 = vsel %vm303_vm0, %v3809_v37, 0.0 }
 0x459   : > { %1611 = vadd.xlane.f32.xlu1 %v1610_v6  ;;  %v1619_v49 = vsel %vm303_vm0, %v3815_v22, 0.0  ;;  %v3821_v18 = vpop.eup %2832 }
 0x45a   : > { %2512 = vmatmul.msk.bf16.vlgmr.msrb.gmra.mxu0 %vm303_vm0, %v1154_v5  ;;  %v1625_v20 = vsel %vm303_vm0, %v3821_v18, 0.0 }
 0x45c   : > { %1614 = vadd.xlane.f32.xlu0 %v1613_v44 }
 0x461   : > { %1376 = vadd.xlane.f32.xlu1 %v1375_v60 }
 0x464   : > { %1373 = vadd.xlane.f32.xlu0 %v1372_v62 }
 0x468   : > { %1617 = vadd.xlane.f32.xlu2 %v1616_v9 }
 0x469   : > { %v1106_v47 = vpop.xlane.xlu0 %1105  ;;  %1623 = vadd.xlane.f32.xlu1 %v1622_v23 }
 0x46a   : > { %2834 = vrcp.f32 %v1106_v47 }
 0x46b   : > { %2836 = vpow2.f32 %v1606_v17 }
 0x46c   : > { %1620 = vadd.xlane.f32.xlu0 %v1619_v49 }
 0x470   : > { %1626 = vadd.xlane.f32.xlu2 %v1625_v20  ;;  %v2835_v7 = vpop.eup %2834 }
 0x471   : > { %v1109_v21 = vpop.xlane.xlu0 %1108  ;;  %v3827_v29 = vpop.eup %2836  ;;  %v1132_v13 = vmul.f32 %v2835_v7, %v3702_v55 }
 0x472   : > { %2838 = vrcp.f32 %v1109_v21  ;;  %v1628_v27 = vsel %vm303_vm0, %v3827_v29, 0.0 }
 0x473   : > { %2840 = vpow2.f32 %v1608_v40  ;;  %v1140_v15 = vpack.c.bf16 %v1132_v13, %v1132_v13 }
 0x475   : > { %v1152_v35 = vunpack.c.l.b16 %v1140_v15 }
 0x478   : > { %v2839_v31 = vpop.eup %2838  ;;  %1629 = vadd.xlane.f32.xlu2 %v1628_v27 }
 0x479   : > { %v1112_v51 = vpop.xlane.xlu0 %1111  ;;  %v1115_v14 = vpop.xlane.xlu1 %1114  ;;  %v1133_v34 = vmul.f32 %v2839_v31, %v3709_v11 }
 0x47a   : > { %2842 = vrcp.f32 %v1112_v51  ;;  %v3833_v42 = vpop.eup %2840 }
 0x47b   : > { %2844 = vrcp.f32 %v1115_v14  ;;  %v1141_v41 = vpack.c.bf16 %v1133_v34, %v1133_v34  ;;  %v1631_v55 = vsel %vm303_vm0, %v3833_v42, 0.0 }
 0x47d   : > { %v1153_v28 = vunpack.c.l.b16 %v1141_v41 }
 0x47f   : > { %v1155_v43 = vpack.c.b16 %v1153_v28, %v1152_v35 }
 0x480   : > { %v2843_v25 = vpop.eup %2842  ;;  %1711 = vrot.lane.b32.xlu0 %v3428_v12, %s3029_s8  ;;  %1632 = vadd.xlane.f32.xlu2 %v1631_v55 }
 0x481   : > { %v2845_v26 = vpop.eup %2844  ;;  %v1134_v11 = vmul.f32 %v2843_v25, %v3715_v46  ;;  %v1356_v45 = vpop.xlane.xlu0 %1355  ;;  %2513 = vmatmul.msk.bf16.gmra.mxu0 %vm303_vm0, %v1155_v43 }
 0x482   : > { %v1359_v3 = vpop.xlane.xlu1 %1358  ;;  %v1135_v52 = vmul.f32 %v2845_v26, %v3721_v54  ;;  %2846 = vrcp.f32 %v1356_v45  ;;  %1709 = vrot.lane.b32.xlu1 %v3432_v30, %s3029_s8  ;;  %v1118_v44 = vpop.xlane.xlu2 %1117 }
 0x483   : > { %v1142_v6 = vpack.c.bf16 %v1134_v11, %v1134_v11  ;;  %2848 = vrcp.f32 %v1359_v3 }
 0x484   : > { %v1143_v5 = vpack.c.bf16 %v1135_v52, %v1135_v52  ;;  %2850 = vrcp.f32 %v1118_v44 }
 0x485   : > { %v1191_v1 = vunpack.c.l.b16 %v1142_v6 }
 0x486   : > { %v1192_v53 = vunpack.c.l.b16 %v1143_v5 }
 0x488   : > { %v2847_v12 = vpop.eup %2846  ;;  %v1195_v4 = vpack.c.b16 %v1192_v53, %v1191_v1 }
 0x489   : > { %v2849_v56 = vpop.eup %2848  ;;  %v1386_v46 = vmul.f32 %v2847_v12, %v3728_v2 }
 0x48a   : > { %v1387_v59 = vmul.f32 %v2849_v56, %v3730_v0  ;;  %2514 = vmatmul.msk.bf16.vlgmr.msrb.gmra.mxu1 %vm303_vm0, %v1195_v4  ;;  %v2851_v0 = vpop.eup %2850 }
 0x48b   : > { %v1394_v54 = vpack.c.bf16 %v1386_v46, %v1386_v46  ;;  %v1136_v17 = vmul.f32 %v2851_v0, %v3732_v36 }
 0x48c   : > { %v1395_v61 = vpack.c.bf16 %v1387_v59, %v1387_v59 }
 0x48d   : > { %v1406_v60 = vunpack.c.l.b16 %v1394_v54  ;;  %v1144_v40 = vpack.c.bf16 %v1136_v17, %v1136_v17 }
 0x48e   : > { %v1407_v57 = vunpack.c.l.b16 %v1395_v61 }
 0x48f   : > { %v1193_v51 = vunpack.c.l.b16 %v1144_v40  ;;  %v3865_v40 = vpop.f32.mrf.mxu1 }
 0x490   : > { %v1410_v30 = vpack.c.b16 %v1407_v57, %v1406_v60 }
 0x491   : > { %v1365_v62 = vpop.xlane.xlu2 %1364 }
 0x492   : > { %2520 = vmatmul.msk.bf16.vlgmr.msra.gmra.mxu0 %vm303_vm0, %v1410_v30  ;;  %2852 = vrcp.f32 %v1365_v62 }
 0x494   : > { %v1454_v38 = vpop.permute.xlu0 %1453 }
 0x495   : > { %1472 = vmatpush.bf16.msra.mxu1 %v1454_v38 }
 0x498   : > { %v2853_v63 = vpop.eup %2852 }
 0x499   : > { %v1671_v9 = vpop.permute.xlu1 %1670  ;;  %v1389_v13 = vmul.f32 %v2853_v63, %v3746_v50 }
 0x49a   : > { %1686 = vmatpush.bf16.msrb.mxu0 %v1671_v9  ;;  %v1371_v23 = vpop.xlane.xlu2 %1370 }
 0x49b   : > { %v1397_v36 = vpack.c.bf16 %v1389_v13, %v1389_v13 }
 0x49d   : > { %v1409_v50 = vunpack.c.l.b16 %v1397_v36 }
 0x4a2   : > { %v1669_v47 = vpop.permute.xlu2 %1668 }
 0x4a3   : > { %1687 = vmatpush.bf16.msrb.mxu0 %v1669_v47 }
 0x4bf   : > { %v1121_v2 = vpop.xlane.xlu0 %1120 }
 0x4c0   : > { %2854 = vrcp.f32 %v1121_v2 }
 0x4c4   : > { %v1362_v49 = vpop.xlane.xlu1 %1361 }
 0x4c5   : > { %2856 = vrcp.f32 %v1362_v49 }
 0x4c6   : > { %v2855_v20 = vpop.eup %2854 }
 0x4c7   : > { %v1368_v21 = vpop.xlane.xlu0 %1367  ;;  %v1137_v7 = vmul.f32 %v2855_v20, %v3769_v48 }
 0x4c8   : > { %2858 = vrcp.f32 %v1368_v21 }
 0x4c9   : > { %v1145_v27 = vpack.c.bf16 %v1137_v7, %v1137_v7  ;;  %2860 = vrcp.f32 %v1371_v23 }
 0x4cb   : > { %v2857_v31 = vpop.eup %2856  ;;  %v1194_v14 = vunpack.c.l.b16 %v1145_v27 }
 0x4cc   : > { %v1612_v34 = vpop.xlane.xlu1 %1611  ;;  %v1388_v15 = vmul.f32 %v2857_v31, %v3774_v16 }
 0x4cd   : > { %v1196_v41 = vpack.c.b16 %v1194_v14, %v1193_v51  ;;  %2862 = vrcp.f32 %v1612_v34 }
 0x4ce   : > { %v2859_v35 = vpop.eup %2858  ;;  %v1396_v28 = vpack.c.bf16 %v1388_v15, %v1388_v15 }
 0x4cf   : > { %v1615_v55 = vpop.xlane.xlu0 %1614  ;;  %2515 = vmatmul.msk.bf16.gmra.mxu1 %vm303_vm0, %v1196_v41  ;;  %v2861_v48 = vpop.eup %2860  ;;  %v1390_v25 = vmul.f32 %v2859_v35, %v3778_v19 }
 0x4d0   : > { %2864 = vrcp.f32 %v1615_v55  ;;  %v1408_v43 = vunpack.c.l.b16 %v1396_v28  ;;  %v1391_v11 = vmul.f32 %v2861_v48, %v3753_v8  ;;  %v3871_v35 = vpop.f32.mrf.mxu1 }
 0x4d1   : > { %v1398_v45 = vpack.c.bf16 %v1390_v25, %v1390_v25 }
 0x4d2   : > { %v1411_v26 = vpack.c.b16 %v1409_v50, %v1408_v43  ;;  %v1399_v6 = vpack.c.bf16 %v1391_v11, %v1391_v11 }
 0x4d3   : > { %v2863_v16 = vpop.eup %2862  ;;  %v1447_v4 = vunpack.c.l.b16 %v1398_v45 }
 0x4d4   : > { %2521 = vmatmul.msk.bf16.gmra.mxu0 %vm303_vm0, %v1411_v26  ;;  %v1377_v52 = vpop.xlane.xlu1 %1376  ;;  %v1642_v12 = vmul.f32 %v2863_v16, %v3786_v33  ;;  %v1448_v19 = vunpack.c.l.b16 %v1399_v6 }
 0x4d6   : > { %v2865_v3 = vpop.eup %2864  ;;  %v1650_v8 = vpack.c.bf16 %v1642_v12, %v1642_v12  ;;  %v1451_v44 = vpack.c.b16 %v1448_v19, %v1447_v4 }
 0x4d7   : > { %v1643_v5 = vmul.f32 %v2865_v3, %v3790_v32  ;;  %v1374_v1 = vpop.xlane.xlu0 %1373  ;;  %v1177_v53 = vpop.f32.mrf.mxu0 }
 0x4d8   : > { %2866 = vrcp.f32 %v1374_v1  ;;  %v1662_v57 = vunpack.c.l.b16 %v1650_v8  ;;  %v3874_v26 = vpop.f32.mrf.mxu1 }
 0x4d9   : > { %v1651_v56 = vpack.c.bf16 %v1643_v5, %v1643_v5  ;;  %2868 = vrcp.f32 %v1377_v52 }
 0x4db   : > { %v1618_v46 = vpop.xlane.xlu2 %1617  ;;  %v1663_v54 = vunpack.c.l.b16 %v1651_v56 }
 0x4dc   : > { %2870 = vrcp.f32 %v1618_v46  ;;  %v1624_v0 = vpop.xlane.xlu1 %1623 }
 0x4dd   : > { %v1666_v62 = vpack.c.b16 %v1663_v54, %v1662_v57 }
 0x4de   : > { %v2867_v59 = vpop.eup %2866 }
 0x4df   : > { %v1621_v61 = vpop.xlane.xlu0 %1620  ;;  %v1179_v60 = vpop.f32.mrf.mxu0  ;;  %2522 = vmatmul.msk.bf16.vlgmr.msra.gmra.mxu1 %vm303_vm0, %v1451_v44  ;;  %v1392_v33 = vmul.f32 %v2867_v59, %v3801_v39 }
 0x4e0   : > { %v2869_v32 = vpop.eup %2868  ;;  %2872 = vrcp.f32 %v1621_v61  ;;  %v2672_v30 = vpack.i.bf16 %v1179_v60, %v1177_v53  ;;  %v3879_v1 = vpop.f32.mrf.mxu1 }
 0x4e1   : > { %v1393_v9 = vmul.f32 %v2869_v32, %v3798_v58  ;;  %v1400_v47 = vpack.c.bf16 %v1392_v33, %v1392_v33 }
 0x4e2   : > { %2673 = vrot.lane.b32.xlu0 %v2672_v30, %s3031_s17  ;;  %v2871_v23 = vpop.eup %2870 }
 0x4e3   : > { %v1627_v38 = vpop.xlane.xlu2 %1626  ;;  %v1401_v17 = vpack.c.bf16 %v1393_v9, %v1393_v9  ;;  %v1644_v63 = vmul.f32 %v2871_v23, %v3807_v10  ;;  %v1449_v39 = vunpack.c.l.b16 %v1400_v47 }
 0x4e4   : > { %2528 = vmatmul.msk.bf16.vlgmr.msrb.gmra.mxu0 %vm303_vm0, %v1666_v62  ;;  %2874 = vrcp.f32 %v1627_v38 }
 0x4e5   : > { %2876 = vrcp.f32 %v1624_v0  ;;  %v1450_v7 = vunpack.c.l.b16 %v1401_v17  ;;  %v1652_v58 = vpack.c.bf16 %v1644_v63, %v1644_v63  ;;  %v2599_v0 = vld [vmem:[%s4198_s2 + $0x8] sm:$0xff] }
 0x4e6   : > { %v2873_v2 = vpop.eup %2872  ;;  %1903 = vmatpush.bf16.msra.mxu2 %v2599_v0 }
 0x4e7   : > { %v1645_v49 = vmul.f32 %v2873_v2, %v3815_v22  ;;  %v1452_v13 = vpack.c.b16 %v1450_v7, %v1449_v39  ;;  %v1664_v14 = vunpack.c.l.b16 %v1652_v58 }
 0x4e8   : > { %v3882_v56 = vpop.f32.mrf.mxu1 }
 0x4e9   : > { %v1653_v20 = vpack.c.bf16 %v1645_v49, %v1645_v49  ;;  %v2598_v49 = vld [vmem:[%s4198_s2] sm:$0xff] }
 0x4ea   : > { %v2875_v27 = vpop.eup %2874  ;;  %1904 = vmatpush.bf16.msra.mxu2 %v2598_v49 }
 0x4eb   : > { %v1630_v21 = vpop.xlane.xlu2 %1629  ;;  %v1665_v31 = vunpack.c.l.b16 %v1653_v20  ;;  %v2877_v51 = vpop.eup %2876  ;;  %v1647_v22 = vmul.f32 %v2875_v27, %v3821_v18 }
 0x4ec   : > { %v1646_v10 = vmul.f32 %v2877_v51, %v3809_v37  ;;  %v2914_v51 = vld [vmem:[%s4201_s5 + $0x1] ss:$0 sm:$0xff] }
 0x4ed   : > { %v1667_v15 = vpack.c.b16 %v1665_v31, %v1664_v14  ;;  %v1655_v36 = vpack.c.bf16 %v1647_v22, %v1647_v22 }
 0x4ee   : > { %v1654_v55 = vpack.c.bf16 %v1646_v10, %v1646_v10 }
 0x4ef   : > { %2523 = vmatmul.msk.bf16.gmra.mxu1 %vm303_vm0, %v1452_v13  ;;  %v1704_v48 = vunpack.c.l.b16 %v1655_v36 }
 0x4f0   : > { %v1703_v43 = vunpack.c.l.b16 %v1654_v55 }
 0x4f2   : > { %v1712_v34 = vpop.permute.xlu0 %1711  ;;  %v1707_v50 = vpack.c.b16 %v1704_v48, %v1703_v43 }
 0x4f3   : > { %1727 = vmatpush.bf16.msrb.mxu1 %v1712_v34  ;;  %v1633_v41 = vpop.xlane.xlu2 %1632 }
 0x4f4   : > { %2529 = vmatmul.msk.bf16.gmra.mxu0 %vm303_vm0, %v1667_v15  ;;  %v1710_v28 = vpop.permute.xlu1 %1709  ;;  %2878 = vrcp.f32 %v1633_v41 }
 0x4f5   : > { %2880 = vrcp.f32 %v1630_v21 }
 0x4f7   : > { %1728 = vmatpush.bf16.msrb.mxu1 %v1710_v28 }
 0x4fa   : > { %v2879_v18 = vpop.eup %2878 }
 0x4fb   : > { %v2881_v37 = vpop.eup %2880  ;;  %v1649_v11 = vmul.f32 %v2879_v18, %v3833_v42 }
 0x4fc   : > { %v1648_v16 = vmul.f32 %v2881_v37, %v3827_v29  ;;  %v3885_v29 = vpop.f32.mrf.mxu1 }
 0x4fd   : > { %v1657_v45 = vpack.c.bf16 %v1649_v11, %v1649_v11 }
 0x4fe   : > { %v1182_v25 = vpop.f32.mrf.mxu0  ;;  %v1656_v52 = vpack.c.bf16 %v1648_v16, %v1648_v16 }
 0x4ff   : > { %2530 = vmatmul.msk.bf16.vlgmr.msrb.gmra.mxu1 %vm303_vm0, %v1707_v50  ;;  %v1706_v5 = vunpack.c.l.b16 %v1657_v45 }
 0x500   : > { %v1705_v53 = vunpack.c.l.b16 %v1656_v52 }
 0x502   : > { %v1708_v12 = vpack.c.b16 %v1706_v5, %v1705_v53 }
 0x504   : > { %v3887_v46 = vpop.f32.mrf.mxu1 }
 0x506   : > { %v1184_v3 = vpop.f32.mrf.mxu0 }
 0x507   : > { %v2687_v6 = vpack.i.bf16 %v1184_v3, %v1182_v25 }
 0x509   : > { %2688 = vrot.lane.b32.xlu0 %v2687_v6, %s3031_s17 }
 0x50c   : > { %v3889_v8 = vpop.f32.mrf.mxu1 }
 0x50f   : > { %v1433_v4 = vpop.f32.mrf.mxu0  ;;  %2531 = vmatmul.msk.bf16.gmra.mxu1 %vm303_vm0, %v1708_v12 }
 0x514   : > { %v1218_v44 = vpop.f32.mrf.mxu1 }
 0x517   : > { %v1435_v19 = vpop.f32.mrf.mxu0 }
 0x518   : > { %v2677_v42 = vpack.i.bf16 %v1435_v19, %v1433_v4 }
 0x51a   : > { %2678 = vrot.lane.b32.xlu2 %v2677_v42, %s3032_s19 }
 0x51c   : > { %v1220_v59 = vpop.f32.mrf.mxu1 }
 0x51d   : > { %v2702_v63 = vpack.i.bf16 %v1220_v59, %v1218_v44 }
 0x54c   : > { %v1223_v54 = vpop.f32.mrf.mxu1 }
 0x551   : > { %v1438_v61 = vpop.f32.mrf.mxu0 }
 0x554   : > { %v1225_v60 = vpop.f32.mrf.mxu1  ;;  %v2674_v34 = vpop.permute.xlu0 %2673 }
 0x555   : > { %v2717_v21 = vpack.i.bf16 %v1225_v60, %v1223_v54  ;;  %v2676_v10 = vunpack.i.h.bf16 %v2674_v34  ;;  %v2675_v36 = vunpack.i.l.bf16 %v2674_v34 }
 0x557   : > { %v1837_v48 = vsel %vm699_vm11, %v3871_v35, %v2676_v10  ;;  %v1836_v43 = vsel %vm699_vm11, %v3865_v40, %v2675_v36 }
 0x559   : > { %v1440_v32 = vpop.f32.mrf.mxu0 }
 0x55a   : > { %v2692_v47 = vpack.i.bf16 %v1440_v32, %v1438_v61 }
 0x55c   : > { %v1474_v57 = vpop.f32.mrf.mxu1 }
 0x561   : > { %v1689_v30 = vpop.f32.mrf.mxu0 }
 0x564   : > { %v1476_v33 = vpop.f32.mrf.mxu1 }
 0x565   : > { %v2707_v7 = vpack.i.bf16 %v1476_v33, %v1474_v57 }
 0x569   : > { %v1691_v62 = vpop.f32.mrf.mxu0 }
 0x56a   : > { %v2682_v38 = vpack.i.bf16 %v1691_v62, %v1689_v30 }
 0x56c   : > { %v1479_v9 = vpop.f32.mrf.mxu1  ;;  %2683 = vrot.lane.b32.xlu1 %v2682_v38, %s3033_s20 }
 0x571   : > { %v1694_v23 = vpop.f32.mrf.mxu0 }
 0x574   : > { %v1481_v2 = vpop.f32.mrf.mxu1  ;;  %2693 = vrot.lane.b32.xlu1 %v2692_v47, %s3032_s19  ;;  %v2679_v15 = vpop.permute.xlu2 %2678 }
 0x575   : > { %v2722_v27 = vpack.i.bf16 %v1481_v2, %v1479_v9  ;;  %v2681_v41 = vunpack.i.h.bf16 %v2679_v15  ;;  %v2680_v28 = vunpack.i.l.bf16 %v2679_v15 }
 0x577   : > { %v1846_v25 = vsel %vm1844_vm1, %v1837_v48, %v2681_v41  ;;  %v1845_v37 = vsel %vm1844_vm1, %v1836_v43, %v2680_v28  ;;  %v2915_v28 = vld [vmem:[%s3163_s12] sm:$0xff] }
 0x579   : > { %v1696_v17 = vpop.f32.mrf.mxu0 }
 0x57a   : > { %v2697_v39 = vpack.i.bf16 %v1696_v17, %v1694_v23 }
 0x57b   : > { %v2689_v3 = vpop.permute.xlu0 %2688 }
 0x57c   : > { %2703 = vrot.lane.b32.xlu1 %v2702_v63, %s3031_s17  ;;  %2698 = vrot.lane.b32.xlu0 %v2697_v39, %s3033_s20  ;;  %v1730_v20 = vpop.f32.mrf.mxu1  ;;  %v2691_v6 = vunpack.i.h.bf16 %v2689_v3  ;;  %v2690_v35 = vunpack.i.l.bf16 %v2689_v3 }
 0x57e   : > { %v1839_v12 = vsel %vm699_vm11, %v3879_v1, %v2691_v6  ;;  %v1838_v4 = vsel %vm699_vm11, %v3874_v26, %v2690_v35  ;;  %v2918_v35 = vld [vmem:[%s3163_s12 + $0x18] sm:$0xff] }
 0x584   : > { %2718 = vrot.lane.b32.xlu1 %v2717_v21, %s3031_s17  ;;  %2708 = vrot.lane.b32.xlu0 %v2707_v7, %s3032_s19  ;;  %v1732_v58 = vpop.f32.mrf.mxu1 }
 0x585   : > { %v2712_v13 = vpack.i.bf16 %v1732_v58, %v1730_v20 }
 0x587   : > { %2713 = vrot.lane.b32.xlu2 %v2712_v13, %s3033_s20 }
 0x58c   : > { %2723 = vrot.lane.b32.xlu0 %v2722_v27, %s3032_s19  ;;  %v1735_v31 = vpop.f32.mrf.mxu1  ;;  %1882 = vrot.lane.b32.xlu1 %v2914_v51, %s3034_s29 }
 0x594   : > { %v1737_v14 = vpop.f32.mrf.mxu1 }
 0x595   : > { %v2727_v22 = vpack.i.bf16 %v1737_v14, %v1735_v31 }
 0x597   : > { %2728 = vrot.lane.b32.xlu2 %v2727_v22, %s3033_s20 }
 0x5de   : > { %v2684_v55 = vpop.permute.xlu1 %2683 }
 0x5df   : > { %v2686_v50 = vunpack.i.h.bf16 %v2684_v55  ;;  %v2685_v18 = vunpack.i.l.bf16 %v2684_v55 }
 0x5e1   : > { %v1854_v11 = vsel %vm1853_vm2, %v1845_v37, %v2685_v18  ;;  %v1855_v16 = vsel %vm1853_vm2, %v1846_v25, %v2686_v50  ;;  %v2714_v26 = vpop.permute.xlu2 %2713  ;;  %v2916_v50 = vld [vmem:[%s3163_s12 + $0x8] sm:$0xff] }
 0x5e2   : > { %v1862_v45 = vpack.c.bf16 %v1855_v16, %v1854_v11  ;;  %v2716_v2 = vunpack.i.h.bf16 %v2714_v26  ;;  %v2715_v0 = vunpack.i.l.bf16 %v2714_v26  ;;  %v2917_v16 = vld [vmem:[%s3163_s12 + $0x10] sm:$0xff] }
 0x5e4   : > { %2540 = vmatmul.msk.bf16.vlgmr.msra.gmra.mxu2 %vm303_vm0, %v1862_v45 }
 0x5e6   : > { %v2694_v52 = vpop.permute.xlu1 %2693 }
 0x5e7   : > { %v2696_v5 = vunpack.i.h.bf16 %v2694_v52  ;;  %v2695_v53 = vunpack.i.l.bf16 %v2694_v52 }
 0x5e9   : > { %v1848_v44 = vsel %vm1844_vm1, %v1839_v12, %v2696_v5  ;;  %v1847_v59 = vsel %vm1844_vm1, %v1838_v4, %v2695_v53  ;;  %v2919_v4 = vld [vmem:[%s3163_s12 + $0x20] sm:$0xff] }
 0x5ee   : > { %v2699_v40 = vpop.permute.xlu0 %2698  ;;  %v2704_v32 = vpop.permute.xlu1 %2703 }
 0x5ef   : > { %v2701_v19 = vunpack.i.h.bf16 %v2699_v40  ;;  %v2700_v42 = vunpack.i.l.bf16 %v2699_v40  ;;  %v2706_v30 = vunpack.i.h.bf16 %v2704_v32  ;;  %v2705_v1 = vunpack.i.l.bf16 %v2704_v32 }
 0x5f1   : > { %v1856_v54 = vsel %vm1853_vm2, %v1847_v59, %v2700_v42  ;;  %v1857_v61 = vsel %vm1853_vm2, %v1848_v44, %v2701_v19  ;;  %v1841_v38 = vsel %vm699_vm11, %v3885_v29, %v2706_v30  ;;  %v1840_v9 = vsel %vm699_vm11, %v3882_v56, %v2705_v1  ;;  %v2729_v58 = vpop.permute.xlu2 %2728  ;;  %v2921_v30 = vld [vmem:[%s3163_s12 + $0x30] sm:$0xff] }
 0x5f2   : > { %v1863_v60 = vpack.c.bf16 %v1857_v61, %v1856_v54  ;;  %v2731_v14 = vunpack.i.h.bf16 %v2729_v58  ;;  %v2730_v22 = vunpack.i.l.bf16 %v2729_v58  ;;  %v2920_v54 = vld [vmem:[%s3163_s12 + $0x28] sm:$0xff] }
 0x5f4   : > { %2541 = vmatmul.msk.bf16.gmra.mxu2 %vm303_vm0, %v1863_v60 }
 0x5f6   : > { %v2709_v57 = vpop.permute.xlu0 %2708  ;;  %v2719_v39 = vpop.permute.xlu1 %2718 }
 0x5f7   : > { %v2711_v33 = vunpack.i.h.bf16 %v2709_v57  ;;  %v2710_v62 = vunpack.i.l.bf16 %v2709_v57  ;;  %v2721_v21 = vunpack.i.h.bf16 %v2719_v39  ;;  %v2720_v29 = vunpack.i.l.bf16 %v2719_v39 }
 0x5f9   : > { %v1850_v23 = vsel %vm1844_vm1, %v1841_v38, %v2711_v33  ;;  %v1849_v47 = vsel %vm1844_vm1, %v1840_v9, %v2710_v62  ;;  %v1843_v13 = vsel %vm699_vm11, %v3889_v8, %v2721_v21  ;;  %v1842_v27 = vsel %vm699_vm11, %v3887_v46, %v2720_v29  ;;  %v2922_v38 = vld [vmem:[%s3163_s12 + $0x38] sm:$0xff]  ;;  %s2974_s12 = scalar_lea.hbm %s4202_s6, 128 }
 0x5fa   : > { %v1858_v17 = vsel %vm1853_vm2, %v1849_v47, %v2715_v0  ;;  %v1859_v49 = vsel %vm1853_vm2, %v1850_v23, %v2716_v2 }
 0x5fb   : > { %v1864_v63 = vpack.c.bf16 %v1859_v49, %v1858_v17 }
 0x5fe   : > { %v2724_v20 = vpop.permute.xlu0 %2723  ;;  %v1883_v36 = vpop.permute.xlu1 %1882 }
 0x5ff   : > { %v2726_v7 = vunpack.i.h.bf16 %v2724_v20  ;;  %v2725_v56 = vunpack.i.l.bf16 %v2724_v20 }
 0x601   : > { %v1852_v31 = vsel %vm1844_vm1, %v1843_v13, %v2726_v7  ;;  %v1851_v51 = vsel %vm1844_vm1, %v1842_v27, %v2725_v56 }
 0x602   : > { %v1860_v34 = vsel %vm1853_vm2, %v1851_v51, %v2730_v22  ;;  %v1861_v15 = vsel %vm1853_vm2, %v1852_v31, %v2731_v14  ;;  %v2923_v22 = vld [vmem:[%s4201_s5] ss:$0 sm:$0xff] }
 0x603   : > { %v1865_v10 = vpack.c.bf16 %v1861_v15, %v1860_v34 }
 0x604   : > { %2542 = vmatmul.msk.bf16.gmra.mxu2 %vm303_vm0, %v1864_v63 }
 0x614   : > { %2543 = vmatmul.msk.bf16.gmra.mxu2 %vm303_vm0, %v1865_v10 }
 0x667   : > { %v1906_v8 = vpop.f32.mrf.mxu2 }
 0x668   : > { %v1907_v41 = vadd.f32 %v1906_v8, %v1883_v36 }
 0x66a   : > { %v3947_v46 = vadd.f32 %v2915_v28, %v1907_v41 }
 0x66c   : > { %v1934_v55 = vsel %vm303_vm0, %v3947_v46, 0.0 }
 0x66d   : > { %1935 = vadd.xlane.f32.xlu0 %v1934_v55 }
 0x66f   : > { %v1908_v48 = vpop.f32.mrf.mxu2 }
 0x670   : > { %v1909_v43 = vadd.f32 %v1908_v48, %v1883_v36 }
 0x672   : > { %v3952_v18 = vadd.f32 %v2916_v50, %v1909_v43 }
 0x674   : > { %v1937_v25 = vsel %vm303_vm0, %v3952_v18, 0.0 }
 0x675   : > { %1938 = vadd.xlane.f32.xlu2 %v1937_v25 }
 0x677   : > { %v1911_v37 = vpop.f32.mrf.mxu2 }
 0x678   : > { %v1912_v11 = vadd.f32 %v1911_v37, %v1883_v36 }
 0x67a   : > { %v3957_v45 = vadd.f32 %v2917_v16, %v1912_v11 }
 0x67c   : > { %v1940_v3 = vsel %vm303_vm0, %v3957_v45, 0.0 }
 0x67d   : > { %1941 = vadd.xlane.f32.xlu1 %v1940_v3 }
 0x67f   : > { %v1913_v52 = vpop.f32.mrf.mxu2 }
 0x680   : > { %v1914_v6 = vadd.f32 %v1913_v52, %v1883_v36 }
 0x682   : > { %v3962_v5 = vadd.f32 %v2918_v35, %v1914_v6 }
 0x684   : > { %v1943_v53 = vsel %vm303_vm0, %v3962_v5, 0.0 }
 0x685   : > { %1944 = vadd.xlane.f32.xlu0 %v1943_v53 }
 0x687   : > { %v1916_v40 = vpop.f32.mrf.mxu2 }
 0x688   : > { %v1917_v12 = vadd.f32 %v1916_v40, %v1883_v36 }
 0x68a   : > { %v3967_v19 = vadd.f32 %v2919_v4, %v1917_v12  ;;  %v2601_v4 = vld [vmem:[%s4199_s3 + $0x8] sm:$0xff] }
 0x68b   : > { %2171 = vmatpush.bf16.msrb.mxu3 %v2601_v4 }
 0x68c   : > { %v1946_v42 = vsel %vm303_vm0, %v3967_v19, 0.0 }
 0x68d   : > { %1947 = vadd.xlane.f32.xlu2 %v1946_v42 }
 0x68f   : > { %v1918_v44 = vpop.f32.mrf.mxu2 }
 0x690   : > { %v1919_v59 = vadd.f32 %v1918_v44, %v1883_v36 }
 0x692   : > { %v3972_v61 = vadd.f32 %v2920_v54, %v1919_v59  ;;  %v2600_v54 = vld [vmem:[%s4199_s3] sm:$0xff] }
 0x693   : > { %2172 = vmatpush.bf16.msrb.mxu3 %v2600_v54 }
 0x694   : > { %v1949_v60 = vsel %vm303_vm0, %v3972_v61, 0.0 }
 0x695   : > { %1950 = vadd.xlane.f32.xlu1 %v1949_v60 }
 0x697   : > { %v1921_v32 = vpop.f32.mrf.mxu2 }
 0x698   : > { %v1922_v57 = vadd.f32 %v1921_v32, %v1883_v36 }
 0x69a   : > { %v3977_v1 = vadd.f32 %v2921_v30, %v1922_v57 }
 0x69c   : > { %v1952_v33 = vsel %vm303_vm0, %v3977_v1, 0.0 }
 0x69d   : > { %1953 = vadd.xlane.f32.xlu1 %v1952_v33 }
 0x69f   : > { %v1923_v62 = vpop.f32.mrf.mxu2 }
 0x6a0   : > { %v1924_v26 = vadd.f32 %v1923_v62, %v1883_v36 }
 0x6a2   : > { %v3982_v9 = vadd.f32 %v2922_v38, %v1924_v26 }
 0x6a4   : > { %v1955_v23 = vsel %vm303_vm0, %v3982_v9, 0.0 }
 0x6a5   : > { %1956 = vadd.xlane.f32.xlu0 %v1955_v23 }
 0x6e0   : > { %v1936_v47 = vpop.xlane.xlu0 %1935 }
 0x6e1   : > { %v1958_v2 = vmul.f32 %v1936_v47, %v3200_v24 }
 0x6e3   : > { %v3988_v0 = vsub.f32 %v3947_v46, %v1958_v2 }
 0x6e5   : > { %v1974_v17 = vmul.f32 %v3988_v0, %v3988_v0 }
 0x6e7   : > { %v1982_v49 = vsel %vm303_vm0, %v1974_v17, 0.0 }
 0x6e8   : > { %v1939_v63 = vpop.xlane.xlu2 %1938  ;;  %1983 = vadd.xlane.f32.xlu0 %v1982_v49 }
 0x6e9   : > { %v1959_v39 = vmul.f32 %v1939_v63, %v3200_v24 }
 0x6eb   : > { %v3995_v20 = vsub.f32 %v3952_v18, %v1959_v39 }
 0x6ed   : > { %v1975_v21 = vmul.f32 %v3995_v20, %v3995_v20 }
 0x6ef   : > { %v1985_v29 = vsel %vm303_vm0, %v1975_v21, 0.0 }
 0x6f0   : > { %v1942_v7 = vpop.xlane.xlu1 %1941  ;;  %1986 = vadd.xlane.f32.xlu2 %v1985_v29 }
 0x6f1   : > { %v1960_v56 = vmul.f32 %v1942_v7, %v3200_v24 }
 0x6f3   : > { %v4002_v58 = vsub.f32 %v3957_v45, %v1960_v56 }
 0x6f5   : > { %v1976_v13 = vmul.f32 %v4002_v58, %v4002_v58 }
 0x6f7   : > { %v1988_v27 = vsel %vm303_vm0, %v1976_v13, 0.0 }
 0x6f8   : > { %1989 = vadd.xlane.f32.xlu2 %v1988_v27  ;;  %v1945_v31 = vpop.xlane.xlu0 %1944 }
 0x6f9   : > { %v1961_v51 = vmul.f32 %v1945_v31, %v3200_v24 }
 0x6fb   : > { %v4009_v14 = vsub.f32 %v3962_v5, %v1961_v51 }
 0x6fc   : > { %2110 = vrot.lane.b32.xlu0 %v2923_v22, %s3026_s14  ;;  %s4136_s14 = scalar_lea.vmem [#allocation5], %s2478_s28  ;;  %s2611_s28 = sshll.u32 %s3092_s25, 6 }
 0x6fd   : > { %v1977_v34 = vmul.f32 %v4009_v14, %v4009_v14  ;;  %s2393_s26 = scalar_lea.hbm %s4202_s6, %s2611_s28  ;;  %s2394_s13 = sshll.u32 %s4136_s14, 4  ;;  %s2395_s13 = int_to_ptr.vmem [resolvable:$true] %s2394_s13 }
 0x6fe   : > { %s2396_s7 = sshll.u32 %s2393_s26, 4  ;;  %s2381_s25 = scalar_lea.sflag [#allocation4], %s3157_s18  ;;  %s2397_s7 = int_to_ptr.hbm [resolvable:$true] %s2396_s7 }
 0x6ff   : > { %v1991_v15 = vsel %vm303_vm0, %v1977_v34, 0.0  ;;  %s2968_s15 = sshra.s32 %s2397_s7, 4  ;;  %s2969_s15 = int_to_ptr.hbm [resolvable:$true] %s2968_s15 }
 0x700   : > { %v1948_v10 = vpop.xlane.xlu2 %1947  ;;  %1992 = vadd.xlane.f32.xlu1 %v1991_v15  ;;  %s2970_s11 = scalar_lea.hbm %s2969_s15, 64  ;;  %p2975_p0 = scmp.lt.s32.totalorder %s2969_s15, %s4202_s6 }
 0x701   : > { %v1962_v36 = vmul.f32 %v1948_v10, %v3200_v24  ;;  %p2971_p6 = scmp.ne.s32.totalorder %s2969_s15, %s2970_s11  ;;  %p2976_p1 = scmp.lt.s32.totalorder %s2974_s12, %s2970_s11 }
 0x703   : > { %v4020_v8 = vsub.f32 %v3967_v19, %v1962_v36  ;;  %p2972_p9 = pnand %p2971_p6, %p3121_p11  ;;  %p2977_p3 = por %p2976_p1, %p2975_p0 }
 0x705   : > { %v1978_v41 = vmul.f32 %v4020_v8, %v4020_v8  ;;  %p2973_p13 = pneg %p2972_p9 }
 0x707   : > { %v1994_v28 = vsel %vm303_vm0, %v1978_v41, 0.0  ;;  %p2978_p4 = pnand %p2977_p3, %p2973_p13 }
 0x708   : > { %v1951_v55 = vpop.xlane.xlu1 %1950  ;;  %1995 = vadd.xlane.f32.xlu1 %v1994_v28 }
 0x709   : > { %v1963_v48 = vmul.f32 %v1951_v55, %v3200_v24 }
 0x70b   : > { %v4027_v43 = vsub.f32 %v3972_v61, %v1963_v48 }
 0x70d   : > { %v1979_v50 = vmul.f32 %v4027_v43, %v4027_v43 }
 0x70f   : > { %v1997_v25 = vsel %vm303_vm0, %v1979_v50, 0.0 }
 0x710   : > { %1998 = vadd.xlane.f32.xlu1 %v1997_v25  ;;  %2121 = vrot.lane.b32.xlu2 %v2923_v22, %s3034_s29  ;;  %v1954_v37 = vpop.xlane.xlu1 %1953 }
 0x711   : > { %v1964_v16 = vmul.f32 %v1954_v37, %v3200_v24 }
 0x713   : > { %v4039_v6 = vsub.f32 %v3977_v1, %v1964_v16 }
 0x715   : > { %v1980_v40 = vmul.f32 %v4039_v6, %v4039_v6 }
 0x717   : > { %v2000_v12 = vsel %vm303_vm0, %v1980_v40, 0.0 }
 0x718   : > { %v1957_v11 = vpop.xlane.xlu0 %1956 }
 0x719   : > { %v1965_v3 = vmul.f32 %v1957_v11, %v3200_v24 }
 0x71b   : > { %v4036_v52 = vsub.f32 %v3982_v9, %v1965_v3 }
 0x71d   : > { %v1981_v35 = vmul.f32 %v4036_v52, %v4036_v52 }
 0x71f   : > { %v2003_v53 = vsel %vm303_vm0, %v1981_v35, 0.0 }
 0x720   : > { %2004 = vadd.xlane.f32.xlu1 %v2003_v53 }
 0x726   : > { %2001 = vadd.xlane.f32.xlu0 %v2000_v12 }
 0x75b   : > { %v1984_v42 = vpop.xlane.xlu0 %1983 }
 0x75c   : > { %v2006_v44 = vmul.f32 %v1984_v42, %v3200_v24 }
 0x75e   : > { %v2014_v59 = vadd.f32 1e-05, %v2006_v44 }
 0x760   : > { %2882 = vrsqrt.f32 %v2014_v59  ;;  %vm2028_vm4 = vweird.f32 %v2014_v59 }
 0x763   : > { %v1987_v60 = vpop.xlane.xlu2 %1986 }
 0x764   : > { %v2007_v32 = vmul.f32 %v1987_v60, %v3200_v24 }
 0x766   : > { %v2883_v57 = vpop.eup %2882  ;;  %v2015_v30 = vadd.f32 1e-05, %v2007_v32 }
 0x767   : > { %v2023_v33 = vmul.f32 %v2883_v57, %v2014_v59  ;;  %vm2029_vm3 = vweird.f32 %v2883_v57 }
 0x768   : > { %2884 = vrsqrt.f32 %v2015_v30  ;;  %vm2030_vm5 = vmor %vm2028_vm4, %vm2029_vm3  ;;  %vm2038_vm7 = vweird.f32 %v2015_v30 }
 0x769   : > { %v2024_v62 = vmul.f32 %v2883_v57, %v2023_v33 }
 0x76b   : > { %v2025_v26 = vmul.f32 0.5, %v2024_v62  ;;  %v1990_v38 = vpop.xlane.xlu2 %1989 }
 0x76c   : > { %v2008_v23 = vmul.f32 %v1990_v38, %v3200_v24 }
 0x76d   : > { %v2026_v47 = vsub.f32 1.5, %v2025_v26 }
 0x76e   : > { %v2885_v2 = vpop.eup %2884  ;;  %v2016_v17 = vadd.f32 1e-05, %v2008_v23  ;;  %v4058_v36 = vpop.permute.xlu0 %2110 }
 0x76f   : > { %v2027_v49 = vmul.f32 %v2883_v57, %v2026_v47  ;;  %v2033_v63 = vmul.f32 %v2885_v2, %v2015_v30  ;;  %vm2039_vm6 = vweird.f32 %v2885_v2 }
 0x770   : > { %2886 = vrsqrt.f32 %v2016_v17  ;;  %vm2040_vm8 = vmor %vm2038_vm7, %vm2039_vm6  ;;  %vm2048_vm10 = vweird.f32 %v2016_v17 }
 0x771   : > { %v2034_v39 = vmul.f32 %v2885_v2, %v2033_v63  ;;  %v2031_v21 = vsel %vm2030_vm5, %v2883_v57, %v2027_v49 }
 0x772   : > { %v2102_v31 = vmul.f32 %v2031_v21, %v3988_v0 }
 0x773   : > { %v2035_v29 = vmul.f32 0.5, %v2034_v39  ;;  %v1993_v7 = vpop.xlane.xlu1 %1992  ;;  %v4062_v48 = vpop.permute.xlu2 %2121 }
 0x774   : > { %v2009_v56 = vmul.f32 %v1993_v7, %v3200_v24  ;;  %v2113_v28 = vmul.f32 %v4058_v36, %v2102_v31 }
 0x775   : > { %v2036_v13 = vsub.f32 1.5, %v2035_v29 }
 0x776   : > { %v2887_v27 = vpop.eup %2886  ;;  %v2017_v51 = vadd.f32 1e-05, %v2009_v56  ;;  %v2124_v3 = vadd.f32 %v4062_v48, %v2113_v28 }
 0x777   : > { %v2037_v22 = vmul.f32 %v2885_v2, %v2036_v13  ;;  %v2043_v34 = vmul.f32 %v2887_v27, %v2016_v17  ;;  %vm2049_vm9 = vweird.f32 %v2887_v27 }
 0x778   : > { %2888 = vrsqrt.f32 %v2017_v51  ;;  %vm2050_vm11 = vmor %vm2048_vm10, %vm2049_vm9  ;;  %vm2058_vm13 = vweird.f32 %v2017_v51 }
 0x779   : > { %v2041_v15 = vsel %vm2040_vm8, %v2885_v2, %v2037_v22  ;;  %v2044_v10 = vmul.f32 %v2887_v27, %v2043_v34 }
 0x77a   : > { %v2103_v41 = vmul.f32 %v2041_v15, %v3995_v20 }
 0x77b   : > { %v2045_v55 = vmul.f32 0.5, %v2044_v10  ;;  %v1996_v50 = vpop.xlane.xlu1 %1995 }
 0x77c   : > { %v2010_v0 = vmul.f32 %v1996_v50, %v3200_v24  ;;  %v2114_v25 = vmul.f32 %v4058_v36, %v2103_v41 }
 0x77d   : > { %v2046_v37 = vsub.f32 1.5, %v2045_v55 }
 0x77e   : > { %v2889_v11 = vpop.eup %2888  ;;  %v2018_v16 = vadd.f32 1e-05, %v2010_v0  ;;  %v2125_v35 = vadd.f32 %v4062_v48, %v2114_v25 }
 0x77f   : > { %v2047_v53 = vmul.f32 %v2887_v27, %v2046_v37  ;;  %v2053_v20 = vmul.f32 %v2889_v11, %v2017_v51  ;;  %vm2059_vm12 = vweird.f32 %v2889_v11 }
 0x780   : > { %2890 = vrsqrt.f32 %v2018_v16  ;;  %v2132_v40 = vpack.c.bf16 %v2125_v35, %v2124_v3  ;;  %vm2060_vm14 = vmor %vm2058_vm13, %vm2059_vm12  ;;  %vm2068_vm1 = vweird.f32 %v2018_v16 }
 0x781   : > { %v2054_v12 = vmul.f32 %v2889_v11, %v2053_v20  ;;  %v2051_v4 = vsel %vm2050_vm11, %v2887_v27, %v2047_v53 }
 0x782   : > { %2552 = vmatmul.msk.bf16.vlgmr.msrb.gmra.mxu3 %vm303_vm0, %v2132_v40  ;;  %v2104_v32 = vmul.f32 %v2051_v4, %v4002_v58 }
 0x783   : > { %v2055_v42 = vmul.f32 0.5, %v2054_v12  ;;  %v1999_v44 = vpop.xlane.xlu1 %1998 }
 0x784   : > { %v2011_v59 = vmul.f32 %v1999_v44, %v3200_v24  ;;  %v2115_v23 = vmul.f32 %v4058_v36, %v2104_v32 }
 0x785   : > { %v2056_v54 = vsub.f32 1.5, %v2055_v42 }
 0x786   : > { %v2891_v60 = vpop.eup %2890  ;;  %v2019_v57 = vadd.f32 1e-05, %v2011_v59  ;;  %v2126_v63 = vadd.f32 %v4062_v48, %v2115_v23  ;;  %v2603_v23 = vld [vmem:[%s4200_s4 + $0x8] sm:$0xff] }
 0x787   : > { %v2057_v30 = vmul.f32 %v2889_v11, %v2056_v54  ;;  %v2063_v33 = vmul.f32 %v2891_v60, %v2018_v16  ;;  %vm2069_vm15 = vweird.f32 %v2891_v60 }
 0x788   : > { %2892 = vrsqrt.f32 %v2019_v57  ;;  %vm2070_vm2 = vmor %vm2068_vm1, %vm2069_vm15  ;;  %vm2078_vm4 = vweird.f32 %v2019_v57 }
 0x789   : > { %v2061_v62 = vsel %vm2060_vm14, %v2889_v11, %v2057_v30  ;;  %v2064_v26 = vmul.f32 %v2891_v60, %v2063_v33 }
 0x78a   : > { %v2105_v38 = vmul.f32 %v2061_v62, %v4009_v14 }
 0x78b   : > { %v2065_v47 = vmul.f32 0.5, %v2064_v26  ;;  %v2605_v26 = vld [vmem:[%s4200_s4 + $0x18] sm:$0xff] }
 0x78c   : > { %v2116_v2 = vmul.f32 %v4058_v36, %v2105_v38  ;;  %v2604_v38 = vld [vmem:[%s4200_s4 + $0x10] sm:$0xff] }
 0x78d   : > { %v2066_v17 = vsub.f32 1.5, %v2065_v47  ;;  %v2602_v47 = vld [vmem:[%s4200_s4] sm:$0xff] }
 0x78e   : > { %v2893_v49 = vpop.eup %2892  ;;  %v2127_v58 = vadd.f32 %v4062_v48, %v2116_v2  ;;  %v4120_v2 = vld [vmem:[%s4201_s5 + $0x2] ss:$0 sm:$0xff] }
 0x78f   : > { %v2067_v39 = vmul.f32 %v2891_v60, %v2066_v17  ;;  %v2073_v21 = vmul.f32 %v2893_v49, %v2019_v57  ;;  %vm2079_vm3 = vweird.f32 %v2893_v49 }
 0x790   : > { %v2133_v29 = vpack.c.bf16 %v2127_v58, %v2126_v63  ;;  %vm2080_vm5 = vmor %vm2078_vm4, %vm2079_vm3 }
 0x791   : > { %v2074_v7 = vmul.f32 %v2893_v49, %v2073_v21  ;;  %v2071_v14 = vsel %vm2070_vm2, %v2891_v60, %v2067_v39 }
 0x792   : > { %2553 = vmatmul.msk.bf16.gmra.mxu3 %vm303_vm0, %v2133_v29  ;;  %v2106_v51 = vmul.f32 %v2071_v14, %v4020_v8 }
 0x793   : > { %v2075_v56 = vmul.f32 0.5, %v2074_v7  ;;  %v2005_v13 = vpop.xlane.xlu1 %2004 }
 0x794   : > { %v2013_v27 = vmul.f32 %v2005_v13, %v3200_v24  ;;  %v2117_v55 = vmul.f32 %v4058_v36, %v2106_v51 }
 0x795   : > { %v2076_v31 = vsub.f32 1.5, %v2075_v56 }
 0x796   : > { %v2021_v22 = vadd.f32 1e-05, %v2013_v27  ;;  %v2128_v8 = vadd.f32 %v4062_v48, %v2117_v55 }
 0x797   : > { %v2077_v34 = vmul.f32 %v2893_v49, %v2076_v31 }
 0x798   : > { %2894 = vrsqrt.f32 %v2021_v22  ;;  %vm2098_vm7 = vweird.f32 %v2021_v22 }
 0x799   : > { %v2081_v15 = vsel %vm2080_vm5, %v2893_v49, %v2077_v34  ;;  %v2002_v10 = vpop.xlane.xlu0 %2001 }
 0x79a   : > { %v2107_v41 = vmul.f32 %v2081_v15, %v4027_v43  ;;  %v2012_v28 = vmul.f32 %v2002_v10, %v3200_v24 }
 0x79c   : > { %v2020_v50 = vadd.f32 1e-05, %v2012_v28  ;;  %v2118_v0 = vmul.f32 %v4058_v36, %v2107_v41 }
 0x79e   : > { %v2895_v25 = vpop.eup %2894  ;;  %2896 = vrsqrt.f32 %v2020_v50  ;;  %v2129_v37 = vadd.f32 %v4062_v48, %v2118_v0  ;;  %vm2088_vm10 = vweird.f32 %v2020_v50 }
 0x79f   : > { %v2093_v11 = vmul.f32 %v2895_v25, %v2021_v22  ;;  %vm2099_vm6 = vweird.f32 %v2895_v25 }
 0x7a0   : > { %v2134_v16 = vpack.c.bf16 %v2129_v37, %v2128_v8  ;;  %vm2100_vm8 = vmor %vm2098_vm7, %vm2099_vm6 }
 0x7a1   : > { %v2094_v3 = vmul.f32 %v2895_v25, %v2093_v11 }
 0x7a2   : > { %2554 = vmatmul.msk.bf16.gmra.mxu3 %vm303_vm0, %v2134_v16 }
 0x7a3   : > { %v2095_v35 = vmul.f32 0.5, %v2094_v3 }
 0x7a4   : > { %v2897_v43 = vpop.eup %2896 }
 0x7a5   : > { %v2096_v53 = vsub.f32 1.5, %v2095_v35  ;;  %v2083_v24 = vmul.f32 %v2897_v43, %v2020_v50  ;;  %vm2089_vm9 = vweird.f32 %v2897_v43 }
 0x7a6   : > { %vm2090_vm11 = vmor %vm2088_vm10, %vm2089_vm9 }
 0x7a7   : > { %v2097_v20 = vmul.f32 %v2895_v25, %v2096_v53  ;;  %v2084_v40 = vmul.f32 %v2897_v43, %v2083_v24 }
 0x7a9   : > { %v2101_v12 = vsel %vm2100_vm8, %v2895_v25, %v2097_v20  ;;  %v2085_v4 = vmul.f32 0.5, %v2084_v40 }
 0x7aa   : > { %v2109_v44 = vmul.f32 %v2101_v12, %v4036_v52  ;;  %v2609_v52 = vld [vmem:[%s4200_s4 + $0x38] sm:$0xff] }
 0x7ab   : > { %v2086_v42 = vsub.f32 1.5, %v2085_v4  ;;  %2335 = vmatpush.bf16.msra.mxu0 %v2609_v52 }
 0x7ac   : > { %v2120_v32 = vmul.f32 %v4058_v36, %v2109_v44 }
 0x7ad   : > { %v2087_v59 = vmul.f32 %v2897_v43, %v2086_v42 }
 0x7ae   : > { %v2131_v33 = vadd.f32 %v4062_v48, %v2120_v32 }
 0x7af   : > { %v2091_v54 = vsel %vm2090_vm11, %v2897_v43, %v2087_v59 }
 0x7b0   : > { %v2108_v60 = vmul.f32 %v2091_v54, %v4039_v6  ;;  %v2608_v6 = vld [vmem:[%s4200_s4 + $0x30] sm:$0xff] }
 0x7b1   : > { %2336 = vmatpush.bf16.msra.mxu0 %v2608_v6 }
 0x7b2   : > { %v2119_v57 = vmul.f32 %v4058_v36, %v2108_v60  ;;  %v2607_v36 = vld [vmem:[%s4200_s4 + $0x28] sm:$0xff] }
 0x7b4   : > { %v2130_v30 = vadd.f32 %v4062_v48, %v2119_v57  ;;  %v2606_v48 = vld [vmem:[%s4200_s4 + $0x20] sm:$0xff] }
 0x7b5   : > { %2337 = vmatpush.bf16.msra.mxu0 %v2607_v36 }
 0x7b6   : > { %v2135_v62 = vpack.c.bf16 %v2131_v33, %v2130_v30 }
 0x7b8   : > { %2555 = vmatmul.msk.bf16.gmra.mxu3 %vm303_vm0, %v2135_v62 }
 0x7b9   : > { %2338 = vmatpush.bf16.msra.mxu0 %v2606_v48 }
 0x7bd   : > { %2339 = vmatpush.bf16.msra.mxu0 %v2605_v26 }
 0x7c1   : > { %2340 = vmatpush.bf16.msra.mxu0 %v2604_v38 }
 0x7c5   : > { %2341 = vmatpush.bf16.msra.mxu0 %v2603_v23 }
 0x7c9   : > { %2342 = vmatpush.bf16.msra.mxu0 %v2602_v47 }
 0x805   : > { %v2174_v17 = vpop.f32.mrf.mxu3 }
 0x806   : > { %v2175_v49 = vadd.f32 %v4120_v2, %v2174_v17 }
 0x808   : > { %v2202_v63 = vmul.f32 0.044715, %v2175_v49  ;;  %v2194_v11 = vmul.f32 0.5, %v2175_v49 }
 0x80a   : > { %v2210_v58 = vmul.f32 %v2202_v63, %v2175_v49 }
 0x80c   : > { %v2218_v39 = vmul.f32 %v2210_v58, %v2175_v49 }
 0x80d   : > { %v2176_v21 = vpop.f32.mrf.mxu3 }
 0x80e   : > { %v2226_v29 = vadd.f32 %v2218_v39, %v2175_v49  ;;  %v2177_v7 = vadd.f32 %v4120_v2, %v2176_v21 }
 0x810   : > { %v2203_v14 = vmul.f32 0.044715, %v2177_v7  ;;  %v2234_v56 = vmul.f32 0.7978846, %v2226_v29  ;;  %v2195_v16 = vmul.f32 0.5, %v2177_v7 }
 0x812   : > { %v2211_v13 = vmul.f32 %v2203_v14, %v2177_v7  ;;  %2898 = vtanh.f32 %v2234_v56 }
 0x814   : > { %v2219_v27 = vmul.f32 %v2211_v13, %v2177_v7 }
 0x815   : > { %v2179_v31 = vpop.f32.mrf.mxu3 }
 0x816   : > { %v2227_v51 = vadd.f32 %v2219_v27, %v2177_v7  ;;  %v2180_v22 = vadd.f32 %v4120_v2, %v2179_v31 }
 0x818   : > { %v2235_v34 = vmul.f32 0.7978846, %v2227_v51  ;;  %v2204_v15 = vmul.f32 0.044715, %v2180_v22  ;;  %v2899_v41 = vpop.eup %2898  ;;  %v2196_v36 = vmul.f32 0.5, %v2180_v22 }
 0x819   : > { %v2250_v25 = vadd.f32 1.0, %v2899_v41 }
 0x81a   : > { %2900 = vtanh.f32 %v2235_v34  ;;  %v2212_v10 = vmul.f32 %v2204_v15, %v2180_v22 }
 0x81b   : > { %v2258_v53 = vmul.f32 %v2250_v25, %v2194_v11 }
 0x81c   : > { %v2220_v28 = vmul.f32 %v2212_v10, %v2180_v22 }
 0x81d   : > { %v2181_v55 = vpop.f32.mrf.mxu3 }
 0x81e   : > { %v2182_v50 = vadd.f32 %v4120_v2, %v2181_v55  ;;  %v2228_v0 = vadd.f32 %v2220_v28, %v2180_v22 }
 0x820   : > { %v2901_v8 = vpop.eup %2900  ;;  %v2205_v37 = vmul.f32 0.044715, %v2182_v50  ;;  %v2236_v43 = vmul.f32 0.7978846, %v2228_v0  ;;  %v2197_v48 = vmul.f32 0.5, %v2182_v50 }
 0x821   : > { %v2251_v3 = vadd.f32 1.0, %v2901_v8 }
 0x822   : > { %v2213_v35 = vmul.f32 %v2205_v37, %v2182_v50  ;;  %2902 = vtanh.f32 %v2236_v43 }
 0x823   : > { %v2259_v24 = vmul.f32 %v2251_v3, %v2195_v16 }
 0x824   : > { %v2221_v20 = vmul.f32 %v2213_v35, %v2182_v50 }
 0x825   : > { %v2184_v40 = vpop.f32.mrf.mxu3  ;;  %v2266_v12 = vpack.c.bf16 %v2259_v24, %v2258_v53 }
 0x826   : > { %v2185_v4 = vadd.f32 %v4120_v2, %v2184_v40  ;;  %v2229_v42 = vadd.f32 %v2221_v20, %v2182_v50 }
 0x827   : > { %2343 = vmatmul.bf16.vlgmr.msra.gmra.mxu0 %v2266_v12 }
 0x828   : > { %v2206_v44 = vmul.f32 0.044715, %v2185_v4  ;;  %v2237_v59 = vmul.f32 0.7978846, %v2229_v42  ;;  %v2903_v60 = vpop.eup %2902  ;;  %v2198_v31 = vmul.f32 0.5, %v2185_v4 }
 0x829   : > { %v2252_v62 = vadd.f32 1.0, %v2903_v60 }
 0x82a   : > { %v2214_v54 = vmul.f32 %v2206_v44, %v2185_v4  ;;  %2904 = vtanh.f32 %v2237_v59 }
 0x82b   : > { %v2260_v47 = vmul.f32 %v2252_v62, %v2196_v36 }
 0x82c   : > { %v2222_v32 = vmul.f32 %v2214_v54, %v2185_v4 }
 0x82d   : > { %v2186_v57 = vpop.f32.mrf.mxu3 }
 0x82e   : > { %v2187_v30 = vadd.f32 %v4120_v2, %v2186_v57  ;;  %v2230_v33 = vadd.f32 %v2222_v32, %v2185_v4  ;;  %v2735_v4 = vld [vmem:[%s4201_s5 + $0x3] ss:$0 sm:$0xff] }
 0x830   : > { %v2905_v52 = vpop.eup %2904  ;;  %v2207_v6 = vmul.f32 0.044715, %v2187_v30  ;;  %v2238_v23 = vmul.f32 0.7978846, %v2230_v33  ;;  %v2199_v51 = vmul.f32 0.5, %v2187_v30 }
 0x831   : > { %v2253_v26 = vadd.f32 1.0, %v2905_v52 }
 0x832   : > { %v2215_v38 = vmul.f32 %v2207_v6, %v2187_v30  ;;  %2906 = vtanh.f32 %v2238_v23 }
 0x833   : > { %v2261_v17 = vmul.f32 %v2253_v26, %v2197_v48 }
 0x834   : > { %v2223_v49 = vmul.f32 %v2215_v38, %v2187_v30 }
 0x835   : > { %v2267_v63 = vpack.c.bf16 %v2261_v17, %v2260_v47 }
 0x836   : > { %v2231_v58 = vadd.f32 %v2223_v49, %v2187_v30 }
 0x837   : > { %2348 = vmatmul.bf16.gmra.mxu0 %v2267_v63 }
 0x838   : > { %v2239_v39 = vmul.f32 0.7978846, %v2231_v58  ;;  %v2907_v29 = vpop.eup %2906 }
 0x839   : > { %v2254_v56 = vadd.f32 1.0, %v2907_v29 }
 0x83a   : > { %2908 = vtanh.f32 %v2239_v39 }
 0x83b   : > { %v2189_v21 = vpop.f32.mrf.mxu3  ;;  %v2262_v10 = vmul.f32 %v2254_v56, %v2198_v31 }
 0x83c   : > { %v2190_v7 = vadd.f32 %v4120_v2, %v2189_v21 }
 0x83e   : > { %v2208_v14 = vmul.f32 0.044715, %v2190_v7  ;;  %v2200_v53 = vmul.f32 0.5, %v2190_v7 }
 0x840   : > { %v2909_v13 = vpop.eup %2908  ;;  %v2216_v27 = vmul.f32 %v2208_v14, %v2190_v7 }
 0x841   : > { %v2255_v22 = vadd.f32 1.0, %v2909_v13 }
 0x842   : > { %v2224_v34 = vmul.f32 %v2216_v27, %v2190_v7 }
 0x843   : > { %v2191_v15 = vpop.f32.mrf.mxu3  ;;  %v2263_v41 = vmul.f32 %v2255_v22, %v2199_v51 }
 0x844   : > { %v2192_v28 = vadd.f32 %v4120_v2, %v2191_v15  ;;  %v2232_v55 = vadd.f32 %v2224_v34, %v2190_v7 }
 0x845   : > { %v2268_v50 = vpack.c.bf16 %v2263_v41, %v2262_v10 }
 0x846   : > { %v2209_v0 = vmul.f32 0.044715, %v2192_v28  ;;  %v2240_v8 = vmul.f32 0.7978846, %v2232_v55  ;;  %v2201_v24 = vmul.f32 0.5, %v2192_v28 }
 0x847   : > { %2353 = vmatmul.bf16.gmra.mxu0 %v2268_v50 }
 0x848   : > { %v2217_v25 = vmul.f32 %v2209_v0, %v2192_v28  ;;  %2910 = vtanh.f32 %v2240_v8 }
 0x84a   : > { %v2225_v37 = vmul.f32 %v2217_v25, %v2192_v28 }
 0x84c   : > { %v2233_v11 = vadd.f32 %v2225_v37, %v2192_v28 }
 0x84e   : > { %v2241_v16 = vmul.f32 0.7978846, %v2233_v11  ;;  %v2911_v3 = vpop.eup %2910 }
 0x84f   : > { %v2256_v35 = vadd.f32 1.0, %v2911_v3 }
 0x850   : > { %2912 = vtanh.f32 %v2241_v16 }
 0x851   : > { %v2264_v40 = vmul.f32 %v2256_v35, %v2200_v53 }
 0x856   : > { %v2913_v43 = vpop.eup %2912 }
 0x857   : > { %v2257_v20 = vadd.f32 1.0, %v2913_v43 }
 0x859   : > { %v2265_v2 = vmul.f32 %v2257_v20, %v2201_v24 }
 0x85b   : > { %v2269_v12 = vpack.c.bf16 %v2265_v2, %v2264_v40 }
 0x85d   : > { %2358 = vmatmul.bf16.gmra.mxu0 %v2269_v12 }
 0x8a4   : > { %v2344_v42 = vpop.f32.mrf.mxu0 }
 0x8a5   : > { %v2345_v44 = vadd.f32 %v2735_v4, %v2344_v42 }
 0x8a7   : > { %v2364_v59 = vadd.f32 %v2345_v44, %v3947_v46 }
 0x8a9   : > { %2372 = vst.msk [vmem:[%s4136_s14] sm:$0xff] %vm303_vm0, %v2364_v59 }
 0x8ac   : > { %v2346_v54 = vpop.f32.mrf.mxu0 }
 0x8ad   : > { %v2347_v60 = vadd.f32 %v2735_v4, %v2346_v54 }
 0x8af   : > { %v2365_v32 = vadd.f32 %v2347_v60, %v3952_v18 }
 0x8b1   : > { %2373 = vst.msk [vmem:[%s4136_s14 + $0x8] sm:$0xff] %vm303_vm0, %v2365_v32 }
 0x8b4   : > { %v2349_v57 = vpop.f32.mrf.mxu0 }
 0x8b5   : > { %v2350_v30 = vadd.f32 %v2735_v4, %v2349_v57 }
 0x8b7   : > { %v2366_v46 = vadd.f32 %v2350_v30, %v3957_v45 }
 0x8b9   : > { %2374 = vst.msk [vmem:[%s4136_s14 + $0x10] sm:$0xff] %vm303_vm0, %v2366_v46 }
 0x8bc   : > { %v2351_v33 = vpop.f32.mrf.mxu0 }
 0x8bd   : > { %v2352_v62 = vadd.f32 %v2735_v4, %v2351_v33 }
 0x8bf   : > { %v2367_v52 = vadd.f32 %v2352_v62, %v3962_v5 }
 0x8c1   : > { %2375 = vst.msk [vmem:[%s4136_s14 + $0x18] sm:$0xff] %vm303_vm0, %v2367_v52 }
 0x8c4   : > { %v2354_v6 = vpop.f32.mrf.mxu0 }
 0x8c5   : > { %v2355_v18 = vadd.f32 %v2735_v4, %v2354_v6 }
 0x8c7   : > { %v2368_v36 = vadd.f32 %v2355_v18, %v3967_v19 }
 0x8c9   : > { %2376 = vst.msk [vmem:[%s4136_s14 + $0x20] sm:$0xff] %vm303_vm0, %v2368_v36 }
 0x8cc   : > { %v2356_v48 = vpop.f32.mrf.mxu0 }
 0x8cd   : > { %v2357_v26 = vadd.f32 %v2735_v4, %v2356_v48 }
 0x8cf   : > { %v2369_v45 = vadd.f32 %v2357_v26, %v3972_v61 }
 0x8d1   : > { %2377 = vst.msk [vmem:[%s4136_s14 + $0x28] sm:$0xff] %vm303_vm0, %v2369_v45 }
 0x8da   : > { %v2359_v38 = vpop.f32.mrf.mxu0 }
 0x8db   : > { %v2360_v23 = vadd.f32 %v2735_v4, %v2359_v38 }
 0x8dd   : > { %v2370_v5 = vadd.f32 %v2360_v23, %v3977_v1 }
 0x8df   : > { %2378 = vst.msk [vmem:[%s4136_s14 + $0x30] sm:$0xff] %vm303_vm0, %v2370_v5 }
 0x8e2   : > { %v2361_v19 = vpop.f32.mrf.mxu0 }
 0x8e3   : > { %v2362_v47 = vadd.f32 %v2735_v4, %v2361_v19 }
 0x8e5   : > { %v2371_v61 = vadd.f32 %v2362_v47, %v3982_v9 }
 0x8e7   : > { %2379 = vst.msk [vmem:[%s4136_s14 + $0x38] sm:$0xff] %vm303_vm0, %v2371_v61 }
 0x8e8   : > { %2981 = shalt.err (!%p2978_p4)
}
 0x8e9   : > { %s3035_s18 = smov 128  }
 0x8ea   : > { %2614 = dma.vmem_to_hbm [thread:$0]  (%p3121_p11), %s2395_s13, 1024, %s2397_s7, %s2381_s25, %s3035_s18, %s3035_s18, %s3031_s17  }
 0x8eb PF: > { %s2411_s14 = sand.u32 1, %s3008_s21   ;;  %p4208_p7 = scmp.ge.s32.totalorder %s3020_s24, 2 }
 0x8ec   : > { %s2412_s19 = scalar_lea.sflag [#allocation4], %s2411_s14 }
 0x8ed   : > { %p2621_p5 = pnand %p4208_p7, %p3125_p12 }
 0x8ef   : > { %p2622_p8 = pneg %p2621_p5 }
 0x8f1   : > { %3003 = dma.done.wait (%p2622_p8), %s2412_s19, 1024  }
 0x8f2   : > { %3005 = vsyncadd (%p2622_p8), %s2412_s19, 4294966272  ;;  %p19_p10 = scmp.ge.s32.totalorder %s3096_s27, 4   ;;  %s4209_s21 = smov %s3012_s22 }
 0x8f3   : > { %s4210_s22 = smov %s3016_s23  ;;  %s4211_s23 = smov %s3108_s30 }
 0x8f4   : > { %s4212_s24 = smov %s3096_s27  ;;  %21 = sbr.rel (!%p19_p10) target bundleno = 5 (0x5), region = 89 }
 0x8f9   :  { %2418 = vsyncpa [#allocation3], 1 }
 0x8fa   :  { %2420 = vsyncpa [#allocation3 + $0x1], 1 }
 0x8fb   :  { %2421 = vsyncpa [#allocation4], 1 }
 0x8fc   :  { %2423 = vsyncpa [#allocation4 + $0x1], 1 }

</bundles_post_ra>
